<compile_context>
chip_gen: v7x
topology: tpu7x:2x2x1
jax: 0.10.0
libtpu: 0.0.40
codegen_flags: <defaults>
</compile_context>

<pallas_src>
import jax
import jax.numpy as jnp
from jax.experimental import pallas as pl
from jax.experimental.pallas import tpu as pltpu


# ----------------------------------------------------------------------------
# Pallas kernels
# ----------------------------------------------------------------------------
def _apply_act(y, activation):
    if activation == "leaky_relu":
        return jnp.where(y > 0, y, 0.2 * y)
    if activation == "sigmoid":
        return 1.0 / (1.0 + jnp.exp(-y))
    return y


def _make_matmul_act_kernel(activation, kt):
    """Tiled matmul (bf16 in, f32 accumulate) with fused activation epilogue."""
    if kt == 1:
        # No K reduction: write the result directly, no accumulator scratch.
        def kernel(a_ref, b_ref, o_ref):
            y = jnp.dot(a_ref[...], b_ref[...],
                        preferred_element_type=jnp.float32)
            o_ref[...] = _apply_act(y, activation).astype(o_ref.dtype)
        return kernel

    def kernel(a_ref, b_ref, o_ref, acc_ref):
        @pl.when(pl.program_id(2) == 0)
        def _():
            acc_ref[...] = jnp.zeros_like(acc_ref)

        acc_ref[...] += jnp.dot(a_ref[...], b_ref[...],
                                preferred_element_type=jnp.float32)

        @pl.when(pl.program_id(2) == kt - 1)
        def _():
            o_ref[...] = _apply_act(acc_ref[...], activation).astype(o_ref.dtype)

    return kernel


def _make_matmul_bn_lrelu_kernel(m_real, kt, eps=1e-5):
    """Matmul + BatchNorm (training-mode batch stats) + LeakyReLU, fully fused.

    The whole (padded) M dimension is one block.  Padded patch rows are exactly
    zero, so they contribute 0 to both sum(y) and sum(y*y); dividing by the
    real row count keeps the single-pass statistics exact.
    """
    inv_m = 1.0 / float(m_real)

    def _finalize(y, g, b, o_ref):
        s1 = jnp.sum(y, axis=0, keepdims=True)
        s2 = jnp.sum(y * y, axis=0, keepdims=True)
        mean = s1 * inv_m
        var = s2 * inv_m - mean * mean          # exact: pad rows are zero
        yn = (y - mean) * jax.lax.rsqrt(var + eps) * g + b
        o_ref[...] = jnp.where(yn > 0, yn, 0.2 * yn).astype(o_ref.dtype)

    if kt == 1:
        def kernel(a_ref, b_ref, g_ref, bb_ref, o_ref):
            y = jnp.dot(a_ref[...], b_ref[...],
                        preferred_element_type=jnp.float32)
            _finalize(y, g_ref[...], bb_ref[...], o_ref)
        return kernel

    def kernel(a_ref, b_ref, g_ref, bb_ref, o_ref, acc_ref):
        @pl.when(pl.program_id(1) == 0)
        def _():
            acc_ref[...] = jnp.zeros_like(acc_ref)

        acc_ref[...] += jnp.dot(a_ref[...], b_ref[...],
                                preferred_element_type=jnp.float32)

        @pl.when(pl.program_id(1) == kt - 1)
        def _():
            _finalize(acc_ref[...], g_ref[...], bb_ref[...], o_ref)

    return kernel


def _last_layer_kernel(a_ref, w_ref, o_ref):
    """Final conv (Cout=1, M=2): VPU multiply + reduce over K, then sigmoid."""
    a = a_ref[...].astype(jnp.float32)
    w = w_ref[...].astype(jnp.float32)
    s = jnp.sum(a * w, axis=1, keepdims=True)            # (Mp, 1)
    o_ref[...] = 1.0 / (1.0 + jnp.exp(-s))


# ----------------------------------------------------------------------------
# Tiling helpers + pallas_call wrappers
# ----------------------------------------------------------------------------
def _round_up(x, m):
    return ((x + m - 1) // m) * m


def _pick_tm(mp):
    """M tile: whole M when it fits (single grid step on single-TC chips)."""
    if mp <= 4096:
        return mp
    for tm in (2048, 1024, 896, 768, 640, 512, 384, 256, 128, 64, 32, 16):
        if mp % tm == 0:
            return tm
    return 16


def _pick_tk_tn(k, n):
    tn = n if n <= 256 else 256
    assert n % tn == 0, (n, tn)
    # Keep K unsplit while the bf16 B tile stays <= 4 MiB (true for all layers
    # here -> no reduction axis, no accumulator scratch); otherwise split.
    if k * tn * 2 <= 4 * 1024 * 1024:
        tk = k
    elif k % 2048 == 0:
        tk = 2048
    else:
        tk = 512
    assert k % tk == 0, (k, tk)
    return tk, tn


def matmul_act_pallas(a, b, activation=None):
    """activation(a @ b); a:(M,K) bf16, b:(K,N) bf16, bf16 output."""
    m, k = a.shape
    _, n = b.shape
    mp = _round_up(m, 16)                       # bf16 sublane tile
    if mp != m:
        a = jnp.pad(a, ((0, mp - m), (0, 0)))
    tm = _pick_tm(mp)
    tk, tn = _pick_tk_tn(k, n)
    kt = k // tk
    grid = (mp // tm, n // tn, kt)
    scratch = [] if kt == 1 else [pltpu.VMEM((tm, tn), jnp.float32)]

    # TODO(synk): for conv1 (N=64) the output lane width is sub-128 -> masked
    # stores; an in-kernel (tm,64)->(tm/2,128) repack would make it lane-dense.
    out = pl.pallas_call(
        _make_matmul_act_kernel(activation, kt),
        out_shape=jax.ShapeDtypeStruct((mp, n), jnp.bfloat16),
        grid_spec=pltpu.PrefetchScalarGridSpec(
            num_scalar_prefetch=0,
            grid=grid,
            in_specs=[
                pl.BlockSpec((tm, tk), lambda i, j, kk: (i, kk)),
                pl.BlockSpec((tk, tn), lambda i, j, kk: (kk, j)),
            ],
            out_specs=pl.BlockSpec((tm, tn), lambda i, j, kk: (i, j)),
            scratch_shapes=scratch,
        ),
        compiler_params=pltpu.CompilerParams(
            dimension_semantics=("parallel", "parallel", "arbitrary")),
    )(a, b)
    return out[:m]


def matmul_bn_lrelu_pallas(a, b, gamma, beta):
    """LeakyReLU(BatchNorm(a @ b)) with batch stats over M; fused kernel."""
    m, k = a.shape
    _, n = b.shape
    mp = _round_up(m, 16)                       # bf16 sublane tile
    if mp != m:
        a = jnp.pad(a, ((0, mp - m), (0, 0)))
    tk, tn = _pick_tk_tn(k, n)
    kt = k // tk
    grid = (n // tn, kt)
    scratch = [] if kt == 1 else [pltpu.VMEM((mp, tn), jnp.float32)]

    out = pl.pallas_call(
        _make_matmul_bn_lrelu_kernel(m, kt),
        out_shape=jax.ShapeDtypeStruct((mp, n), jnp.bfloat16),
        grid_spec=pltpu.PrefetchScalarGridSpec(
            num_scalar_prefetch=0,
            grid=grid,
            in_specs=[
                pl.BlockSpec((mp, tk), lambda j, kk: (0, kk)),
                pl.BlockSpec((tk, tn), lambda j, kk: (kk, j)),
                pl.BlockSpec((1, tn), lambda j, kk: (0, j)),
                pl.BlockSpec((1, tn), lambda j, kk: (0, j)),
            ],
            out_specs=pl.BlockSpec((mp, tn), lambda j, kk: (0, j)),
            scratch_shapes=scratch,
        ),
        compiler_params=pltpu.CompilerParams(
            dimension_semantics=("parallel", "arbitrary")),
    )(a, b,
      gamma.reshape(1, n).astype(jnp.float32),
      beta.reshape(1, n).astype(jnp.float32))
    return out[:m]


def last_conv_sigmoid_pallas(a, w):
    """sigmoid(a @ w) for the degenerate final layer (N=1): VPU reduce."""
    m, k = a.shape
    mp = _round_up(m, 16)
    if mp != m:
        a = jnp.pad(a, ((0, mp - m), (0, 0)))
    out = pl.pallas_call(
        _last_layer_kernel,
        out_shape=jax.ShapeDtypeStruct((mp, 1), jnp.float32),
        grid=(1,),
        in_specs=[
            pl.BlockSpec((mp, k), lambda i: (0, 0)),
            pl.BlockSpec((1, k), lambda i: (0, 0)),
        ],
        out_specs=pl.BlockSpec((mp, 1), lambda i: (0, 0)),
    )(a, w.reshape(1, k))
    return out[:m]


# ----------------------------------------------------------------------------
# Glue: im2col + model assembly
# ----------------------------------------------------------------------------
def im2col(x, k, s, p):
    """x: NHWC -> patches (N*Ho*Wo, k*k*C), ordered (kh, kw, Cin) along K."""
    n, h, w, c = x.shape
    if p > 0:
        x = jnp.pad(x, ((0, 0), (p, p), (p, p), (0, 0)))
    ho = (h + 2 * p - k) // s + 1
    wo = (w + 2 * p - k) // s + 1
    cols = []
    for i in range(k):
        for j in range(k):
            cols.append(x[:, i : i + s * ho : s, j : j + s * wo : s, :])
    patches = jnp.stack(cols, axis=3)               # (N, Ho, Wo, k*k, C)
    return patches.reshape(n * ho * wo, k * k * c), (n, ho, wo)


def _conv_block(x, w, k, s, p, mode, gamma=None, beta=None):
    # TODO(synk): im2col remains plain-JAX glue — the stride-2 patch gather is
    # not expressible as a rectangular BlockSpec.  The remaining structural win
    # would be folding the 16 (kh,kw) taps into the Pallas kernel with
    # sublane-strided reads and dropping the patch materialization entirely.
    cout = w.shape[0]
    # PyTorch weight (Cout, Cin, kh, kw) -> (kh, kw, Cin, Cout) -> (K, Cout)
    w2d = jnp.transpose(w, (2, 3, 1, 0)).reshape(-1, cout)
    if mode == "last":
        # k=5, s=2, p=0 on a 5x5 map -> exactly one patch per image: a flatten.
        n, h, ww, c = x.shape
        assert h == k and ww == k and p == 0, (h, ww, k, p)
        patches = x.reshape(n, k * k * c).astype(jnp.bfloat16)
        ho = wo = 1
        y = last_conv_sigmoid_pallas(patches, w2d[:, 0].astype(jnp.bfloat16))
    else:
        patches, (n, ho, wo) = im2col(x.astype(jnp.bfloat16), k, s, p)
        w2d = w2d.astype(jnp.bfloat16)
        if mode == "first":
            y = matmul_act_pallas(patches, w2d, activation="leaky_relu")
        else:  # mid: Conv + BatchNorm + LeakyReLU fused in one kernel
            y = matmul_bn_lrelu_pallas(patches, w2d, gamma, beta)
    return y.reshape(n, ho, wo, cout)


def discriminator_pallas(x_nchw, params):
    x = jnp.transpose(x_nchw, (0, 2, 3, 1))           # NCHW -> NHWC
    x = _conv_block(x, params["w1"], 4, 2, 1, "first")
    x = _conv_block(x, params["w2"], 4, 2, 1, "mid", params["g2"], params["b2"])
    x = _conv_block(x, params["w3"], 4, 2, 1, "mid", params["g3"], params["b3"])
    x = _conv_block(x, params["w4"], 4, 2, 1, "mid", params["g4"], params["b4"])
    x = _conv_block(x, params["w5"], 5, 2, 0, "last")
    return jnp.transpose(x, (0, 3, 1, 2))             # back to NCHW


# ----------------------------------------------------------------------------
# Pure-JAX reference (same semantics, XLA convolutions) for verification
# ----------------------------------------------------------------------------
def discriminator_reference(x, params):
    def conv(x, w, stride, pad):
        return jax.lax.conv_general_dilated(
            x, w, window_strides=(stride, stride),
            padding=[(pad, pad), (pad, pad)],
            dimension_numbers=("NCHW", "OIHW", "NCHW"),
            precision=jax.lax.Precision.HIGHEST,
        )

    def lrelu(v):
        return jnp.where(v > 0, v, 0.2 * v)

    def bn(v, g, b):
        mean = jnp.mean(v, axis=(0, 2, 3), keepdims=True)
        var = jnp.mean(jnp.square(v - mean), axis=(0, 2, 3), keepdims=True)
        vn = (v - mean) * jax.lax.rsqrt(var + 1e-5)
        return vn * g.reshape(1, -1, 1, 1) + b.reshape(1, -1, 1, 1)

    x = lrelu(conv(x, params["w1"], 2, 1))
    x = lrelu(bn(conv(x, params["w2"], 2, 1), params["g2"], params["b2"]))
    x = lrelu(bn(conv(x, params["w3"], 2, 1), params["g3"], params["b3"]))
    x = lrelu(bn(conv(x, params["w4"], 2, 1), params["g4"], params["b4"]))
    x = jax.nn.sigmoid(conv(x, params["w5"], 2, 0))
    return x


# ----------------------------------------------------------------------------
if __name__ == "__main__":
    key = jax.random.PRNGKey(0)
    keys = jax.random.split(key, 6)

    def winit(k, shape):
        fan_in = shape[1] * shape[2] * shape[3]
        return jax.random.normal(k, shape, jnp.float32) / jnp.sqrt(float(fan_in))

    # Smallest spatial size that survives 4 stride-2 convs + the final 5x5/s2
    # valid conv with a non-empty output: 80 -> 40 -> 20 -> 10 -> 5 -> 1.
    x = jax.random.normal(keys[0], (2, 3, 80, 80), jnp.float32)

    params = {
        "w1": winit(keys[1], (64, 3, 4, 4)),
        "w2": winit(keys[2], (128, 64, 4, 4)),
        "w3": winit(keys[3], (256, 128, 4, 4)),
        "w4": winit(keys[4], (512, 256, 4, 4)),
        "w5": winit(keys[5], (1, 512, 5, 5)),
        # BatchNorm affine params at PyTorch defaults (gamma=1, beta=0)
        "g2": jnp.ones((128,), jnp.float32), "b2": jnp.zeros((128,), jnp.float32),
        "g3": jnp.ones((256,), jnp.float32), "b3": jnp.zeros((256,), jnp.float32),
        "g4": jnp.ones((512,), jnp.float32), "b4": jnp.zeros((512,), jnp.float32),
    }

    out = jax.block_until_ready(discriminator_pallas(x, params))
    assert out.shape == (2, 1, 1, 1), out.shape
    assert bool(jnp.all(jnp.isfinite(out)))

    ref = jax.block_until_ready(discriminator_reference(x, params))
    max_err = float(jnp.max(jnp.abs(out - ref)))
    assert max_err < 5e-2, f"mismatch vs reference: max_err={max_err}"

    print("KERNEL_OK")
</pallas_src>

<mosaic_0001>
module attributes {stable_mosaic.version = 11 : i64} {
  func.func @kernel(%arg0: i32, %arg1: i32, %arg2: i32, %arg3: memref<3200x48xbf16, #tpu.memory_space<vmem>>, %arg4: memref<48x64xbf16, #tpu.memory_space<vmem>>, %arg5: memref<3200x64xbf16, #tpu.memory_space<vmem>>) attributes {dimension_semantics = [#tpu.dimension_semantics<parallel>, #tpu.dimension_semantics<parallel>, #tpu.dimension_semantics<arbitrary>], iteration_bounds = array<i64: 1, 1, 1>, scalar_prefetch = 0 : i64, scratch_operands = 0 : i64, tpu.core_type = #tpu.core_type<tc>, window_params = [{transform_indices = @transform_0, window_bounds = array<i64: 3200, 48>}, {transform_indices = @transform_1, window_bounds = array<i64: 48, 64>}, {transform_indices = @transform_2, window_bounds = array<i64: 3200, 64>}]} {
    %c0 = arith.constant 0 : index
    %c0_0 = arith.constant 0 : index
    %0 = vector.load %arg3[%c0, %c0_0] : memref<3200x48xbf16, #tpu.memory_space<vmem>>, vector<3200x48xbf16>
    %c0_1 = arith.constant 0 : index
    %c0_2 = arith.constant 0 : index
    %1 = vector.load %arg4[%c0_1, %c0_2] : memref<48x64xbf16, #tpu.memory_space<vmem>>, vector<48x64xbf16>
    %cst = arith.constant dense<0.000000e+00> : vector<3200x64xf32>
    %2 = tpu.matmul %0, %1, %cst {dimension_numbers = #tpu.dot_dimension_numbers<[1], [0], [0], [1], [0, 0, 1, 1], [], []>} : vector<3200x48xbf16>, vector<48x64xbf16>, vector<3200x64xf32> -> vector<3200x64xf32>
    %cst_3 = arith.constant 0.000000e+00 : f32
    %3 = vector.broadcast %cst_3 : f32 to vector<3200x64xf32>
    %4 = arith.cmpf ogt, %2, %3 : vector<3200x64xf32>
    %cst_4 = arith.constant 2.000000e-01 : f32
    %5 = vector.broadcast %cst_4 : f32 to vector<3200x64xf32>
    %6 = arith.mulf %5, %2 : vector<3200x64xf32>
    %7 = arith.select %4, %2, %6 : vector<3200x64xi1>, vector<3200x64xf32>
    %8 = arith.truncf %7 : vector<3200x64xf32> to vector<3200x64xbf16>
    %c0_5 = arith.constant 0 : index
    %c0_6 = arith.constant 0 : index
    %9 = vector.load %arg5[%c0_5, %c0_6] : memref<3200x64xbf16, #tpu.memory_space<vmem>>, vector<3200x64xbf16>
    tpu.vector_store %arg5[%c0_5, %c0_6], %8 {strides = array<i32>} : memref<3200x64xbf16, #tpu.memory_space<vmem>>, vector<3200x64xbf16>,
    return
  }
  func.func @transform_0(%arg0: i32, %arg1: i32, %arg2: i32) -> (i32, i32) {
    %c0_i32 = arith.constant 0 : i32
    return %arg0, %arg2 : i32, i32
  }
  func.func @transform_1(%arg0: i32, %arg1: i32, %arg2: i32) -> (i32, i32) {
    %c0_i32 = arith.constant 0 : i32
    return %arg2, %arg1 : i32, i32
  }
  func.func @transform_2(%arg0: i32, %arg1: i32, %arg2: i32) -> (i32, i32) {
    %c0_i32 = arith.constant 0 : i32
    return %arg0, %arg1 : i32, i32
  }
}

</mosaic_0001>

<bundles_post_ra>
// kernel: tpu_custom_call.1
= control target key start
LH: loop header
LB: loop body
LE: loop exit
PB: predicated region body
PF: predicated region fallthrough
CT: control target
= control target key end

     0   :  { %vm1436_vm0 = vcmask 392192   ;;  %vm6470_vm3 = vcmask 519168   ;;  %s11323_s1 = inlined_call_operand.vmem [shape: bf16[48,64], index: 1, kind: input, shape index: {}]   ;;  %s11324_s0 = inlined_call_operand.vmem [shape: bf16[3200,48], index: 0, kind: input, shape index: {}]   ;;  %s11325_s2 = inlined_call_operand.vmem [shape: bf16[3200,64], index: 2, kind: output, shape index: {}]  }
   0x1   :  { %v8693_v0 = vld [vmem:[%s11323_s1] sm:$0xff]   ;;  %v8694_v1 = vld [vmem:[%s11323_s1 + $0x8] sm:$0xff]   ;;  %v8695_v2 = vld [vmem:[%s11323_s1 + $0x10] sm:$0xff]  }
   0x2   :  { %8281 = vmatprep.subr.bf16.mxu0 %v8693_v0  ;;  %8687 = vmatprep.subr.bf16.mxu1 %v8693_v0  ;;  %v8696_v3 = vld [vmem:[%s11324_s0] sm:$0xff]   ;;  %v8698_v5 = vld [vmem:[%s11324_s0 + $0x8] sm:$0xff]   ;;  %v8700_v7 = vld [vmem:[%s11324_s0 + $0x10] sm:$0xff]  }
   0x3   :  { %8282 = vmatpush3.bf16.msra.mxu0 %v8693_v0  ;;  %8690 = vmatpush3.bf16.msra.mxu1 %v8693_v0  ;;  %v8697_v4 = vld [vmem:[%s11324_s0 + $0x320] sm:$0xff]   ;;  %v8699_v6 = vld [vmem:[%s11324_s0 + $0x328] sm:$0xff]   ;;  %v8701_v8 = vld [vmem:[%s11324_s0 + $0x330] sm:$0xff]  }
   0x4   :  { %8283 = vmatprep.subr.bf16.mxu0 %v8694_v1  ;;  %8688 = vmatprep.subr.bf16.mxu1 %v8694_v1  ;;  %v8702_v9 = vld [vmem:[%s11324_s0 + $0x18] sm:$0xff]   ;;  %v8704_v11 = vld [vmem:[%s11324_s0 + $0x20] sm:$0xff]   ;;  %v8706_v13 = vld [vmem:[%s11324_s0 + $0x28] sm:$0xff]  }
   0x5   :  { %8287 = vmatprep.mubr.msk.bf16.mxu0 %vm1436_vm0, %v8696_v3  ;;  %8487 = vmatprep.mubr.msk.bf16.mxu1 %vm1436_vm0, %v8697_v4  ;;  %v8703_v10 = vld [vmem:[%s11324_s0 + $0x338] sm:$0xff]   ;;  %v8705_v12 = vld [vmem:[%s11324_s0 + $0x340] sm:$0xff]   ;;  %v8707_v14 = vld [vmem:[%s11324_s0 + $0x348] sm:$0xff]  }
   0x6   :  { %v8708_v15 = vld [vmem:[%s11324_s0 + $0x30] sm:$0xff]   ;;  %v8710_v17 = vld [vmem:[%s11324_s0 + $0x38] sm:$0xff]   ;;  %v8712_v19 = vld [vmem:[%s11324_s0 + $0x40] sm:$0xff]  }
   0x7   :  { %8284 = vmatpush3.bf16.msra.mxu0 %v8694_v1  ;;  %8691 = vmatpush3.bf16.msra.mxu1 %v8694_v1  ;;  %v8709_v16 = vld [vmem:[%s11324_s0 + $0x350] sm:$0xff]   ;;  %v8711_v18 = vld [vmem:[%s11324_s0 + $0x358] sm:$0xff]   ;;  %v8713_v20 = vld [vmem:[%s11324_s0 + $0x360] sm:$0xff]  }
   0x8   :  { %8285 = vmatprep.subr.bf16.mxu0 %v8695_v2  ;;  %8689 = vmatprep.subr.bf16.mxu1 %v8695_v2  ;;  %v8714_v21 = vld [vmem:[%s11324_s0 + $0x48] sm:$0xff]   ;;  %v8716_v23 = vld [vmem:[%s11324_s0 + $0x50] sm:$0xff]   ;;  %v8718_v25 = vld [vmem:[%s11324_s0 + $0x58] sm:$0xff]  }
   0x9   :  { %v8715_v22 = vld [vmem:[%s11324_s0 + $0x368] sm:$0xff]   ;;  %v8717_v24 = vld [vmem:[%s11324_s0 + $0x370] sm:$0xff]   ;;  %v8719_v26 = vld [vmem:[%s11324_s0 + $0x378] sm:$0xff]  }
   0xa   :  { %v8720_v27 = vld [vmem:[%s11324_s0 + $0x60] sm:$0xff]   ;;  %v8722_v29 = vld [vmem:[%s11324_s0 + $0x68] sm:$0xff]   ;;  %v8724_v31 = vld [vmem:[%s11324_s0 + $0x70] sm:$0xff]  }
   0xb   :  { %8286 = vmatpush3.bf16.msra.mxu0 %v8695_v2  ;;  %8692 = vmatpush3.bf16.msra.mxu1 %v8695_v2  ;;  %v8721_v28 = vld [vmem:[%s11324_s0 + $0x380] sm:$0xff]   ;;  %v8723_v30 = vld [vmem:[%s11324_s0 + $0x388] sm:$0xff]   ;;  %v8725_v32 = vld [vmem:[%s11324_s0 + $0x390] sm:$0xff]  }
   0xc   :  { %v8726_v33 = vld [vmem:[%s11324_s0 + $0x78] sm:$0xff]   ;;  %v8728_v35 = vld [vmem:[%s11324_s0 + $0x80] sm:$0xff]   ;;  %v8730_v37 = vld [vmem:[%s11324_s0 + $0x88] sm:$0xff]  }
   0xd   :  { %v8727_v34 = vld [vmem:[%s11324_s0 + $0x398] sm:$0xff]   ;;  %v8729_v36 = vld [vmem:[%s11324_s0 + $0x3a0] sm:$0xff]   ;;  %v8731_v38 = vld [vmem:[%s11324_s0 + $0x3a8] sm:$0xff]  }
   0xe   :  { %8288 = vmatmul.mubr.msk.bf16.vlgmr.msra.gmra.mrb[0].mxu0 %vm1436_vm0, %v8698_v5  ;;  %8488 = vmatmul.mubr.msk.bf16.vlgmr.msra.gmra.mrb[0].mxu1 %vm1436_vm0, %v8699_v6  ;;  %v8732_v39 = vld [vmem:[%s11324_s0 + $0x90] sm:$0xff]   ;;  %v8734_v41 = vld [vmem:[%s11324_s0 + $0x98] sm:$0xff]   ;;  %v8736_v43 = vld [vmem:[%s11324_s0 + $0xa0] sm:$0xff]  }
   0xf   :  { %8291 = vmatprep.mubr.msk.bf16.mxu0 %vm1436_vm0, %v8700_v7  ;;  %8491 = vmatprep.mubr.msk.bf16.mxu1 %vm1436_vm0, %v8701_v8  ;;  %v8733_v40 = vld [vmem:[%s11324_s0 + $0x3b0] sm:$0xff]   ;;  %v8735_v42 = vld [vmem:[%s11324_s0 + $0x3b8] sm:$0xff]   ;;  %v8737_v44 = vld [vmem:[%s11324_s0 + $0x3c0] sm:$0xff]  }
  0x10   :  { %v8738_v45 = vld [vmem:[%s11324_s0 + $0xa8] sm:$0xff]   ;;  %v8740_v47 = vld [vmem:[%s11324_s0 + $0xb0] sm:$0xff]   ;;  %v8742_v49 = vld [vmem:[%s11324_s0 + $0xb8] sm:$0xff]  }
  0x11   :  { %v8739_v46 = vld [vmem:[%s11324_s0 + $0x3c8] sm:$0xff]   ;;  %v8741_v48 = vld [vmem:[%s11324_s0 + $0x3d0] sm:$0xff]   ;;  %v8743_v50 = vld [vmem:[%s11324_s0 + $0x3d8] sm:$0xff]  }
  0x12   :  { %v8744_v51 = vld [vmem:[%s11324_s0 + $0xc0] sm:$0xff]   ;;  %v8746_v53 = vld [vmem:[%s11324_s0 + $0xc8] sm:$0xff]   ;;  %v8748_v55 = vld [vmem:[%s11324_s0 + $0xd0] sm:$0xff]  }
  0x13   :  { %v8745_v52 = vld [vmem:[%s11324_s0 + $0x3e0] sm:$0xff]   ;;  %v8747_v54 = vld [vmem:[%s11324_s0 + $0x3e8] sm:$0xff]   ;;  %v8749_v56 = vld [vmem:[%s11324_s0 + $0x3f0] sm:$0xff]  }
  0x14   :  { %v8750_v57 = vld [vmem:[%s11324_s0 + $0xd8] sm:$0xff]   ;;  %v8752_v59 = vld [vmem:[%s11324_s0 + $0xe0] sm:$0xff]   ;;  %v8754_v61 = vld [vmem:[%s11324_s0 + $0xe8] sm:$0xff]  }
  0x15   :  { %v8751_v58 = vld [vmem:[%s11324_s0 + $0x3f8] sm:$0xff]   ;;  %v8753_v60 = vld [vmem:[%s11324_s0 + $0x400] sm:$0xff]   ;;  %v8755_v62 = vld [vmem:[%s11324_s0 + $0x408] sm:$0xff]  }
  0x16   :  { %8292 = vmatmul.mubr.msk.bf16.gmra.mrb[4].mxu0 %vm1436_vm0, %v8702_v9  ;;  %8492 = vmatmul.mubr.msk.bf16.gmra.mrb[4].mxu1 %vm1436_vm0, %v8703_v10  ;;  %v8756_v63 = vld [vmem:[%s11324_s0 + $0xf0] sm:$0xff]   ;;  %v8758_v1 = vld [vmem:[%s11324_s0 + $0xf8] sm:$0xff]   ;;  %v8760_v3 = vld [vmem:[%s11324_s0 + $0x100] sm:$0xff]  }
  0x17   :  { %8295 = vmatprep.mubr.msk.bf16.mxu0 %vm1436_vm0, %v8704_v11  ;;  %8495 = vmatprep.mubr.msk.bf16.mxu1 %vm1436_vm0, %v8705_v12  ;;  %v8757_v0 = vld [vmem:[%s11324_s0 + $0x410] sm:$0xff]   ;;  %v8759_v2 = vld [vmem:[%s11324_s0 + $0x418] sm:$0xff]   ;;  %v8761_v4 = vld [vmem:[%s11324_s0 + $0x420] sm:$0xff]  }
  0x18   :  { %v8762_v5 = vld [vmem:[%s11324_s0 + $0x108] sm:$0xff]   ;;  %v8764_v7 = vld [vmem:[%s11324_s0 + $0x110] sm:$0xff]   ;;  %v8766_v9 = vld [vmem:[%s11324_s0 + $0x118] sm:$0xff]  }
  0x19   :  { %v8763_v6 = vld [vmem:[%s11324_s0 + $0x428] sm:$0xff]   ;;  %v8765_v8 = vld [vmem:[%s11324_s0 + $0x430] sm:$0xff]   ;;  %v8767_v10 = vld [vmem:[%s11324_s0 + $0x438] sm:$0xff]  }
  0x1a   :  { %v8768_v11 = vld [vmem:[%s11324_s0 + $0x120] sm:$0xff]  }
  0x1b   :  { %v8769_v12 = vld [vmem:[%s11324_s0 + $0x440] sm:$0xff]  }
  0x1e   :  { %8296 = vmatmul.mubr.msk.bf16.gmra.mrb[8].mxu0 %vm1436_vm0, %v8706_v13  ;;  %8496 = vmatmul.mubr.msk.bf16.gmra.mrb[8].mxu1 %vm1436_vm0, %v8707_v14  ;;  %v8770_v13 = vld [vmem:[%s11324_s0 + $0x128] sm:$0xff]  }
  0x1f   :  { %8299 = vmatprep.mubr.msk.bf16.mxu0 %vm1436_vm0, %v8708_v15  ;;  %8499 = vmatprep.mubr.msk.bf16.mxu1 %vm1436_vm0, %v8709_v16  ;;  %v8771_v14 = vld [vmem:[%s11324_s0 + $0x448] sm:$0xff]   ;;  %v8772_v15 = vld [vmem:[%s11324_s0 + $0x130] sm:$0xff]  }
  0x20   :  { %v8773_v16 = vld [vmem:[%s11324_s0 + $0x450] sm:$0xff]  }
  0x26   :  { %8300 = vmatmul.mubr.msk.bf16.gmra.mrb[12].mxu0 %vm1436_vm0, %v8710_v17  ;;  %8500 = vmatmul.mubr.msk.bf16.gmra.mrb[12].mxu1 %vm1436_vm0, %v8711_v18  ;;  %v8774_v17 = vld [vmem:[%s11324_s0 + $0x138] sm:$0xff]  }
  0x27   :  { %8303 = vmatprep.mubr.msk.bf16.mxu0 %vm1436_vm0, %v8712_v19  ;;  %8503 = vmatprep.mubr.msk.bf16.mxu1 %vm1436_vm0, %v8713_v20  ;;  %v8775_v18 = vld [vmem:[%s11324_s0 + $0x458] sm:$0xff]   ;;  %v8776_v19 = vld [vmem:[%s11324_s0 + $0x140] sm:$0xff]  }
  0x28   :  { %v8777_v20 = vld [vmem:[%s11324_s0 + $0x460] sm:$0xff]  }
  0x2e   :  { %8304 = vmatmul.mubr.msk.bf16.gmra.mrb[16].mxu0 %vm1436_vm0, %v8714_v21  ;;  %8504 = vmatmul.mubr.msk.bf16.gmra.mrb[16].mxu1 %vm1436_vm0, %v8715_v22  ;;  %v8778_v21 = vld [vmem:[%s11324_s0 + $0x148] sm:$0xff]  }
  0x2f   :  { %8307 = vmatprep.mubr.msk.bf16.mxu0 %vm1436_vm0, %v8716_v23  ;;  %8507 = vmatprep.mubr.msk.bf16.mxu1 %vm1436_vm0, %v8717_v24  ;;  %v8779_v22 = vld [vmem:[%s11324_s0 + $0x468] sm:$0xff]   ;;  %v8780_v23 = vld [vmem:[%s11324_s0 + $0x150] sm:$0xff]  }
  0x30   :  { %v8781_v24 = vld [vmem:[%s11324_s0 + $0x470] sm:$0xff]  }
  0x36   :  { %8308 = vmatmul.mubr.msk.bf16.gmra.mrb[20].mxu0 %vm1436_vm0, %v8718_v25  ;;  %8508 = vmatmul.mubr.msk.bf16.gmra.mrb[20].mxu1 %vm1436_vm0, %v8719_v26  ;;  %v8782_v25 = vld [vmem:[%s11324_s0 + $0x158] sm:$0xff]  }
  0x37   :  { %8311 = vmatprep.mubr.msk.bf16.mxu0 %vm1436_vm0, %v8720_v27  ;;  %8511 = vmatprep.mubr.msk.bf16.mxu1 %vm1436_vm0, %v8721_v28  ;;  %v8783_v26 = vld [vmem:[%s11324_s0 + $0x478] sm:$0xff]   ;;  %v8784_v27 = vld [vmem:[%s11324_s0 + $0x160] sm:$0xff]  }
  0x38   :  { %v8785_v28 = vld [vmem:[%s11324_s0 + $0x480] sm:$0xff]  }
  0x3e   :  { %8312 = vmatmul.mubr.msk.bf16.gmra.mrb[24].mxu0 %vm1436_vm0, %v8722_v29  ;;  %8512 = vmatmul.mubr.msk.bf16.gmra.mrb[24].mxu1 %vm1436_vm0, %v8723_v30  ;;  %v8786_v29 = vld [vmem:[%s11324_s0 + $0x168] sm:$0xff]  }
  0x3f   :  { %8315 = vmatprep.mubr.msk.bf16.mxu0 %vm1436_vm0, %v8724_v31  ;;  %8515 = vmatprep.mubr.msk.bf16.mxu1 %vm1436_vm0, %v8725_v32  ;;  %v8787_v30 = vld [vmem:[%s11324_s0 + $0x488] sm:$0xff]   ;;  %v8788_v31 = vld [vmem:[%s11324_s0 + $0x170] sm:$0xff]  }
  0x40   :  { %v8789_v32 = vld [vmem:[%s11324_s0 + $0x490] sm:$0xff]  }
  0x46   :  { %8316 = vmatmul.mubr.msk.bf16.gmra.mrb[28].mxu0 %vm1436_vm0, %v8726_v33  ;;  %8516 = vmatmul.mubr.msk.bf16.gmra.mrb[28].mxu1 %vm1436_vm0, %v8727_v34  ;;  %v8790_v33 = vld [vmem:[%s11324_s0 + $0x178] sm:$0xff]  }
  0x47   :  { %8319 = vmatprep.mubr.msk.bf16.mxu0 %vm1436_vm0, %v8728_v35  ;;  %8519 = vmatprep.mubr.msk.bf16.mxu1 %vm1436_vm0, %v8729_v36  ;;  %v8791_v34 = vld [vmem:[%s11324_s0 + $0x498] sm:$0xff]   ;;  %v8792_v35 = vld [vmem:[%s11324_s0 + $0x180] sm:$0xff]  }
  0x48   :  { %v8793_v36 = vld [vmem:[%s11324_s0 + $0x4a0] sm:$0xff]  }
  0x4e   :  { %8320 = vmatmul.mubr.msk.bf16.gmra.mrb[32].mxu0 %vm1436_vm0, %v8730_v37  ;;  %8520 = vmatmul.mubr.msk.bf16.gmra.mrb[32].mxu1 %vm1436_vm0, %v8731_v38  ;;  %v8794_v37 = vld [vmem:[%s11324_s0 + $0x188] sm:$0xff]  }
  0x4f   :  { %8323 = vmatprep.mubr.msk.bf16.mxu0 %vm1436_vm0, %v8732_v39  ;;  %8523 = vmatprep.mubr.msk.bf16.mxu1 %vm1436_vm0, %v8733_v40  ;;  %v8795_v38 = vld [vmem:[%s11324_s0 + $0x4a8] sm:$0xff]   ;;  %v8796_v39 = vld [vmem:[%s11324_s0 + $0x190] sm:$0xff]  }
  0x50   :  { %v8797_v40 = vld [vmem:[%s11324_s0 + $0x4b0] sm:$0xff]  }
  0x56   :  { %8324 = vmatmul.mubr.msk.bf16.gmra.mrb[36].mxu0 %vm1436_vm0, %v8734_v41  ;;  %8524 = vmatmul.mubr.msk.bf16.gmra.mrb[36].mxu1 %vm1436_vm0, %v8735_v42  ;;  %v8798_v41 = vld [vmem:[%s11324_s0 + $0x198] sm:$0xff]  }
  0x57   :  { %8327 = vmatprep.mubr.msk.bf16.mxu0 %vm1436_vm0, %v8736_v43  ;;  %8527 = vmatprep.mubr.msk.bf16.mxu1 %vm1436_vm0, %v8737_v44  ;;  %v8799_v42 = vld [vmem:[%s11324_s0 + $0x4b8] sm:$0xff]   ;;  %v8800_v43 = vld [vmem:[%s11324_s0 + $0x1a0] sm:$0xff]  }
  0x58   :  { %v8801_v44 = vld [vmem:[%s11324_s0 + $0x4c0] sm:$0xff]  }
  0x5e   :  { %8328 = vmatmul.mubr.msk.bf16.gmra.mrb[40].mxu0 %vm1436_vm0, %v8738_v45  ;;  %8528 = vmatmul.mubr.msk.bf16.gmra.mrb[40].mxu1 %vm1436_vm0, %v8739_v46  ;;  %v8802_v45 = vld [vmem:[%s11324_s0 + $0x1a8] sm:$0xff]  }
  0x5f   :  { %8331 = vmatprep.mubr.msk.bf16.mxu0 %vm1436_vm0, %v8740_v47  ;;  %8531 = vmatprep.mubr.msk.bf16.mxu1 %vm1436_vm0, %v8741_v48  ;;  %v8803_v46 = vld [vmem:[%s11324_s0 + $0x4c8] sm:$0xff]   ;;  %v8804_v47 = vld [vmem:[%s11324_s0 + $0x1b0] sm:$0xff]  }
  0x60   :  { %v8805_v48 = vld [vmem:[%s11324_s0 + $0x4d0] sm:$0xff]  }
  0x66   :  { %8332 = vmatmul.mubr.msk.bf16.gmra.mrb[44].mxu0 %vm1436_vm0, %v8742_v49  ;;  %8532 = vmatmul.mubr.msk.bf16.gmra.mrb[44].mxu1 %vm1436_vm0, %v8743_v50 }
  0x67   :  { %8335 = vmatprep.mubr.msk.bf16.mxu0 %vm1436_vm0, %v8744_v51  ;;  %8535 = vmatprep.mubr.msk.bf16.mxu1 %vm1436_vm0, %v8745_v52  ;;  %v8806_v51 = vld [vmem:[%s11324_s0 + $0x1b8] sm:$0xff]  }
  0x68   :  { %v8807_v52 = vld [vmem:[%s11324_s0 + $0x4d8] sm:$0xff]  }
  0x6e   :  { %8336 = vmatmul.mubr.msk.bf16.gmra.mrb[48].mxu0 %vm1436_vm0, %v8746_v53  ;;  %8536 = vmatmul.mubr.msk.bf16.gmra.mrb[48].mxu1 %vm1436_vm0, %v8747_v54 }
  0x6f   :  { %8339 = vmatprep.mubr.msk.bf16.mxu0 %vm1436_vm0, %v8748_v55  ;;  %8539 = vmatprep.mubr.msk.bf16.mxu1 %vm1436_vm0, %v8749_v56 }
  0x76   :  { %8340 = vmatmul.mubr.msk.bf16.gmra.mrb[52].mxu0 %vm1436_vm0, %v8750_v57  ;;  %8540 = vmatmul.mubr.msk.bf16.gmra.mrb[52].mxu1 %vm1436_vm0, %v8751_v58  ;;  %v8808_v57 = vld [vmem:[%s11324_s0 + $0x1c0] sm:$0xff]  }
  0x77   :  { %8343 = vmatprep.mubr.msk.bf16.mxu0 %vm1436_vm0, %v8752_v59  ;;  %8543 = vmatprep.mubr.msk.bf16.mxu1 %vm1436_vm0, %v8753_v60  ;;  %v8809_v58 = vld [vmem:[%s11324_s0 + $0x4e0] sm:$0xff]  }
  0x7e   :  { %8344 = vmatmul.mubr.msk.bf16.gmra.mrb[56].mxu0 %vm1436_vm0, %v8754_v61  ;;  %8544 = vmatmul.mubr.msk.bf16.gmra.mrb[56].mxu1 %vm1436_vm0, %v8755_v62 }
  0x7f   :  { %8347 = vmatprep.mubr.msk.bf16.mxu0 %vm1436_vm0, %v8756_v63  ;;  %8547 = vmatprep.mubr.msk.bf16.mxu1 %vm1436_vm0, %v8757_v0 }
  0x86   :  { %8348 = vmatmul.mubr.msk.bf16.gmra.mrb[60].mxu0 %vm1436_vm0, %v8758_v1  ;;  %8548 = vmatmul.mubr.msk.bf16.gmra.mrb[60].mxu1 %vm1436_vm0, %v8759_v2 }
  0x87   :  { %8351 = vmatprep.mubr.msk.bf16.mxu0 %vm1436_vm0, %v8760_v3  ;;  %8551 = vmatprep.mubr.msk.bf16.mxu1 %vm1436_vm0, %v8761_v4 }
  0x8e   :  { %8352 = vmatmul.mubr.msk.bf16.gmra.mrb[64].mxu0 %vm1436_vm0, %v8762_v5  ;;  %8552 = vmatmul.mubr.msk.bf16.gmra.mrb[64].mxu1 %vm1436_vm0, %v8763_v6 }
  0x8f   :  { %8355 = vmatprep.mubr.msk.bf16.mxu0 %vm1436_vm0, %v8764_v7  ;;  %8555 = vmatprep.mubr.msk.bf16.mxu1 %vm1436_vm0, %v8765_v8 }
  0x96   :  { %8356 = vmatmul.mubr.msk.bf16.gmra.mrb[68].mxu0 %vm1436_vm0, %v8766_v9  ;;  %8556 = vmatmul.mubr.msk.bf16.gmra.mrb[68].mxu1 %vm1436_vm0, %v8767_v10 }
  0x97   :  { %8359 = vmatprep.mubr.msk.bf16.mxu0 %vm1436_vm0, %v8768_v11  ;;  %8559 = vmatprep.mubr.msk.bf16.mxu1 %vm1436_vm0, %v8769_v12 }
  0x9e   :  { %8360 = vmatmul.mubr.msk.bf16.gmra.mrb[72].mxu0 %vm1436_vm0, %v8770_v13  ;;  %8560 = vmatmul.mubr.msk.bf16.gmra.mrb[72].mxu1 %vm1436_vm0, %v8771_v14 }
  0x9f   :  { %8363 = vmatprep.mubr.msk.bf16.mxu0 %vm1436_vm0, %v8772_v15  ;;  %8563 = vmatprep.mubr.msk.bf16.mxu1 %vm1436_vm0, %v8773_v16 }
  0xa6   :  { %8364 = vmatmul.mubr.msk.bf16.gmra.mrb[76].mxu0 %vm1436_vm0, %v8774_v17  ;;  %8564 = vmatmul.mubr.msk.bf16.gmra.mrb[76].mxu1 %vm1436_vm0, %v8775_v18  ;;  %v8810_v18 = vld [vmem:[%s11324_s0 + $0x1c8] sm:$0xff]  }
  0xa7   :  { %8367 = vmatprep.mubr.msk.bf16.mxu0 %vm1436_vm0, %v8776_v19  ;;  %8567 = vmatprep.mubr.msk.bf16.mxu1 %vm1436_vm0, %v8777_v20  ;;  %v8811_v19 = vld [vmem:[%s11324_s0 + $0x4e8] sm:$0xff]  }
  0xae   :  { %8368 = vmatmul.mubr.msk.bf16.gmra.mrb[80].mxu0 %vm1436_vm0, %v8778_v21  ;;  %8568 = vmatmul.mubr.msk.bf16.gmra.mrb[80].mxu1 %vm1436_vm0, %v8779_v22 }
  0xaf   :  { %8371 = vmatprep.mubr.msk.bf16.mxu0 %vm1436_vm0, %v8780_v23  ;;  %8571 = vmatprep.mubr.msk.bf16.mxu1 %vm1436_vm0, %v8781_v24 }
  0xb6   :  { %8372 = vmatmul.mubr.msk.bf16.gmra.mrb[84].mxu0 %vm1436_vm0, %v8782_v25  ;;  %8572 = vmatmul.mubr.msk.bf16.gmra.mrb[84].mxu1 %vm1436_vm0, %v8783_v26  ;;  %v8812_v25 = vld [vmem:[%s11324_s0 + $0x1d0] sm:$0xff]  }
  0xb7   :  { %8375 = vmatprep.mubr.msk.bf16.mxu0 %vm1436_vm0, %v8784_v27  ;;  %8575 = vmatprep.mubr.msk.bf16.mxu1 %vm1436_vm0, %v8785_v28 }
  0xbe   :  { %8376 = vmatmul.mubr.msk.bf16.gmra.mrb[88].mxu0 %vm1436_vm0, %v8786_v29  ;;  %8576 = vmatmul.mubr.msk.bf16.gmra.mrb[88].mxu1 %vm1436_vm0, %v8787_v30 }
  0xbf   :  { %8379 = vmatprep.mubr.msk.bf16.mxu0 %vm1436_vm0, %v8788_v31  ;;  %8579 = vmatprep.mubr.msk.bf16.mxu1 %vm1436_vm0, %v8789_v32  ;;  %v8813_v31 = vld [vmem:[%s11324_s0 + $0x4f0] sm:$0xff]  }
  0xc6   :  { %8380 = vmatmul.mubr.msk.bf16.gmra.mrb[92].mxu0 %vm1436_vm0, %v8790_v33  ;;  %8580 = vmatmul.mubr.msk.bf16.gmra.mrb[92].mxu1 %vm1436_vm0, %v8791_v34 }
  0xc7   :  { %8383 = vmatprep.mubr.msk.bf16.mxu0 %vm1436_vm0, %v8792_v35  ;;  %8583 = vmatprep.mubr.msk.bf16.mxu1 %vm1436_vm0, %v8793_v36 }
  0xce   :  { %8384 = vmatmul.mubr.msk.bf16.gmra.mrb[96].mxu0 %vm1436_vm0, %v8794_v37  ;;  %8584 = vmatmul.mubr.msk.bf16.gmra.mrb[96].mxu1 %vm1436_vm0, %v8795_v38 }
  0xcf   :  { %8387 = vmatprep.mubr.msk.bf16.mxu0 %vm1436_vm0, %v8796_v39  ;;  %8587 = vmatprep.mubr.msk.bf16.mxu1 %vm1436_vm0, %v8797_v40 }
  0xd6   :  { %8388 = vmatmul.mubr.msk.bf16.gmra.mrb[100].mxu0 %vm1436_vm0, %v8798_v41  ;;  %8588 = vmatmul.mubr.msk.bf16.gmra.mrb[100].mxu1 %vm1436_vm0, %v8799_v42 }
  0xd7   :  { %8391 = vmatprep.mubr.msk.bf16.mxu0 %vm1436_vm0, %v8800_v43  ;;  %8591 = vmatprep.mubr.msk.bf16.mxu1 %vm1436_vm0, %v8801_v44 }
  0xde   :  { %8392 = vmatmul.mubr.msk.bf16.gmra.mrb[104].mxu0 %vm1436_vm0, %v8802_v45  ;;  %8592 = vmatmul.mubr.msk.bf16.gmra.mrb[104].mxu1 %vm1436_vm0, %v8803_v46 }
  0xdf   :  { %8395 = vmatprep.mubr.msk.bf16.mxu0 %vm1436_vm0, %v8804_v47  ;;  %8595 = vmatprep.mubr.msk.bf16.mxu1 %vm1436_vm0, %v8805_v48 }
  0xe1   :  { %v8289_v49 = vpop.f32.mrb[0].mxu0  ;;  %v8489_v50 = vpop.f32.mrb[0].mxu1 }
  0xe2   :  { %vm3672_vm1 = vcmp.gt.f32.partialorder %v8289_v49, 0.0  ;;  %v4072_v53 = vmul.f32 0.2, %v8289_v49  ;;  %vm3872_vm2 = vcmp.gt.f32.partialorder %v8489_v50, 0.0  ;;  %v4272_v54 = vmul.f32 0.2, %v8489_v50 }
  0xe3   :  { %v2071_v55 = vpop.f32.mrb[1].mxu0  ;;  %v2871_v56 = vpop.f32.mrb[1].mxu1 }
  0xe4   :  { %v4472_v59 = vsel %vm3672_vm1, %v8289_v49, %v4072_v53  ;;  %v4672_v60 = vsel %vm3872_vm2, %v8489_v50, %v4272_v54  ;;  %vm3670_vm4 = vcmp.gt.f32.partialorder %v2071_v55, 0.0  ;;  %v4070_v61 = vmul.f32 0.2, %v2071_v55  ;;  %v8290_v62 = vpop.f32.mrb[2].mxu0  ;;  %v8490_v63 = vpop.f32.mrb[2].mxu1  ;;  %v8814_v49 = vld [vmem:[%s11324_s0 + $0x1d8] sm:$0xff]  }
  0xe5   :  { %v7680_v0 = vpack.c.bf16 %v4472_v59, %v4472_v59  ;;  %v7880_v1 = vpack.c.bf16 %v4672_v60, %v4672_v60  ;;  %vm3870_vm5 = vcmp.gt.f32.partialorder %v2871_v56, 0.0  ;;  %v4270_v2 = vmul.f32 0.2, %v2871_v56  ;;  %v2074_v3 = vpop.f32.mrb[3].mxu0  ;;  %v2874_v4 = vpop.f32.mrb[3].mxu1 }
  0xe6   :  { %v4470_v5 = vsel %vm3670_vm4, %v2071_v55, %v4070_v61  ;;  %vm3673_vm6 = vcmp.gt.f32.partialorder %v8290_v62, 0.0  ;;  %v4073_v6 = vmul.f32 0.2, %v8290_v62  ;;  %vm3873_vm7 = vcmp.gt.f32.partialorder %v8490_v63, 0.0  ;;  %8396 = vmatmul.mubr.msk.bf16.gmra.mrb[108].mxu0 %vm1436_vm0, %v8806_v51  ;;  %8596 = vmatmul.mubr.msk.bf16.gmra.mrb[108].mxu1 %vm1436_vm0, %v8807_v52  ;;  %v8815_v55 = vld [vmem:[%s11324_s0 + $0x4f8] sm:$0xff]   ;;  %v8816_v61 = vld [vmem:[%s11324_s0 + $0x1e0] sm:$0xff]  }
  0xe7   :  { %6473 = vst.msk [vmem:[%s11325_s2 + $0x8] sm:$0xf] %vm6470_vm3, %v7680_v0  ;;  %6673 = vst.msk [vmem:[%s11325_s2 + $0x328] sm:$0xf] %vm6470_vm3, %v7880_v1  ;;  %v7678_v7 = vpack.c.bf16 %v4470_v5, %v4470_v5  ;;  %v4670_v8 = vsel %vm3870_vm5, %v2871_v56, %v4270_v2  ;;  %v4273_v9 = vmul.f32 0.2, %v8490_v63  ;;  %8399 = vmatprep.mubr.msk.bf16.mxu0 %vm1436_vm0, %v8808_v57  ;;  %8599 = vmatprep.mubr.msk.bf16.mxu1 %vm1436_vm0, %v8809_v58 }
  0xe8   :  { %vm3671_vm8 = vcmp.gt.f32.partialorder %v2074_v3, 0.0  ;;  %v7878_v10 = vpack.c.bf16 %v4670_v8, %v4670_v8  ;;  %v4473_v11 = vsel %vm3673_vm6, %v8290_v62, %v4073_v6  ;;  %v4071_v12 = vmul.f32 0.2, %v2074_v3 }
  0xe9   :  { %vm3871_vm9 = vcmp.gt.f32.partialorder %v2874_v4, 0.0  ;;  %6471 = vst.msk [vmem:[%s11325_s2] sm:$0xf] %vm6470_vm3, %v7678_v7  ;;  %v7681_v13 = vpack.c.bf16 %v4473_v11, %v4473_v11  ;;  %v4673_v14 = vsel %vm3873_vm7, %v8490_v63, %v4273_v9  ;;  %v4271_v15 = vmul.f32 0.2, %v2874_v4  ;;  %v8293_v16 = vpop.f32.mrb[4].mxu0 }
  0xea   :  { %v8493_v17 = vpop.f32.mrb[4].mxu1  ;;  %6671 = vst.msk [vmem:[%s11325_s2 + $0x320] sm:$0xf] %vm6470_vm3, %v7878_v10  ;;  %v7881_v20 = vpack.c.bf16 %v4673_v14, %v4673_v14  ;;  %v4471_v21 = vsel %vm3671_vm8, %v2074_v3, %v4071_v12  ;;  %vm3676_vm10 = vcmp.gt.f32.partialorder %v8293_v16, 0.0  ;;  %v4076_v22 = vmul.f32 0.2, %v8293_v16 }
  0xeb   :  { %v2087_v23 = vpop.f32.mrb[5].mxu0  ;;  %v2887_v24 = vpop.f32.mrb[5].mxu1  ;;  %6474 = vst.msk [vmem:[%s11325_s2 + $0xc] sm:$0xf] %vm6470_vm3, %v7681_v13  ;;  %v7679_v26 = vpack.c.bf16 %v4471_v21, %v4471_v21  ;;  %v4671_v27 = vsel %vm3871_vm9, %v2874_v4, %v4271_v15  ;;  %vm3876_vm11 = vcmp.gt.f32.partialorder %v8493_v17, 0.0  ;;  %v8817_v3 = vld [vmem:[%s11324_s0 + $0x500] sm:$0xff]  }
  0xec   :  { %v4276_v28 = vmul.f32 0.2, %v8493_v17  ;;  %v8294_v29 = vpop.f32.mrb[6].mxu0  ;;  %v8494_v30 = vpop.f32.mrb[6].mxu1  ;;  %6674 = vst.msk [vmem:[%s11325_s2 + $0x32c] sm:$0xf] %vm6470_vm3, %v7881_v20  ;;  %v7879_v32 = vpack.c.bf16 %v4671_v27, %v4671_v27  ;;  %v4476_v33 = vsel %vm3676_vm10, %v8293_v16, %v4076_v22 }
  0xed   :  { %vm3674_vm12 = vcmp.gt.f32.partialorder %v2087_v23, 0.0  ;;  %v4074_v34 = vmul.f32 0.2, %v2087_v23  ;;  %v2090_v35 = vpop.f32.mrb[7].mxu0  ;;  %v2890_v36 = vpop.f32.mrb[7].mxu1  ;;  %v7684_v37 = vpack.c.bf16 %v4476_v33, %v4476_v33  ;;  %vm3874_vm13 = vcmp.gt.f32.partialorder %v2887_v24, 0.0 }
  0xee   :  { %6472 = vst.msk [vmem:[%s11325_s2 + $0x4] sm:$0xf] %vm6470_vm3, %v7679_v26  ;;  %v4676_v38 = vsel %vm3876_vm11, %v8493_v17, %v4276_v28  ;;  %v4274_v39 = vmul.f32 0.2, %v2887_v24  ;;  %6672 = vst.msk [vmem:[%s11325_s2 + $0x324] sm:$0xf] %vm6470_vm3, %v7879_v32  ;;  %8400 = vmatmul.mubr.msk.bf16.gmra.mrb[112].mxu0 %vm1436_vm0, %v8810_v18  ;;  %8600 = vmatmul.mubr.msk.bf16.gmra.mrb[112].mxu1 %vm1436_vm0, %v8811_v19 }
  0xef   :  { %v7884_v40 = vpack.c.bf16 %v4676_v38, %v4676_v38  ;;  %v4474_v41 = vsel %vm3674_vm12, %v2087_v23, %v4074_v34  ;;  %vm3677_vm14 = vcmp.gt.f32.partialorder %v8294_v29, 0.0  ;;  %v4077_v42 = vmul.f32 0.2, %v8294_v29  ;;  %6477 = vst.msk [vmem:[%s11325_s2 + $0x18] sm:$0xf] %vm6470_vm3, %v7684_v37  ;;  %8403 = vmatprep.mubr.msk.bf16.mxu0 %vm1436_vm0, %v8812_v25  ;;  %8603 = vmatprep.mubr.msk.bf16.mxu1 %vm1436_vm0, %v8813_v31  ;;  %v8818_v21 = vld [vmem:[%s11324_s0 + $0x1e8] sm:$0xff]  }
  0xf0   :  { %v7682_v43 = vpack.c.bf16 %v4474_v41, %v4474_v41  ;;  %v4674_v44 = vsel %vm3874_vm13, %v2887_v24, %v4274_v39  ;;  %vm3877_vm15 = vcmp.gt.f32.partialorder %v8494_v30, 0.0  ;;  %v4277_v45 = vmul.f32 0.2, %v8494_v30  ;;  %v8819_v27 = vld [vmem:[%s11324_s0 + $0x508] sm:$0xff]   ;;  %v8820_v33 = vld [vmem:[%s11324_s0 + $0x1f0] sm:$0xff]  }
  0xf1   :  { %6677 = vst.msk [vmem:[%s11325_s2 + $0x338] sm:$0xf] %vm6470_vm3, %v7884_v40  ;;  %v7882_v46 = vpack.c.bf16 %v4674_v44, %v4674_v44  ;;  %v4477_v47 = vsel %vm3677_vm14, %v8294_v29, %v4077_v42  ;;  %vm3675_vm1 = vcmp.gt.f32.partialorder %v2090_v35, 0.0  ;;  %v4075_v48 = vmul.f32 0.2, %v2090_v35  ;;  %v8297_v53 = vpop.f32.mrb[8].mxu0 }
  0xf2   :  { %6475 = vst.msk [vmem:[%s11325_s2 + $0x10] sm:$0xf] %vm6470_vm3, %v7682_v43  ;;  %v7685_v50 = vpack.c.bf16 %v4477_v47, %v4477_v47  ;;  %v4677_v51 = vsel %vm3877_vm15, %v8494_v30, %v4277_v45  ;;  %vm3875_vm2 = vcmp.gt.f32.partialorder %v2890_v36, 0.0  ;;  %v4275_v52 = vmul.f32 0.2, %v2890_v36  ;;  %v8497_v54 = vpop.f32.mrb[8].mxu1 }
  0xf3   :  { %6675 = vst.msk [vmem:[%s11325_s2 + $0x330] sm:$0xf] %vm6470_vm3, %v7882_v46  ;;  %v7885_v56 = vpack.c.bf16 %v4677_v51, %v4677_v51  ;;  %v4475_v57 = vsel %vm3675_vm1, %v2090_v35, %v4075_v48  ;;  %vm3680_vm4 = vcmp.gt.f32.partialorder %v8297_v53, 0.0  ;;  %v4080_v58 = vmul.f32 0.2, %v8297_v53  ;;  %v2103_v59 = vpop.f32.mrb[9].mxu0 }
  0xf4   :  { %v2903_v60 = vpop.f32.mrb[9].mxu1  ;;  %6478 = vst.msk [vmem:[%s11325_s2 + $0x1c] sm:$0xf] %vm6470_vm3, %v7685_v50  ;;  %v7683_v62 = vpack.c.bf16 %v4475_v57, %v4475_v57  ;;  %v4675_v63 = vsel %vm3875_vm2, %v2890_v36, %v4275_v52  ;;  %vm3880_vm5 = vcmp.gt.f32.partialorder %v8497_v54, 0.0  ;;  %v4280_v0 = vmul.f32 0.2, %v8497_v54 }
  0xf5   :  { %v8298_v1 = vpop.f32.mrb[10].mxu0  ;;  %v8498_v2 = vpop.f32.mrb[10].mxu1  ;;  %6678 = vst.msk [vmem:[%s11325_s2 + $0x33c] sm:$0xf] %vm6470_vm3, %v7885_v56  ;;  %v7883_v4 = vpack.c.bf16 %v4675_v63, %v4675_v63  ;;  %v4480_v5 = vsel %vm3680_vm4, %v8297_v53, %v4080_v58  ;;  %vm3678_vm6 = vcmp.gt.f32.partialorder %v2103_v59, 0.0  ;;  %vm3878_vm7 = vcmp.gt.f32.partialorder %v2903_v60, 0.0 }
  0xf6   :  { %v4078_v6 = vmul.f32 0.2, %v2103_v59  ;;  %v2106_v7 = vpop.f32.mrb[11].mxu0  ;;  %v2906_v8 = vpop.f32.mrb[11].mxu1  ;;  %6476 = vst.msk [vmem:[%s11325_s2 + $0x14] sm:$0xf] %vm6470_vm3, %v7683_v62  ;;  %v7688_v9 = vpack.c.bf16 %v4480_v5, %v4480_v5  ;;  %v4680_v10 = vsel %vm3880_vm5, %v8497_v54, %v4280_v0  ;;  %8404 = vmatmul.mubr.msk.bf16.gmra.mrb[116].mxu0 %vm1436_vm0, %v8814_v49  ;;  %8604 = vmatmul.mubr.msk.bf16.gmra.mrb[116].mxu1 %vm1436_vm0, %v8815_v55 }
  0xf7   :  { %v4278_v11 = vmul.f32 0.2, %v2903_v60  ;;  %6676 = vst.msk [vmem:[%s11325_s2 + $0x334] sm:$0xf] %vm6470_vm3, %v7883_v4  ;;  %v7888_v12 = vpack.c.bf16 %v4680_v10, %v4680_v10  ;;  %vm3681_vm8 = vcmp.gt.f32.partialorder %v8298_v1, 0.0  ;;  %vm3881_vm9 = vcmp.gt.f32.partialorder %v8498_v2, 0.0  ;;  %8407 = vmatprep.mubr.msk.bf16.mxu0 %vm1436_vm0, %v8816_v61  ;;  %8607 = vmatprep.mubr.msk.bf16.mxu1 %vm1436_vm0, %v8817_v3 }
  0xf8   :  { %v4478_v13 = vsel %vm3678_vm6, %v2103_v59, %v4078_v6  ;;  %v4081_v14 = vmul.f32 0.2, %v8298_v1  ;;  %6481 = vst.msk [vmem:[%s11325_s2 + $0x28] sm:$0xf] %vm6470_vm3, %v7688_v9  ;;  %v4281_v17 = vmul.f32 0.2, %v8498_v2 }
  0xf9   :  { %v7686_v15 = vpack.c.bf16 %v4478_v13, %v4478_v13  ;;  %v4678_v16 = vsel %vm3878_vm7, %v2903_v60, %v4278_v11  ;;  %6681 = vst.msk [vmem:[%s11325_s2 + $0x348] sm:$0xf] %vm6470_vm3, %v7888_v12  ;;  %vm3679_vm10 = vcmp.gt.f32.partialorder %v2106_v7, 0.0  ;;  %v4079_v20 = vmul.f32 0.2, %v2106_v7  ;;  %v8301_v25 = vpop.f32.mrb[12].mxu0 }
  0xfa   :  { %v7886_v18 = vpack.c.bf16 %v4678_v16, %v4678_v16  ;;  %v4481_v19 = vsel %vm3681_vm8, %v8298_v1, %v4081_v14  ;;  %v4681_v23 = vsel %vm3881_vm9, %v8498_v2, %v4281_v17  ;;  %vm3879_vm11 = vcmp.gt.f32.partialorder %v2906_v8, 0.0  ;;  %v8501_v26 = vpop.f32.mrb[12].mxu1  ;;  %v2119_v31 = vpop.f32.mrb[13].mxu0  ;;  %v8821_v39 = vld [vmem:[%s11324_s0 + $0x510] sm:$0xff]   ;;  %v8822_v57 = vld [vmem:[%s11324_s0 + $0x1f8] sm:$0xff]   ;;  %v8824_v5 = vld [vmem:[%s11324_s0 + $0x200] sm:$0xff]  }
  0xfb   :  { %6479 = vst.msk [vmem:[%s11325_s2 + $0x20] sm:$0xf] %vm6470_vm3, %v7686_v15  ;;  %v7689_v22 = vpack.c.bf16 %v4481_v19, %v4481_v19  ;;  %v4279_v24 = vmul.f32 0.2, %v2906_v8  ;;  %v7889_v28 = vpack.c.bf16 %v4681_v23, %v4681_v23  ;;  %v4479_v29 = vsel %vm3679_vm10, %v2106_v7, %v4079_v20  ;;  %v2919_v32 = vpop.f32.mrb[13].mxu1  ;;  %v8302_v37 = vpop.f32.mrb[14].mxu0 }
  0xfc   :  { %6679 = vst.msk [vmem:[%s11325_s2 + $0x340] sm:$0xf] %vm6470_vm3, %v7886_v18  ;;  %vm3684_vm12 = vcmp.gt.f32.partialorder %v8301_v25, 0.0  ;;  %v4084_v30 = vmul.f32 0.2, %v8301_v25  ;;  %v7687_v34 = vpack.c.bf16 %v4479_v29, %v4479_v29  ;;  %vm3884_vm13 = vcmp.gt.f32.partialorder %v8501_v26, 0.0 }
  0xfd   :  { %6482 = vst.msk [vmem:[%s11325_s2 + $0x2c] sm:$0xf] %vm6470_vm3, %v7689_v22  ;;  %v4679_v35 = vsel %vm3879_vm11, %v2906_v8, %v4279_v24  ;;  %v4284_v36 = vmul.f32 0.2, %v8501_v26  ;;  %v8502_v38 = vpop.f32.mrb[14].mxu1  ;;  %vm3682_vm14 = vcmp.gt.f32.partialorder %v2119_v31, 0.0 }
  0xfe   :  { %6682 = vst.msk [vmem:[%s11325_s2 + $0x34c] sm:$0xf] %vm6470_vm3, %v7889_v28  ;;  %v7887_v40 = vpack.c.bf16 %v4679_v35, %v4679_v35  ;;  %v4484_v41 = vsel %vm3684_vm12, %v8301_v25, %v4084_v30  ;;  %v4082_v42 = vmul.f32 0.2, %v2119_v31  ;;  %v2122_v43 = vpop.f32.mrb[15].mxu0  ;;  %v2922_v44 = vpop.f32.mrb[15].mxu1  ;;  %8408 = vmatmul.mubr.msk.bf16.gmra.mrb[120].mxu0 %vm1436_vm0, %v8818_v21  ;;  %8608 = vmatmul.mubr.msk.bf16.gmra.mrb[120].mxu1 %vm1436_vm0, %v8819_v27 }
  0xff   :  { %6480 = vst.msk [vmem:[%s11325_s2 + $0x24] sm:$0xf] %vm6470_vm3, %v7687_v34  ;;  %v7692_v45 = vpack.c.bf16 %v4484_v41, %v4484_v41  ;;  %v4684_v46 = vsel %vm3884_vm13, %v8501_v26, %v4284_v36  ;;  %vm3882_vm15 = vcmp.gt.f32.partialorder %v2919_v32, 0.0  ;;  %v4282_v47 = vmul.f32 0.2, %v2919_v32  ;;  %8411 = vmatprep.mubr.msk.bf16.mxu0 %vm1436_vm0, %v8820_v33  ;;  %8611 = vmatprep.mubr.msk.bf16.mxu1 %vm1436_vm0, %v8821_v39  ;;  %v8823_v63 = vld [vmem:[%s11324_s0 + $0x518] sm:$0xff]  }
 0x100   :  { %6680 = vst.msk [vmem:[%s11325_s2 + $0x344] sm:$0xf] %vm6470_vm3, %v7887_v40  ;;  %v7892_v48 = vpack.c.bf16 %v4684_v46, %v4684_v46  ;;  %v4482_v49 = vsel %vm3682_vm14, %v2119_v31, %v4082_v42  ;;  %vm3685_vm1 = vcmp.gt.f32.partialorder %v8302_v37, 0.0  ;;  %v4085_v50 = vmul.f32 0.2, %v8302_v37  ;;  %v8825_v11 = vld [vmem:[%s11324_s0 + $0x520] sm:$0xff]  }
 0x101   :  { %6485 = vst.msk [vmem:[%s11325_s2 + $0x38] sm:$0xf] %vm6470_vm3, %v7692_v45  ;;  %v7690_v51 = vpack.c.bf16 %v4482_v49, %v4482_v49  ;;  %v4682_v52 = vsel %vm3882_vm15, %v2919_v32, %v4282_v47  ;;  %vm3885_vm2 = vcmp.gt.f32.partialorder %v8502_v38, 0.0  ;;  %v4285_v53 = vmul.f32 0.2, %v8502_v38  ;;  %v8305_v61 = vpop.f32.mrb[16].mxu0 }
 0x102   :  { %6685 = vst.msk [vmem:[%s11325_s2 + $0x358] sm:$0xf] %vm6470_vm3, %v7892_v48  ;;  %v7890_v54 = vpack.c.bf16 %v4682_v52, %v4682_v52  ;;  %v4485_v55 = vsel %vm3685_vm1, %v8302_v37, %v4085_v50  ;;  %vm3683_vm4 = vcmp.gt.f32.partialorder %v2122_v43, 0.0  ;;  %v4083_v56 = vmul.f32 0.2, %v2122_v43  ;;  %v8505_v62 = vpop.f32.mrb[16].mxu1 }
 0x103   :  { %6483 = vst.msk [vmem:[%s11325_s2 + $0x30] sm:$0xf] %vm6470_vm3, %v7690_v51  ;;  %v7693_v58 = vpack.c.bf16 %v4485_v55, %v4485_v55  ;;  %v4685_v59 = vsel %vm3885_vm2, %v8502_v38, %v4285_v53  ;;  %vm3883_vm5 = vcmp.gt.f32.partialorder %v2922_v44, 0.0  ;;  %v4283_v60 = vmul.f32 0.2, %v2922_v44  ;;  %v2135_v3 = vpop.f32.mrb[17].mxu0 }
 0x104   :  { %6683 = vst.msk [vmem:[%s11325_s2 + $0x350] sm:$0xf] %vm6470_vm3, %v7890_v54  ;;  %v7893_v0 = vpack.c.bf16 %v4685_v59, %v4685_v59  ;;  %v4483_v1 = vsel %vm3683_vm4, %v2122_v43, %v4083_v56  ;;  %vm3688_vm6 = vcmp.gt.f32.partialorder %v8305_v61, 0.0  ;;  %v4088_v2 = vmul.f32 0.2, %v8305_v61  ;;  %v2935_v4 = vpop.f32.mrb[17].mxu1 }
 0x105   :  { %6486 = vst.msk [vmem:[%s11325_s2 + $0x3c] sm:$0xf] %vm6470_vm3, %v7693_v58  ;;  %v7691_v6 = vpack.c.bf16 %v4483_v1, %v4483_v1  ;;  %v4683_v7 = vsel %vm3883_vm5, %v2922_v44, %v4283_v60  ;;  %vm3888_vm7 = vcmp.gt.f32.partialorder %v8505_v62, 0.0  ;;  %v4288_v8 = vmul.f32 0.2, %v8505_v62  ;;  %v8306_v9 = vpop.f32.mrb[18].mxu0 }
 0x106   :  { %v8506_v10 = vpop.f32.mrb[18].mxu1  ;;  %6686 = vst.msk [vmem:[%s11325_s2 + $0x35c] sm:$0xf] %vm6470_vm3, %v7893_v0  ;;  %v7891_v12 = vpack.c.bf16 %v4683_v7, %v4683_v7  ;;  %v4488_v13 = vsel %vm3688_vm6, %v8305_v61, %v4088_v2  ;;  %vm3686_vm8 = vcmp.gt.f32.partialorder %v2135_v3, 0.0  ;;  %v4086_v14 = vmul.f32 0.2, %v2135_v3  ;;  %8412 = vmatmul.mubr.msk.bf16.gmra.mrb[124].mxu0 %vm1436_vm0, %v8822_v57  ;;  %8612 = vmatmul.mubr.msk.bf16.gmra.mrb[124].mxu1 %vm1436_vm0, %v8823_v63 }
 0x107   :  { %v2138_v15 = vpop.f32.mrb[19].mxu0  ;;  %v2938_v16 = vpop.f32.mrb[19].mxu1  ;;  %6484 = vst.msk [vmem:[%s11325_s2 + $0x34] sm:$0xf] %vm6470_vm3, %v7691_v6  ;;  %v7696_v17 = vpack.c.bf16 %v4488_v13, %v4488_v13  ;;  %v4688_v18 = vsel %vm3888_vm7, %v8505_v62, %v4288_v8  ;;  %vm3886_vm9 = vcmp.gt.f32.partialorder %v2935_v4, 0.0  ;;  %vm3689_vm10 = vcmp.gt.f32.partialorder %v8306_v9, 0.0  ;;  %8415 = vmatprep.mubr.msk.bf16.mxu0 %vm1436_vm0, %v8824_v5  ;;  %8615 = vmatprep.mubr.msk.bf16.mxu1 %vm1436_vm0, %v8825_v11 }
 0x108   :  { %v4286_v19 = vmul.f32 0.2, %v2935_v4  ;;  %6684 = vst.msk [vmem:[%s11325_s2 + $0x354] sm:$0xf] %vm6470_vm3, %v7891_v12  ;;  %v7896_v20 = vpack.c.bf16 %v4688_v18, %v4688_v18  ;;  %v4486_v21 = vsel %vm3686_vm8, %v2135_v3, %v4086_v14  ;;  %v4089_v22 = vmul.f32 0.2, %v8306_v9 }
 0x109   :  { %6489 = vst.msk [vmem:[%s11325_s2 + $0x48] sm:$0xf] %vm6470_vm3, %v7696_v17  ;;  %v7694_v23 = vpack.c.bf16 %v4486_v21, %v4486_v21  ;;  %vm3889_vm11 = vcmp.gt.f32.partialorder %v8506_v10, 0.0  ;;  %v4289_v25 = vmul.f32 0.2, %v8506_v10  ;;  %vm3687_vm12 = vcmp.gt.f32.partialorder %v2138_v15, 0.0 }
 0x10a   :  { %v4686_v24 = vsel %vm3886_vm9, %v2935_v4, %v4286_v19  ;;  %6689 = vst.msk [vmem:[%s11325_s2 + $0x368] sm:$0xf] %vm6470_vm3, %v7896_v20  ;;  %v4489_v27 = vsel %vm3689_vm10, %v8306_v9, %v4089_v22  ;;  %v4087_v28 = vmul.f32 0.2, %v2138_v15  ;;  %v8826_v29 = vld [vmem:[%s11324_s0 + $0x208] sm:$0xff]   ;;  %vm3887_vm13 = vcmp.gt.f32.partialorder %v2938_v16, 0.0 }
 0x10b   :  { %v7894_v26 = vpack.c.bf16 %v4686_v24, %v4686_v24  ;;  %6487 = vst.msk [vmem:[%s11325_s2 + $0x40] sm:$0xf] %vm6470_vm3, %v7694_v23  ;;  %v7697_v30 = vpack.c.bf16 %v4489_v27, %v4489_v27  ;;  %v4689_v31 = vsel %vm3889_vm11, %v8506_v10, %v4289_v25  ;;  %v4287_v32 = vmul.f32 0.2, %v2938_v16  ;;  %v8309_v33 = vpop.f32.mrb[20].mxu0  ;;  %v8509_v34 = vpop.f32.mrb[20].mxu1 }
 0x10c   :  { %v8827_v35 = vld [vmem:[%s11324_s0 + $0x528] sm:$0xff]   ;;  %v7897_v36 = vpack.c.bf16 %v4689_v31, %v4689_v31  ;;  %v4487_v37 = vsel %vm3687_vm12, %v2138_v15, %v4087_v28  ;;  %vm3692_vm14 = vcmp.gt.f32.partialorder %v8309_v33, 0.0  ;;  %v4092_v38 = vmul.f32 0.2, %v8309_v33  ;;  %v2151_v39 = vpop.f32.mrb[21].mxu0  ;;  %v2951_v40 = vpop.f32.mrb[21].mxu1 }
 0x10d   :  { %6687 = vst.msk [vmem:[%s11325_s2 + $0x360] sm:$0xf] %vm6470_vm3, %v7894_v26  ;;  %v8828_v41 = vld [vmem:[%s11324_s0 + $0x210] sm:$0xff]   ;;  %6490 = vst.msk [vmem:[%s11325_s2 + $0x4c] sm:$0xf] %vm6470_vm3, %v7697_v30  ;;  %v7695_v42 = vpack.c.bf16 %v4487_v37, %v4487_v37  ;;  %v4687_v43 = vsel %vm3887_vm13, %v2938_v16, %v4287_v32  ;;  %vm3892_vm15 = vcmp.gt.f32.partialorder %v8509_v34, 0.0 }
 0x10e   :  { %v4292_v44 = vmul.f32 0.2, %v8509_v34  ;;  %v8310_v45 = vpop.f32.mrb[22].mxu0  ;;  %v8510_v46 = vpop.f32.mrb[22].mxu1  ;;  %v8829_v47 = vld [vmem:[%s11324_s0 + $0x530] sm:$0xff]   ;;  %v7895_v48 = vpack.c.bf16 %v4687_v43, %v4687_v43  ;;  %v4492_v49 = vsel %vm3692_vm14, %v8309_v33, %v4092_v38  ;;  %vm3690_vm1 = vcmp.gt.f32.partialorder %v2151_v39, 0.0  ;;  %8416 = vmatmul.mubr.msk.bf16.gmra.mrb[128].mxu0 %vm1436_vm0, %v8826_v29  ;;  %8616 = vmatmul.mubr.msk.bf16.gmra.mrb[128].mxu1 %vm1436_vm0, %v8827_v35 }
 0x10f   :  { %6690 = vst.msk [vmem:[%s11325_s2 + $0x36c] sm:$0xf] %vm6470_vm3, %v7897_v36  ;;  %v4090_v50 = vmul.f32 0.2, %v2151_v39  ;;  %v2154_v51 = vpop.f32.mrb[23].mxu0  ;;  %v2954_v52 = vpop.f32.mrb[23].mxu1  ;;  %v7700_v53 = vpack.c.bf16 %v4492_v49, %v4492_v49  ;;  %8419 = vmatprep.mubr.msk.bf16.mxu0 %vm1436_vm0, %v8828_v41  ;;  %8619 = vmatprep.mubr.msk.bf16.mxu1 %vm1436_vm0, %v8829_v47 }
 0x110   :  { %6488 = vst.msk [vmem:[%s11325_s2 + $0x44] sm:$0xf] %vm6470_vm3, %v7695_v42  ;;  %v4692_v54 = vsel %vm3892_vm15, %v8509_v34, %v4292_v44  ;;  %vm3890_vm2 = vcmp.gt.f32.partialorder %v2951_v40, 0.0  ;;  %v4290_v55 = vmul.f32 0.2, %v2951_v40  ;;  %vm3693_vm4 = vcmp.gt.f32.partialorder %v8310_v45, 0.0 }
 0x111   :  { %6688 = vst.msk [vmem:[%s11325_s2 + $0x364] sm:$0xf] %vm6470_vm3, %v7895_v48  ;;  %v7900_v56 = vpack.c.bf16 %v4692_v54, %v4692_v54  ;;  %v4490_v57 = vsel %vm3690_vm1, %v2151_v39, %v4090_v50  ;;  %v4093_v58 = vmul.f32 0.2, %v8310_v45  ;;  %6493 = vst.msk [vmem:[%s11325_s2 + $0x58] sm:$0xf] %vm6470_vm3, %v7700_v53 }
 0x112   :  { %v7698_v59 = vpack.c.bf16 %v4490_v57, %v4490_v57  ;;  %v4690_v60 = vsel %vm3890_vm2, %v2951_v40, %v4290_v55  ;;  %vm3893_vm5 = vcmp.gt.f32.partialorder %v8510_v46, 0.0  ;;  %v4293_v61 = vmul.f32 0.2, %v8510_v46  ;;  %v8830_v1 = vld [vmem:[%s11324_s0 + $0x218] sm:$0xff]   ;;  %v8313_v5 = vpop.f32.mrb[24].mxu0  ;;  %v8513_v6 = vpop.f32.mrb[24].mxu1 }
 0x113   :  { %6693 = vst.msk [vmem:[%s11325_s2 + $0x378] sm:$0xf] %vm6470_vm3, %v7900_v56  ;;  %v7898_v62 = vpack.c.bf16 %v4690_v60, %v4690_v60  ;;  %v4493_v63 = vsel %vm3693_vm4, %v8310_v45, %v4093_v58  ;;  %vm3691_vm6 = vcmp.gt.f32.partialorder %v2154_v51, 0.0  ;;  %v4091_v0 = vmul.f32 0.2, %v2154_v51  ;;  %v8831_v7 = vld [vmem:[%s11324_s0 + $0x538] sm:$0xff]  }
 0x114   :  { %6491 = vst.msk [vmem:[%s11325_s2 + $0x50] sm:$0xf] %vm6470_vm3, %v7698_v59  ;;  %v7701_v2 = vpack.c.bf16 %v4493_v63, %v4493_v63  ;;  %v4693_v3 = vsel %vm3893_vm5, %v8510_v46, %v4293_v61  ;;  %vm3891_vm7 = vcmp.gt.f32.partialorder %v2954_v52, 0.0  ;;  %v4291_v4 = vmul.f32 0.2, %v2954_v52  ;;  %v2167_v11 = vpop.f32.mrb[25].mxu0 }
 0x115   :  { %6691 = vst.msk [vmem:[%s11325_s2 + $0x370] sm:$0xf] %vm6470_vm3, %v7898_v62  ;;  %v7901_v8 = vpack.c.bf16 %v4693_v3, %v4693_v3  ;;  %v4491_v9 = vsel %vm3691_vm6, %v2154_v51, %v4091_v0  ;;  %vm3696_vm8 = vcmp.gt.f32.partialorder %v8313_v5, 0.0  ;;  %v4096_v10 = vmul.f32 0.2, %v8313_v5  ;;  %v2967_v12 = vpop.f32.mrb[25].mxu1 }
 0x116   :  { %v8832_v13 = vld [vmem:[%s11324_s0 + $0x220] sm:$0xff]   ;;  %6494 = vst.msk [vmem:[%s11325_s2 + $0x5c] sm:$0xf] %vm6470_vm3, %v7701_v2  ;;  %v7699_v14 = vpack.c.bf16 %v4491_v9, %v4491_v9  ;;  %v4691_v15 = vsel %vm3891_vm7, %v2954_v52, %v4291_v4  ;;  %vm3896_vm9 = vcmp.gt.f32.partialorder %v8513_v6, 0.0  ;;  %v4296_v16 = vmul.f32 0.2, %v8513_v6  ;;  %8420 = vmatmul.mubr.msk.bf16.gmra.mrb[132].mxu0 %vm1436_vm0, %v8830_v1  ;;  %8620 = vmatmul.mubr.msk.bf16.gmra.mrb[132].mxu1 %vm1436_vm0, %v8831_v7 }
 0x117   :  { %v8314_v17 = vpop.f32.mrb[26].mxu0  ;;  %v8514_v18 = vpop.f32.mrb[26].mxu1  ;;  %v8833_v19 = vld [vmem:[%s11324_s0 + $0x540] sm:$0xff]   ;;  %6694 = vst.msk [vmem:[%s11325_s2 + $0x37c] sm:$0xf] %vm6470_vm3, %v7901_v8  ;;  %v7899_v20 = vpack.c.bf16 %v4691_v15, %v4691_v15  ;;  %v4496_v21 = vsel %vm3696_vm8, %v8313_v5, %v4096_v10  ;;  %vm3694_vm10 = vcmp.gt.f32.partialorder %v2167_v11, 0.0  ;;  %8423 = vmatprep.mubr.msk.bf16.mxu0 %vm1436_vm0, %v8832_v13 }
 0x118   :  { %v4094_v22 = vmul.f32 0.2, %v2167_v11  ;;  %v2170_v23 = vpop.f32.mrb[27].mxu0  ;;  %v2970_v24 = vpop.f32.mrb[27].mxu1  ;;  %6492 = vst.msk [vmem:[%s11325_s2 + $0x54] sm:$0xf] %vm6470_vm3, %v7699_v14  ;;  %v7704_v25 = vpack.c.bf16 %v4496_v21, %v4496_v21  ;;  %v4696_v26 = vsel %vm3896_vm9, %v8513_v6, %v4296_v16  ;;  %8623 = vmatprep.mubr.msk.bf16.mxu1 %vm1436_vm0, %v8833_v19 }
 0x119   :  { %vm3894_vm11 = vcmp.gt.f32.partialorder %v2967_v12, 0.0  ;;  %v4294_v27 = vmul.f32 0.2, %v2967_v12  ;;  %6692 = vst.msk [vmem:[%s11325_s2 + $0x374] sm:$0xf] %vm6470_vm3, %v7899_v20  ;;  %v7904_v28 = vpack.c.bf16 %v4696_v26, %v4696_v26  ;;  %vm3697_vm12 = vcmp.gt.f32.partialorder %v8314_v17, 0.0 }
 0x11a   :  { %v4494_v29 = vsel %vm3694_vm10, %v2167_v11, %v4094_v22  ;;  %v4097_v30 = vmul.f32 0.2, %v8314_v17  ;;  %6497 = vst.msk [vmem:[%s11325_s2 + $0x68] sm:$0xf] %vm6470_vm3, %v7704_v25  ;;  %vm3897_vm13 = vcmp.gt.f32.partialorder %v8514_v18, 0.0  ;;  %vm3695_vm14 = vcmp.gt.f32.partialorder %v2170_v23, 0.0 }
 0x11b   :  { %v7702_v31 = vpack.c.bf16 %v4494_v29, %v4494_v29  ;;  %v4694_v32 = vsel %vm3894_vm11, %v2967_v12, %v4294_v27  ;;  %v4297_v33 = vmul.f32 0.2, %v8514_v18  ;;  %6697 = vst.msk [vmem:[%s11325_s2 + $0x388] sm:$0xf] %vm6470_vm3, %v7904_v28  ;;  %v4095_v36 = vmul.f32 0.2, %v2170_v23 }
 0x11c   :  { %v7902_v34 = vpack.c.bf16 %v4694_v32, %v4694_v32  ;;  %v4497_v35 = vsel %vm3697_vm12, %v8314_v17, %v4097_v30  ;;  %v8834_v37 = vld [vmem:[%s11324_s0 + $0x228] sm:$0xff]   ;;  %vm3895_vm15 = vcmp.gt.f32.partialorder %v2970_v24, 0.0  ;;  %v4295_v40 = vmul.f32 0.2, %v2970_v24  ;;  %v8317_v41 = vpop.f32.mrb[28].mxu0  ;;  %v8517_v42 = vpop.f32.mrb[28].mxu1 }
 0x11d   :  { %6495 = vst.msk [vmem:[%s11325_s2 + $0x60] sm:$0xf] %vm6470_vm3, %v7702_v31  ;;  %v7705_v38 = vpack.c.bf16 %v4497_v35, %v4497_v35  ;;  %v4697_v39 = vsel %vm3897_vm13, %v8514_v18, %v4297_v33  ;;  %v8835_v43 = vld [vmem:[%s11324_s0 + $0x548] sm:$0xff]   ;;  %v4495_v45 = vsel %vm3695_vm14, %v2170_v23, %v4095_v36  ;;  %vm3700_vm1 = vcmp.gt.f32.partialorder %v8317_v41, 0.0  ;;  %v2183_v47 = vpop.f32.mrb[29].mxu0  ;;  %v2983_v48 = vpop.f32.mrb[29].mxu1 }
 0x11e   :  { %6695 = vst.msk [vmem:[%s11325_s2 + $0x380] sm:$0xf] %vm6470_vm3, %v7902_v34  ;;  %v7905_v44 = vpack.c.bf16 %v4697_v39, %v4697_v39  ;;  %v4100_v46 = vmul.f32 0.2, %v8317_v41  ;;  %v8836_v49 = vld [vmem:[%s11324_s0 + $0x230] sm:$0xff]   ;;  %v7703_v50 = vpack.c.bf16 %v4495_v45, %v4495_v45  ;;  %v4695_v51 = vsel %vm3895_vm15, %v2970_v24, %v4295_v40  ;;  %v8318_v53 = vpop.f32.mrb[30].mxu0  ;;  %8424 = vmatmul.mubr.msk.bf16.gmra.mrb[136].mxu0 %vm1436_vm0, %v8834_v37 }
 0x11f   :  { %6498 = vst.msk [vmem:[%s11325_s2 + $0x6c] sm:$0xf] %vm6470_vm3, %v7705_v38  ;;  %vm3900_vm2 = vcmp.gt.f32.partialorder %v8517_v42, 0.0  ;;  %v4300_v52 = vmul.f32 0.2, %v8517_v42  ;;  %v8518_v54 = vpop.f32.mrb[30].mxu1  ;;  %v7903_v56 = vpack.c.bf16 %v4695_v51, %v4695_v51  ;;  %8624 = vmatmul.mubr.msk.bf16.gmra.mrb[136].mxu1 %vm1436_vm0, %v8835_v43  ;;  %8427 = vmatprep.mubr.msk.bf16.mxu0 %vm1436_vm0, %v8836_v49 }
 0x120   :  { %v8837_v55 = vld [vmem:[%s11324_s0 + $0x550] sm:$0xff]   ;;  %6698 = vst.msk [vmem:[%s11325_s2 + $0x38c] sm:$0xf] %vm6470_vm3, %v7905_v44  ;;  %v4500_v57 = vsel %vm3700_vm1, %v8317_v41, %v4100_v46  ;;  %vm3698_vm4 = vcmp.gt.f32.partialorder %v2183_v47, 0.0  ;;  %v4098_v58 = vmul.f32 0.2, %v2183_v47 }
 0x121   :  { %v2186_v59 = vpop.f32.mrb[31].mxu0  ;;  %v2986_v60 = vpop.f32.mrb[31].mxu1  ;;  %6496 = vst.msk [vmem:[%s11325_s2 + $0x64] sm:$0xf] %vm6470_vm3, %v7703_v50  ;;  %v7708_v61 = vpack.c.bf16 %v4500_v57, %v4500_v57  ;;  %v4700_v62 = vsel %vm3900_vm2, %v8517_v42, %v4300_v52  ;;  %vm3898_vm5 = vcmp.gt.f32.partialorder %v2983_v48, 0.0  ;;  %vm3701_vm6 = vcmp.gt.f32.partialorder %v8318_v53, 0.0  ;;  %8627 = vmatprep.mubr.msk.bf16.mxu1 %vm1436_vm0, %v8837_v55 }
 0x122   :  { %v4298_v63 = vmul.f32 0.2, %v2983_v48  ;;  %6696 = vst.msk [vmem:[%s11325_s2 + $0x384] sm:$0xf] %vm6470_vm3, %v7903_v56  ;;  %v7908_v0 = vpack.c.bf16 %v4700_v62, %v4700_v62  ;;  %v4498_v1 = vsel %vm3698_vm4, %v2183_v47, %v4098_v58  ;;  %v4101_v2 = vmul.f32 0.2, %v8318_v53 }
 0x123   :  { %6501 = vst.msk [vmem:[%s11325_s2 + $0x78] sm:$0xf] %vm6470_vm3, %v7708_v61  ;;  %v7706_v3 = vpack.c.bf16 %v4498_v1, %v4498_v1  ;;  %vm3901_vm7 = vcmp.gt.f32.partialorder %v8518_v54, 0.0  ;;  %v4301_v5 = vmul.f32 0.2, %v8518_v54  ;;  %vm3699_vm8 = vcmp.gt.f32.partialorder %v2186_v59, 0.0 }
 0x124   :  { %v4698_v4 = vsel %vm3898_vm5, %v2983_v48, %v4298_v63  ;;  %6701 = vst.msk [vmem:[%s11325_s2 + $0x398] sm:$0xf] %vm6470_vm3, %v7908_v0  ;;  %v4501_v7 = vsel %vm3701_vm6, %v8318_v53, %v4101_v2  ;;  %v4099_v8 = vmul.f32 0.2, %v2186_v59  ;;  %v8838_v9 = vld [vmem:[%s11324_s0 + $0x238] sm:$0xff]   ;;  %vm3899_vm9 = vcmp.gt.f32.partialorder %v2986_v60, 0.0 }
 0x125   :  { %v7906_v6 = vpack.c.bf16 %v4698_v4, %v4698_v4  ;;  %6499 = vst.msk [vmem:[%s11325_s2 + $0x70] sm:$0xf] %vm6470_vm3, %v7706_v3  ;;  %v7709_v10 = vpack.c.bf16 %v4501_v7, %v4501_v7  ;;  %v4701_v11 = vsel %vm3901_vm7, %v8518_v54, %v4301_v5  ;;  %v4299_v12 = vmul.f32 0.2, %v2986_v60  ;;  %v8321_v13 = vpop.f32.mrb[32].mxu0  ;;  %v8521_v14 = vpop.f32.mrb[32].mxu1 }
 0x126   :  { %v8839_v15 = vld [vmem:[%s11324_s0 + $0x558] sm:$0xff]   ;;  %v7909_v16 = vpack.c.bf16 %v4701_v11, %v4701_v11  ;;  %v4499_v17 = vsel %vm3699_vm8, %v2186_v59, %v4099_v8  ;;  %vm3704_vm10 = vcmp.gt.f32.partialorder %v8321_v13, 0.0  ;;  %v4104_v18 = vmul.f32 0.2, %v8321_v13  ;;  %v2199_v19 = vpop.f32.mrb[33].mxu0  ;;  %v2999_v20 = vpop.f32.mrb[33].mxu1  ;;  %8428 = vmatmul.mubr.msk.bf16.gmra.mrb[140].mxu0 %vm1436_vm0, %v8838_v9 }
 0x127   :  { %6699 = vst.msk [vmem:[%s11325_s2 + $0x390] sm:$0xf] %vm6470_vm3, %v7906_v6  ;;  %v8840_v21 = vld [vmem:[%s11324_s0 + $0x240] sm:$0xff]   ;;  %6502 = vst.msk [vmem:[%s11325_s2 + $0x7c] sm:$0xf] %vm6470_vm3, %v7709_v10  ;;  %v7707_v22 = vpack.c.bf16 %v4499_v17, %v4499_v17  ;;  %v4699_v23 = vsel %vm3899_vm9, %v2986_v60, %v4299_v12  ;;  %vm3904_vm11 = vcmp.gt.f32.partialorder %v8521_v14, 0.0  ;;  %8628 = vmatmul.mubr.msk.bf16.gmra.mrb[140].mxu1 %vm1436_vm0, %v8839_v15 }
 0x128   :  { %v4304_v24 = vmul.f32 0.2, %v8521_v14  ;;  %v8322_v25 = vpop.f32.mrb[34].mxu0  ;;  %v8522_v26 = vpop.f32.mrb[34].mxu1  ;;  %v8841_v27 = vld [vmem:[%s11324_s0 + $0x560] sm:$0xff]   ;;  %v7907_v28 = vpack.c.bf16 %v4699_v23, %v4699_v23  ;;  %v4504_v29 = vsel %vm3704_vm10, %v8321_v13, %v4104_v18  ;;  %vm3702_vm12 = vcmp.gt.f32.partialorder %v2199_v19, 0.0  ;;  %8431 = vmatprep.mubr.msk.bf16.mxu0 %vm1436_vm0, %v8840_v21 }
 0x129   :  { %6702 = vst.msk [vmem:[%s11325_s2 + $0x39c] sm:$0xf] %vm6470_vm3, %v7909_v16  ;;  %v4102_v30 = vmul.f32 0.2, %v2199_v19  ;;  %v2202_v31 = vpop.f32.mrb[35].mxu0  ;;  %v3002_v32 = vpop.f32.mrb[35].mxu1  ;;  %v7712_v33 = vpack.c.bf16 %v4504_v29, %v4504_v29  ;;  %8631 = vmatprep.mubr.msk.bf16.mxu1 %vm1436_vm0, %v8841_v27 }
 0x12a   :  { %6500 = vst.msk [vmem:[%s11325_s2 + $0x74] sm:$0xf] %vm6470_vm3, %v7707_v22  ;;  %v4704_v34 = vsel %vm3904_vm11, %v8521_v14, %v4304_v24  ;;  %vm3902_vm13 = vcmp.gt.f32.partialorder %v2999_v20, 0.0  ;;  %v4302_v35 = vmul.f32 0.2, %v2999_v20  ;;  %vm3705_vm14 = vcmp.gt.f32.partialorder %v8322_v25, 0.0 }
 0x12b   :  { %6700 = vst.msk [vmem:[%s11325_s2 + $0x394] sm:$0xf] %vm6470_vm3, %v7907_v28  ;;  %v7912_v36 = vpack.c.bf16 %v4704_v34, %v4704_v34  ;;  %v4502_v37 = vsel %vm3702_vm12, %v2199_v19, %v4102_v30  ;;  %v4105_v38 = vmul.f32 0.2, %v8322_v25  ;;  %6505 = vst.msk [vmem:[%s11325_s2 + $0x88] sm:$0xf] %vm6470_vm3, %v7712_v33 }
 0x12c   :  { %v7710_v39 = vpack.c.bf16 %v4502_v37, %v4502_v37  ;;  %v4702_v40 = vsel %vm3902_vm13, %v2999_v20, %v4302_v35  ;;  %vm3905_vm15 = vcmp.gt.f32.partialorder %v8522_v26, 0.0  ;;  %v4305_v41 = vmul.f32 0.2, %v8522_v26  ;;  %v8842_v45 = vld [vmem:[%s11324_s0 + $0x248] sm:$0xff]   ;;  %v8325_v49 = vpop.f32.mrb[36].mxu0  ;;  %v8525_v50 = vpop.f32.mrb[36].mxu1 }
 0x12d   :  { %6705 = vst.msk [vmem:[%s11325_s2 + $0x3a8] sm:$0xf] %vm6470_vm3, %v7912_v36  ;;  %v7910_v42 = vpack.c.bf16 %v4702_v40, %v4702_v40  ;;  %v4505_v43 = vsel %vm3705_vm14, %v8322_v25, %v4105_v38  ;;  %vm3703_vm1 = vcmp.gt.f32.partialorder %v2202_v31, 0.0  ;;  %v4103_v44 = vmul.f32 0.2, %v2202_v31  ;;  %v8843_v51 = vld [vmem:[%s11324_s0 + $0x568] sm:$0xff]  }
 0x12e   :  { %6503 = vst.msk [vmem:[%s11325_s2 + $0x80] sm:$0xf] %vm6470_vm3, %v7710_v39  ;;  %v7713_v46 = vpack.c.bf16 %v4505_v43, %v4505_v43  ;;  %v4705_v47 = vsel %vm3905_vm15, %v8522_v26, %v4305_v41  ;;  %vm3903_vm2 = vcmp.gt.f32.partialorder %v3002_v32, 0.0  ;;  %v4303_v48 = vmul.f32 0.2, %v3002_v32  ;;  %v2215_v55 = vpop.f32.mrb[37].mxu0  ;;  %8432 = vmatmul.mubr.msk.bf16.gmra.mrb[144].mxu0 %vm1436_vm0, %v8842_v45 }
 0x12f   :  { %6703 = vst.msk [vmem:[%s11325_s2 + $0x3a0] sm:$0xf] %vm6470_vm3, %v7910_v42  ;;  %v7913_v52 = vpack.c.bf16 %v4705_v47, %v4705_v47  ;;  %v4503_v53 = vsel %vm3703_vm1, %v2202_v31, %v4103_v44  ;;  %vm3708_vm4 = vcmp.gt.f32.partialorder %v8325_v49, 0.0  ;;  %v4108_v54 = vmul.f32 0.2, %v8325_v49  ;;  %v3015_v56 = vpop.f32.mrb[37].mxu1  ;;  %8632 = vmatmul.mubr.msk.bf16.gmra.mrb[144].mxu1 %vm1436_vm0, %v8843_v51 }
 0x130   :  { %v8844_v57 = vld [vmem:[%s11324_s0 + $0x250] sm:$0xff]   ;;  %6506 = vst.msk [vmem:[%s11325_s2 + $0x8c] sm:$0xf] %vm6470_vm3, %v7713_v46  ;;  %v7711_v58 = vpack.c.bf16 %v4503_v53, %v4503_v53  ;;  %v4703_v59 = vsel %vm3903_vm2, %v3002_v32, %v4303_v48  ;;  %vm3908_vm5 = vcmp.gt.f32.partialorder %v8525_v50, 0.0  ;;  %v4308_v60 = vmul.f32 0.2, %v8525_v50 }
 0x131   :  { %v8326_v61 = vpop.f32.mrb[38].mxu0  ;;  %v8526_v62 = vpop.f32.mrb[38].mxu1  ;;  %v8845_v63 = vld [vmem:[%s11324_s0 + $0x570] sm:$0xff]   ;;  %6706 = vst.msk [vmem:[%s11325_s2 + $0x3ac] sm:$0xf] %vm6470_vm3, %v7913_v52  ;;  %v7911_v0 = vpack.c.bf16 %v4703_v59, %v4703_v59  ;;  %v4508_v1 = vsel %vm3708_vm4, %v8325_v49, %v4108_v54  ;;  %vm3706_vm6 = vcmp.gt.f32.partialorder %v2215_v55, 0.0  ;;  %8435 = vmatprep.mubr.msk.bf16.mxu0 %vm1436_vm0, %v8844_v57 }
 0x132   :  { %v4106_v2 = vmul.f32 0.2, %v2215_v55  ;;  %v2218_v3 = vpop.f32.mrb[39].mxu0  ;;  %v3018_v4 = vpop.f32.mrb[39].mxu1  ;;  %6504 = vst.msk [vmem:[%s11325_s2 + $0x84] sm:$0xf] %vm6470_vm3, %v7711_v58  ;;  %v7716_v5 = vpack.c.bf16 %v4508_v1, %v4508_v1  ;;  %v4708_v6 = vsel %vm3908_vm5, %v8525_v50, %v4308_v60  ;;  %8635 = vmatprep.mubr.msk.bf16.mxu1 %vm1436_vm0, %v8845_v63 }
 0x133   :  { %vm3906_vm7 = vcmp.gt.f32.partialorder %v3015_v56, 0.0  ;;  %v4306_v7 = vmul.f32 0.2, %v3015_v56  ;;  %6704 = vst.msk [vmem:[%s11325_s2 + $0x3a4] sm:$0xf] %vm6470_vm3, %v7911_v0  ;;  %v7916_v8 = vpack.c.bf16 %v4708_v6, %v4708_v6  ;;  %vm3709_vm8 = vcmp.gt.f32.partialorder %v8326_v61, 0.0 }
 0x134   :  { %v4506_v9 = vsel %vm3706_vm6, %v2215_v55, %v4106_v2  ;;  %v4109_v10 = vmul.f32 0.2, %v8326_v61  ;;  %6509 = vst.msk [vmem:[%s11325_s2 + $0x98] sm:$0xf] %vm6470_vm3, %v7716_v5  ;;  %vm3909_vm9 = vcmp.gt.f32.partialorder %v8526_v62, 0.0  ;;  %vm3707_vm10 = vcmp.gt.f32.partialorder %v2218_v3, 0.0 }
 0x135   :  { %v7714_v11 = vpack.c.bf16 %v4506_v9, %v4506_v9  ;;  %v4706_v12 = vsel %vm3906_vm7, %v3015_v56, %v4306_v7  ;;  %v4309_v13 = vmul.f32 0.2, %v8526_v62  ;;  %6709 = vst.msk [vmem:[%s11325_s2 + $0x3b8] sm:$0xf] %vm6470_vm3, %v7916_v8  ;;  %v4107_v16 = vmul.f32 0.2, %v2218_v3 }
 0x136   :  { %v7914_v14 = vpack.c.bf16 %v4706_v12, %v4706_v12  ;;  %v4509_v15 = vsel %vm3709_vm8, %v8326_v61, %v4109_v10  ;;  %v8846_v17 = vld [vmem:[%s11324_s0 + $0x258] sm:$0xff]   ;;  %vm3907_vm11 = vcmp.gt.f32.partialorder %v3018_v4, 0.0  ;;  %v4307_v20 = vmul.f32 0.2, %v3018_v4  ;;  %v8329_v21 = vpop.f32.mrb[40].mxu0  ;;  %v8529_v22 = vpop.f32.mrb[40].mxu1 }
 0x137   :  { %6507 = vst.msk [vmem:[%s11325_s2 + $0x90] sm:$0xf] %vm6470_vm3, %v7714_v11  ;;  %v7717_v18 = vpack.c.bf16 %v4509_v15, %v4509_v15  ;;  %v4709_v19 = vsel %vm3909_vm9, %v8526_v62, %v4309_v13  ;;  %v8847_v23 = vld [vmem:[%s11324_s0 + $0x578] sm:$0xff]   ;;  %v4507_v25 = vsel %vm3707_vm10, %v2218_v3, %v4107_v16  ;;  %vm3712_vm12 = vcmp.gt.f32.partialorder %v8329_v21, 0.0  ;;  %v2231_v27 = vpop.f32.mrb[41].mxu0  ;;  %v3031_v28 = vpop.f32.mrb[41].mxu1  ;;  %8436 = vmatmul.mubr.msk.bf16.gmra.mrb[148].mxu0 %vm1436_vm0, %v8846_v17 }
 0x138   :  { %6707 = vst.msk [vmem:[%s11325_s2 + $0x3b0] sm:$0xf] %vm6470_vm3, %v7914_v14  ;;  %v7917_v24 = vpack.c.bf16 %v4709_v19, %v4709_v19  ;;  %v4112_v26 = vmul.f32 0.2, %v8329_v21  ;;  %v8848_v29 = vld [vmem:[%s11324_s0 + $0x260] sm:$0xff]   ;;  %v7715_v30 = vpack.c.bf16 %v4507_v25, %v4507_v25  ;;  %v4707_v31 = vsel %vm3907_vm11, %v3018_v4, %v4307_v20  ;;  %v8330_v33 = vpop.f32.mrb[42].mxu0  ;;  %8636 = vmatmul.mubr.msk.bf16.gmra.mrb[148].mxu1 %vm1436_vm0, %v8847_v23 }
 0x139   :  { %6510 = vst.msk [vmem:[%s11325_s2 + $0x9c] sm:$0xf] %vm6470_vm3, %v7717_v18  ;;  %vm3912_vm13 = vcmp.gt.f32.partialorder %v8529_v22, 0.0  ;;  %v4312_v32 = vmul.f32 0.2, %v8529_v22  ;;  %v8530_v34 = vpop.f32.mrb[42].mxu1  ;;  %v7915_v36 = vpack.c.bf16 %v4707_v31, %v4707_v31  ;;  %8439 = vmatprep.mubr.msk.bf16.mxu0 %vm1436_vm0, %v8848_v29 }
 0x13a   :  { %v8849_v35 = vld [vmem:[%s11324_s0 + $0x580] sm:$0xff]   ;;  %6710 = vst.msk [vmem:[%s11325_s2 + $0x3bc] sm:$0xf] %vm6470_vm3, %v7917_v24  ;;  %v4512_v37 = vsel %vm3712_vm12, %v8329_v21, %v4112_v26  ;;  %vm3710_vm14 = vcmp.gt.f32.partialorder %v2231_v27, 0.0  ;;  %v4110_v38 = vmul.f32 0.2, %v2231_v27 }
 0x13b   :  { %v2234_v39 = vpop.f32.mrb[43].mxu0  ;;  %v3034_v40 = vpop.f32.mrb[43].mxu1  ;;  %6508 = vst.msk [vmem:[%s11325_s2 + $0x94] sm:$0xf] %vm6470_vm3, %v7715_v30  ;;  %v7720_v41 = vpack.c.bf16 %v4512_v37, %v4512_v37  ;;  %v4712_v42 = vsel %vm3912_vm13, %v8529_v22, %v4312_v32  ;;  %vm3910_vm15 = vcmp.gt.f32.partialorder %v3031_v28, 0.0  ;;  %vm3713_vm1 = vcmp.gt.f32.partialorder %v8330_v33, 0.0  ;;  %8639 = vmatprep.mubr.msk.bf16.mxu1 %vm1436_vm0, %v8849_v35 }
 0x13c   :  { %v4310_v43 = vmul.f32 0.2, %v3031_v28  ;;  %6708 = vst.msk [vmem:[%s11325_s2 + $0x3b4] sm:$0xf] %vm6470_vm3, %v7915_v36  ;;  %v7920_v44 = vpack.c.bf16 %v4712_v42, %v4712_v42  ;;  %v4510_v45 = vsel %vm3710_vm14, %v2231_v27, %v4110_v38  ;;  %v4113_v46 = vmul.f32 0.2, %v8330_v33 }
 0x13d   :  { %6513 = vst.msk [vmem:[%s11325_s2 + $0xa8] sm:$0xf] %vm6470_vm3, %v7720_v41  ;;  %v7718_v47 = vpack.c.bf16 %v4510_v45, %v4510_v45  ;;  %vm3913_vm2 = vcmp.gt.f32.partialorder %v8530_v34, 0.0  ;;  %v4313_v49 = vmul.f32 0.2, %v8530_v34  ;;  %vm3711_vm4 = vcmp.gt.f32.partialorder %v2234_v39, 0.0 }
 0x13e   :  { %v4710_v48 = vsel %vm3910_vm15, %v3031_v28, %v4310_v43  ;;  %6713 = vst.msk [vmem:[%s11325_s2 + $0x3c8] sm:$0xf] %vm6470_vm3, %v7920_v44  ;;  %v4513_v51 = vsel %vm3713_vm1, %v8330_v33, %v4113_v46  ;;  %v4111_v52 = vmul.f32 0.2, %v2234_v39  ;;  %v8850_v53 = vld [vmem:[%s11324_s0 + $0x268] sm:$0xff]   ;;  %vm3911_vm5 = vcmp.gt.f32.partialorder %v3034_v40, 0.0 }
 0x13f   :  { %v7918_v50 = vpack.c.bf16 %v4710_v48, %v4710_v48  ;;  %6511 = vst.msk [vmem:[%s11325_s2 + $0xa0] sm:$0xf] %vm6470_vm3, %v7718_v47  ;;  %v7721_v54 = vpack.c.bf16 %v4513_v51, %v4513_v51  ;;  %v4713_v55 = vsel %vm3913_vm2, %v8530_v34, %v4313_v49  ;;  %v4311_v56 = vmul.f32 0.2, %v3034_v40  ;;  %v8333_v57 = vpop.f32.mrb[44].mxu0  ;;  %v8533_v58 = vpop.f32.mrb[44].mxu1  ;;  %8440 = vmatmul.mubr.msk.bf16.gmra.mrb[152].mxu0 %vm1436_vm0, %v8850_v53 }
 0x140   :  { %v8851_v59 = vld [vmem:[%s11324_s0 + $0x588] sm:$0xff]   ;;  %v7921_v60 = vpack.c.bf16 %v4713_v55, %v4713_v55  ;;  %v4511_v61 = vsel %vm3711_vm4, %v2234_v39, %v4111_v52  ;;  %vm3716_vm6 = vcmp.gt.f32.partialorder %v8333_v57, 0.0  ;;  %v4116_v62 = vmul.f32 0.2, %v8333_v57  ;;  %v2247_v63 = vpop.f32.mrb[45].mxu0  ;;  %v3047_v0 = vpop.f32.mrb[45].mxu1 }
 0x141   :  { %6711 = vst.msk [vmem:[%s11325_s2 + $0x3c0] sm:$0xf] %vm6470_vm3, %v7918_v50  ;;  %v8852_v1 = vld [vmem:[%s11324_s0 + $0x270] sm:$0xff]   ;;  %6514 = vst.msk [vmem:[%s11325_s2 + $0xac] sm:$0xf] %vm6470_vm3, %v7721_v54  ;;  %v7719_v2 = vpack.c.bf16 %v4511_v61, %v4511_v61  ;;  %v4711_v3 = vsel %vm3911_vm5, %v3034_v40, %v4311_v56  ;;  %vm3916_vm7 = vcmp.gt.f32.partialorder %v8533_v58, 0.0  ;;  %8640 = vmatmul.mubr.msk.bf16.gmra.mrb[152].mxu1 %vm1436_vm0, %v8851_v59 }
 0x142   :  { %v4316_v4 = vmul.f32 0.2, %v8533_v58  ;;  %v8334_v5 = vpop.f32.mrb[46].mxu0  ;;  %v8534_v6 = vpop.f32.mrb[46].mxu1  ;;  %v8853_v7 = vld [vmem:[%s11324_s0 + $0x590] sm:$0xff]   ;;  %v7919_v8 = vpack.c.bf16 %v4711_v3, %v4711_v3  ;;  %v4516_v9 = vsel %vm3716_vm6, %v8333_v57, %v4116_v62  ;;  %vm3714_vm8 = vcmp.gt.f32.partialorder %v2247_v63, 0.0  ;;  %8443 = vmatprep.mubr.msk.bf16.mxu0 %vm1436_vm0, %v8852_v1 }
 0x143   :  { %6714 = vst.msk [vmem:[%s11325_s2 + $0x3cc] sm:$0xf] %vm6470_vm3, %v7921_v60  ;;  %v4114_v10 = vmul.f32 0.2, %v2247_v63  ;;  %v2250_v11 = vpop.f32.mrb[47].mxu0  ;;  %v3050_v12 = vpop.f32.mrb[47].mxu1  ;;  %v7724_v13 = vpack.c.bf16 %v4516_v9, %v4516_v9  ;;  %8643 = vmatprep.mubr.msk.bf16.mxu1 %vm1436_vm0, %v8853_v7 }
 0x144   :  { %6512 = vst.msk [vmem:[%s11325_s2 + $0xa4] sm:$0xf] %vm6470_vm3, %v7719_v2  ;;  %v4716_v14 = vsel %vm3916_vm7, %v8533_v58, %v4316_v4  ;;  %vm3914_vm9 = vcmp.gt.f32.partialorder %v3047_v0, 0.0  ;;  %v4314_v15 = vmul.f32 0.2, %v3047_v0  ;;  %vm3717_vm10 = vcmp.gt.f32.partialorder %v8334_v5, 0.0 }
 0x145   :  { %6712 = vst.msk [vmem:[%s11325_s2 + $0x3c4] sm:$0xf] %vm6470_vm3, %v7919_v8  ;;  %v7924_v16 = vpack.c.bf16 %v4716_v14, %v4716_v14  ;;  %v4514_v17 = vsel %vm3714_vm8, %v2247_v63, %v4114_v10  ;;  %v4117_v18 = vmul.f32 0.2, %v8334_v5  ;;  %6517 = vst.msk [vmem:[%s11325_s2 + $0xb8] sm:$0xf] %vm6470_vm3, %v7724_v13 }
 0x146   :  { %v7722_v19 = vpack.c.bf16 %v4514_v17, %v4514_v17  ;;  %v4714_v20 = vsel %vm3914_vm9, %v3047_v0, %v4314_v15  ;;  %vm3917_vm11 = vcmp.gt.f32.partialorder %v8534_v6, 0.0  ;;  %v4317_v21 = vmul.f32 0.2, %v8534_v6  ;;  %v8854_v25 = vld [vmem:[%s11324_s0 + $0x278] sm:$0xff]   ;;  %v8337_v29 = vpop.f32.mrb[48].mxu0  ;;  %v8537_v30 = vpop.f32.mrb[48].mxu1 }
 0x147   :  { %6717 = vst.msk [vmem:[%s11325_s2 + $0x3d8] sm:$0xf] %vm6470_vm3, %v7924_v16  ;;  %v7922_v22 = vpack.c.bf16 %v4714_v20, %v4714_v20  ;;  %v4517_v23 = vsel %vm3717_vm10, %v8334_v5, %v4117_v18  ;;  %vm3715_vm12 = vcmp.gt.f32.partialorder %v2250_v11, 0.0  ;;  %v4115_v24 = vmul.f32 0.2, %v2250_v11  ;;  %v8855_v31 = vld [vmem:[%s11324_s0 + $0x598] sm:$0xff]   ;;  %8444 = vmatmul.mubr.msk.bf16.gmra.mrb[156].mxu0 %vm1436_vm0, %v8854_v25 }
 0x148   :  { %6515 = vst.msk [vmem:[%s11325_s2 + $0xb0] sm:$0xf] %vm6470_vm3, %v7722_v19  ;;  %v7725_v26 = vpack.c.bf16 %v4517_v23, %v4517_v23  ;;  %v4717_v27 = vsel %vm3917_vm11, %v8534_v6, %v4317_v21  ;;  %vm3915_vm13 = vcmp.gt.f32.partialorder %v3050_v12, 0.0  ;;  %v4315_v28 = vmul.f32 0.2, %v3050_v12  ;;  %v2263_v35 = vpop.f32.mrb[49].mxu0 }
 0x149   :  { %6715 = vst.msk [vmem:[%s11325_s2 + $0x3d0] sm:$0xf] %vm6470_vm3, %v7922_v22  ;;  %v7925_v32 = vpack.c.bf16 %v4717_v27, %v4717_v27  ;;  %v4515_v33 = vsel %vm3715_vm12, %v2250_v11, %v4115_v24  ;;  %vm3720_vm14 = vcmp.gt.f32.partialorder %v8337_v29, 0.0  ;;  %v4120_v34 = vmul.f32 0.2, %v8337_v29  ;;  %v3063_v36 = vpop.f32.mrb[49].mxu1  ;;  %8644 = vmatmul.mubr.msk.bf16.gmra.mrb[156].mxu1 %vm1436_vm0, %v8855_v31 }
 0x14a   :  { %v8856_v37 = vld [vmem:[%s11324_s0 + $0x280] sm:$0xff]   ;;  %6518 = vst.msk [vmem:[%s11325_s2 + $0xbc] sm:$0xf] %vm6470_vm3, %v7725_v26  ;;  %v7723_v38 = vpack.c.bf16 %v4515_v33, %v4515_v33  ;;  %v4715_v39 = vsel %vm3915_vm13, %v3050_v12, %v4315_v28  ;;  %vm3920_vm15 = vcmp.gt.f32.partialorder %v8537_v30, 0.0  ;;  %v4320_v40 = vmul.f32 0.2, %v8537_v30 }
 0x14b   :  { %v8338_v41 = vpop.f32.mrb[50].mxu0  ;;  %v8538_v42 = vpop.f32.mrb[50].mxu1  ;;  %v8857_v43 = vld [vmem:[%s11324_s0 + $0x5a0] sm:$0xff]   ;;  %6718 = vst.msk [vmem:[%s11325_s2 + $0x3dc] sm:$0xf] %vm6470_vm3, %v7925_v32  ;;  %v7923_v44 = vpack.c.bf16 %v4715_v39, %v4715_v39  ;;  %v4520_v45 = vsel %vm3720_vm14, %v8337_v29, %v4120_v34  ;;  %vm3718_vm1 = vcmp.gt.f32.partialorder %v2263_v35, 0.0  ;;  %8447 = vmatprep.mubr.msk.bf16.mxu0 %vm1436_vm0, %v8856_v37 }
 0x14c   :  { %v4118_v46 = vmul.f32 0.2, %v2263_v35  ;;  %v2266_v47 = vpop.f32.mrb[51].mxu0  ;;  %v3066_v48 = vpop.f32.mrb[51].mxu1  ;;  %6516 = vst.msk [vmem:[%s11325_s2 + $0xb4] sm:$0xf] %vm6470_vm3, %v7723_v38  ;;  %v7728_v49 = vpack.c.bf16 %v4520_v45, %v4520_v45  ;;  %v4720_v50 = vsel %vm3920_vm15, %v8537_v30, %v4320_v40  ;;  %8647 = vmatprep.mubr.msk.bf16.mxu1 %vm1436_vm0, %v8857_v43 }
 0x14d   :  { %vm3918_vm2 = vcmp.gt.f32.partialorder %v3063_v36, 0.0  ;;  %v4318_v51 = vmul.f32 0.2, %v3063_v36  ;;  %6716 = vst.msk [vmem:[%s11325_s2 + $0x3d4] sm:$0xf] %vm6470_vm3, %v7923_v44  ;;  %v7928_v52 = vpack.c.bf16 %v4720_v50, %v4720_v50  ;;  %vm3721_vm4 = vcmp.gt.f32.partialorder %v8338_v41, 0.0 }
 0x14e   :  { %v4518_v53 = vsel %vm3718_vm1, %v2263_v35, %v4118_v46  ;;  %v4121_v54 = vmul.f32 0.2, %v8338_v41  ;;  %6521 = vst.msk [vmem:[%s11325_s2 + $0xc8] sm:$0xf] %vm6470_vm3, %v7728_v49  ;;  %vm3921_vm5 = vcmp.gt.f32.partialorder %v8538_v42, 0.0  ;;  %vm3719_vm6 = vcmp.gt.f32.partialorder %v2266_v47, 0.0 }
 0x14f   :  { %v7726_v55 = vpack.c.bf16 %v4518_v53, %v4518_v53  ;;  %v4718_v56 = vsel %vm3918_vm2, %v3063_v36, %v4318_v51  ;;  %v4321_v57 = vmul.f32 0.2, %v8538_v42  ;;  %6721 = vst.msk [vmem:[%s11325_s2 + $0x3e8] sm:$0xf] %vm6470_vm3, %v7928_v52  ;;  %v4119_v60 = vmul.f32 0.2, %v2266_v47 }
 0x150   :  { %v7926_v58 = vpack.c.bf16 %v4718_v56, %v4718_v56  ;;  %v4521_v59 = vsel %vm3721_vm4, %v8338_v41, %v4121_v54  ;;  %v8858_v61 = vld [vmem:[%s11324_s0 + $0x288] sm:$0xff]   ;;  %vm3919_vm7 = vcmp.gt.f32.partialorder %v3066_v48, 0.0  ;;  %v4319_v0 = vmul.f32 0.2, %v3066_v48  ;;  %v8341_v1 = vpop.f32.mrb[52].mxu0  ;;  %v8541_v2 = vpop.f32.mrb[52].mxu1 }
 0x151   :  { %6519 = vst.msk [vmem:[%s11325_s2 + $0xc0] sm:$0xf] %vm6470_vm3, %v7726_v55  ;;  %v7729_v62 = vpack.c.bf16 %v4521_v59, %v4521_v59  ;;  %v4721_v63 = vsel %vm3921_vm5, %v8538_v42, %v4321_v57  ;;  %v8859_v3 = vld [vmem:[%s11324_s0 + $0x5a8] sm:$0xff]   ;;  %v4519_v5 = vsel %vm3719_vm6, %v2266_v47, %v4119_v60  ;;  %vm3724_vm8 = vcmp.gt.f32.partialorder %v8341_v1, 0.0  ;;  %v2279_v7 = vpop.f32.mrb[53].mxu0  ;;  %v3079_v8 = vpop.f32.mrb[53].mxu1  ;;  %8448 = vmatmul.mubr.msk.bf16.gmra.mrb[160].mxu0 %vm1436_vm0, %v8858_v61 }
 0x152   :  { %6719 = vst.msk [vmem:[%s11325_s2 + $0x3e0] sm:$0xf] %vm6470_vm3, %v7926_v58  ;;  %v7929_v4 = vpack.c.bf16 %v4721_v63, %v4721_v63  ;;  %v4124_v6 = vmul.f32 0.2, %v8341_v1  ;;  %v8860_v9 = vld [vmem:[%s11324_s0 + $0x290] sm:$0xff]   ;;  %v7727_v10 = vpack.c.bf16 %v4519_v5, %v4519_v5  ;;  %v4719_v11 = vsel %vm3919_vm7, %v3066_v48, %v4319_v0  ;;  %v8342_v13 = vpop.f32.mrb[54].mxu0  ;;  %8648 = vmatmul.mubr.msk.bf16.gmra.mrb[160].mxu1 %vm1436_vm0, %v8859_v3 }
 0x153   :  { %6522 = vst.msk [vmem:[%s11325_s2 + $0xcc] sm:$0xf] %vm6470_vm3, %v7729_v62  ;;  %vm3924_vm9 = vcmp.gt.f32.partialorder %v8541_v2, 0.0  ;;  %v4324_v12 = vmul.f32 0.2, %v8541_v2  ;;  %v8542_v14 = vpop.f32.mrb[54].mxu1  ;;  %v7927_v16 = vpack.c.bf16 %v4719_v11, %v4719_v11  ;;  %8451 = vmatprep.mubr.msk.bf16.mxu0 %vm1436_vm0, %v8860_v9 }
 0x154   :  { %v8861_v15 = vld [vmem:[%s11324_s0 + $0x5b0] sm:$0xff]   ;;  %6722 = vst.msk [vmem:[%s11325_s2 + $0x3ec] sm:$0xf] %vm6470_vm3, %v7929_v4  ;;  %v4524_v17 = vsel %vm3724_vm8, %v8341_v1, %v4124_v6  ;;  %vm3722_vm10 = vcmp.gt.f32.partialorder %v2279_v7, 0.0  ;;  %v4122_v18 = vmul.f32 0.2, %v2279_v7 }
 0x155   :  { %v2282_v19 = vpop.f32.mrb[55].mxu0  ;;  %v3082_v20 = vpop.f32.mrb[55].mxu1  ;;  %6520 = vst.msk [vmem:[%s11325_s2 + $0xc4] sm:$0xf] %vm6470_vm3, %v7727_v10  ;;  %v7732_v21 = vpack.c.bf16 %v4524_v17, %v4524_v17  ;;  %v4724_v22 = vsel %vm3924_vm9, %v8541_v2, %v4324_v12  ;;  %vm3922_vm11 = vcmp.gt.f32.partialorder %v3079_v8, 0.0  ;;  %vm3725_vm12 = vcmp.gt.f32.partialorder %v8342_v13, 0.0  ;;  %8651 = vmatprep.mubr.msk.bf16.mxu1 %vm1436_vm0, %v8861_v15 }
 0x156   :  { %v4322_v23 = vmul.f32 0.2, %v3079_v8  ;;  %6720 = vst.msk [vmem:[%s11325_s2 + $0x3e4] sm:$0xf] %vm6470_vm3, %v7927_v16  ;;  %v7932_v24 = vpack.c.bf16 %v4724_v22, %v4724_v22  ;;  %v4522_v25 = vsel %vm3722_vm10, %v2279_v7, %v4122_v18  ;;  %v4125_v26 = vmul.f32 0.2, %v8342_v13 }
 0x157   :  { %6525 = vst.msk [vmem:[%s11325_s2 + $0xd8] sm:$0xf] %vm6470_vm3, %v7732_v21  ;;  %v7730_v27 = vpack.c.bf16 %v4522_v25, %v4522_v25  ;;  %vm3925_vm13 = vcmp.gt.f32.partialorder %v8542_v14, 0.0  ;;  %v4325_v29 = vmul.f32 0.2, %v8542_v14  ;;  %vm3723_vm14 = vcmp.gt.f32.partialorder %v2282_v19, 0.0 }
 0x158   :  { %v4722_v28 = vsel %vm3922_vm11, %v3079_v8, %v4322_v23  ;;  %6725 = vst.msk [vmem:[%s11325_s2 + $0x3f8] sm:$0xf] %vm6470_vm3, %v7932_v24  ;;  %v4525_v31 = vsel %vm3725_vm12, %v8342_v13, %v4125_v26  ;;  %v4123_v32 = vmul.f32 0.2, %v2282_v19  ;;  %v8862_v33 = vld [vmem:[%s11324_s0 + $0x298] sm:$0xff]   ;;  %vm3923_vm15 = vcmp.gt.f32.partialorder %v3082_v20, 0.0 }
 0x159   :  { %v7930_v30 = vpack.c.bf16 %v4722_v28, %v4722_v28  ;;  %6523 = vst.msk [vmem:[%s11325_s2 + $0xd0] sm:$0xf] %vm6470_vm3, %v7730_v27  ;;  %v7733_v34 = vpack.c.bf16 %v4525_v31, %v4525_v31  ;;  %v4725_v35 = vsel %vm3925_vm13, %v8542_v14, %v4325_v29  ;;  %v4323_v36 = vmul.f32 0.2, %v3082_v20  ;;  %v8345_v37 = vpop.f32.mrb[56].mxu0  ;;  %v8545_v38 = vpop.f32.mrb[56].mxu1  ;;  %8452 = vmatmul.mubr.msk.bf16.gmra.mrb[164].mxu0 %vm1436_vm0, %v8862_v33 }
 0x15a   :  { %v8863_v39 = vld [vmem:[%s11324_s0 + $0x5b8] sm:$0xff]   ;;  %v7933_v40 = vpack.c.bf16 %v4725_v35, %v4725_v35  ;;  %v4523_v41 = vsel %vm3723_vm14, %v2282_v19, %v4123_v32  ;;  %vm3728_vm1 = vcmp.gt.f32.partialorder %v8345_v37, 0.0  ;;  %v4128_v42 = vmul.f32 0.2, %v8345_v37  ;;  %v2295_v43 = vpop.f32.mrb[57].mxu0  ;;  %v3095_v44 = vpop.f32.mrb[57].mxu1 }
 0x15b   :  { %6723 = vst.msk [vmem:[%s11325_s2 + $0x3f0] sm:$0xf] %vm6470_vm3, %v7930_v30  ;;  %v8864_v45 = vld [vmem:[%s11324_s0 + $0x2a0] sm:$0xff]   ;;  %6526 = vst.msk [vmem:[%s11325_s2 + $0xdc] sm:$0xf] %vm6470_vm3, %v7733_v34  ;;  %v7731_v46 = vpack.c.bf16 %v4523_v41, %v4523_v41  ;;  %v4723_v47 = vsel %vm3923_vm15, %v3082_v20, %v4323_v36  ;;  %vm3928_vm2 = vcmp.gt.f32.partialorder %v8545_v38, 0.0  ;;  %8652 = vmatmul.mubr.msk.bf16.gmra.mrb[164].mxu1 %vm1436_vm0, %v8863_v39 }
 0x15c   :  { %v4328_v48 = vmul.f32 0.2, %v8545_v38  ;;  %v8346_v49 = vpop.f32.mrb[58].mxu0  ;;  %v8546_v50 = vpop.f32.mrb[58].mxu1  ;;  %v8865_v51 = vld [vmem:[%s11324_s0 + $0x5c0] sm:$0xff]   ;;  %v7931_v52 = vpack.c.bf16 %v4723_v47, %v4723_v47  ;;  %v4528_v53 = vsel %vm3728_vm1, %v8345_v37, %v4128_v42  ;;  %vm3726_vm4 = vcmp.gt.f32.partialorder %v2295_v43, 0.0  ;;  %8455 = vmatprep.mubr.msk.bf16.mxu0 %vm1436_vm0, %v8864_v45 }
 0x15d   :  { %6726 = vst.msk [vmem:[%s11325_s2 + $0x3fc] sm:$0xf] %vm6470_vm3, %v7933_v40  ;;  %v4126_v54 = vmul.f32 0.2, %v2295_v43  ;;  %v2298_v55 = vpop.f32.mrb[59].mxu0  ;;  %v3098_v56 = vpop.f32.mrb[59].mxu1  ;;  %v7736_v57 = vpack.c.bf16 %v4528_v53, %v4528_v53  ;;  %8655 = vmatprep.mubr.msk.bf16.mxu1 %vm1436_vm0, %v8865_v51 }
 0x15e   :  { %6524 = vst.msk [vmem:[%s11325_s2 + $0xd4] sm:$0xf] %vm6470_vm3, %v7731_v46  ;;  %v4728_v58 = vsel %vm3928_vm2, %v8545_v38, %v4328_v48  ;;  %vm3926_vm5 = vcmp.gt.f32.partialorder %v3095_v44, 0.0  ;;  %v4326_v59 = vmul.f32 0.2, %v3095_v44  ;;  %vm3729_vm6 = vcmp.gt.f32.partialorder %v8346_v49, 0.0 }
 0x15f   :  { %6724 = vst.msk [vmem:[%s11325_s2 + $0x3f4] sm:$0xf] %vm6470_vm3, %v7931_v52  ;;  %v7936_v60 = vpack.c.bf16 %v4728_v58, %v4728_v58  ;;  %v4526_v61 = vsel %vm3726_vm4, %v2295_v43, %v4126_v54  ;;  %v4129_v62 = vmul.f32 0.2, %v8346_v49  ;;  %6529 = vst.msk [vmem:[%s11325_s2 + $0xe8] sm:$0xf] %vm6470_vm3, %v7736_v57 }
 0x160   :  { %v7734_v63 = vpack.c.bf16 %v4526_v61, %v4526_v61  ;;  %v4726_v0 = vsel %vm3926_vm5, %v3095_v44, %v4326_v59  ;;  %vm3929_vm7 = vcmp.gt.f32.partialorder %v8546_v50, 0.0  ;;  %v4329_v1 = vmul.f32 0.2, %v8546_v50  ;;  %v8866_v5 = vld [vmem:[%s11324_s0 + $0x2a8] sm:$0xff]   ;;  %v8349_v9 = vpop.f32.mrb[60].mxu0  ;;  %v8549_v10 = vpop.f32.mrb[60].mxu1 }
 0x161   :  { %6729 = vst.msk [vmem:[%s11325_s2 + $0x408] sm:$0xf] %vm6470_vm3, %v7936_v60  ;;  %v7934_v2 = vpack.c.bf16 %v4726_v0, %v4726_v0  ;;  %v4529_v3 = vsel %vm3729_vm6, %v8346_v49, %v4129_v62  ;;  %vm3727_vm8 = vcmp.gt.f32.partialorder %v2298_v55, 0.0  ;;  %v4127_v4 = vmul.f32 0.2, %v2298_v55  ;;  %v8867_v11 = vld [vmem:[%s11324_s0 + $0x5c8] sm:$0xff]   ;;  %8456 = vmatmul.mubr.msk.bf16.gmra.mrb[168].mxu0 %vm1436_vm0, %v8866_v5 }
 0x162   :  { %6527 = vst.msk [vmem:[%s11325_s2 + $0xe0] sm:$0xf] %vm6470_vm3, %v7734_v63  ;;  %v7737_v6 = vpack.c.bf16 %v4529_v3, %v4529_v3  ;;  %v4729_v7 = vsel %vm3929_vm7, %v8546_v50, %v4329_v1  ;;  %vm3927_vm9 = vcmp.gt.f32.partialorder %v3098_v56, 0.0  ;;  %v4327_v8 = vmul.f32 0.2, %v3098_v56  ;;  %v2311_v15 = vpop.f32.mrb[61].mxu0 }
 0x163   :  { %6727 = vst.msk [vmem:[%s11325_s2 + $0x400] sm:$0xf] %vm6470_vm3, %v7934_v2  ;;  %v7937_v12 = vpack.c.bf16 %v4729_v7, %v4729_v7  ;;  %v4527_v13 = vsel %vm3727_vm8, %v2298_v55, %v4127_v4  ;;  %vm3732_vm10 = vcmp.gt.f32.partialorder %v8349_v9, 0.0  ;;  %v4132_v14 = vmul.f32 0.2, %v8349_v9  ;;  %v3111_v16 = vpop.f32.mrb[61].mxu1  ;;  %8656 = vmatmul.mubr.msk.bf16.gmra.mrb[168].mxu1 %vm1436_vm0, %v8867_v11 }
 0x164   :  { %v8868_v17 = vld [vmem:[%s11324_s0 + $0x2b0] sm:$0xff]   ;;  %6530 = vst.msk [vmem:[%s11325_s2 + $0xec] sm:$0xf] %vm6470_vm3, %v7737_v6  ;;  %v7735_v18 = vpack.c.bf16 %v4527_v13, %v4527_v13  ;;  %v4727_v19 = vsel %vm3927_vm9, %v3098_v56, %v4327_v8  ;;  %vm3932_vm11 = vcmp.gt.f32.partialorder %v8549_v10, 0.0  ;;  %v4332_v20 = vmul.f32 0.2, %v8549_v10 }
 0x165   :  { %v8350_v21 = vpop.f32.mrb[62].mxu0  ;;  %v8550_v22 = vpop.f32.mrb[62].mxu1  ;;  %v8869_v23 = vld [vmem:[%s11324_s0 + $0x5d0] sm:$0xff]   ;;  %6730 = vst.msk [vmem:[%s11325_s2 + $0x40c] sm:$0xf] %vm6470_vm3, %v7937_v12  ;;  %v7935_v24 = vpack.c.bf16 %v4727_v19, %v4727_v19  ;;  %v4532_v25 = vsel %vm3732_vm10, %v8349_v9, %v4132_v14  ;;  %vm3730_vm12 = vcmp.gt.f32.partialorder %v2311_v15, 0.0  ;;  %8459 = vmatprep.mubr.msk.bf16.mxu0 %vm1436_vm0, %v8868_v17 }
 0x166   :  { %v4130_v26 = vmul.f32 0.2, %v2311_v15  ;;  %v2314_v27 = vpop.f32.mrb[63].mxu0  ;;  %v3114_v28 = vpop.f32.mrb[63].mxu1  ;;  %6528 = vst.msk [vmem:[%s11325_s2 + $0xe4] sm:$0xf] %vm6470_vm3, %v7735_v18  ;;  %v7740_v29 = vpack.c.bf16 %v4532_v25, %v4532_v25  ;;  %v4732_v30 = vsel %vm3932_vm11, %v8549_v10, %v4332_v20  ;;  %8659 = vmatprep.mubr.msk.bf16.mxu1 %vm1436_vm0, %v8869_v23 }
 0x167   :  { %vm3930_vm13 = vcmp.gt.f32.partialorder %v3111_v16, 0.0  ;;  %v4330_v31 = vmul.f32 0.2, %v3111_v16  ;;  %6728 = vst.msk [vmem:[%s11325_s2 + $0x404] sm:$0xf] %vm6470_vm3, %v7935_v24  ;;  %v7940_v32 = vpack.c.bf16 %v4732_v30, %v4732_v30  ;;  %vm3733_vm14 = vcmp.gt.f32.partialorder %v8350_v21, 0.0 }
 0x168   :  { %v4530_v33 = vsel %vm3730_vm12, %v2311_v15, %v4130_v26  ;;  %v4133_v34 = vmul.f32 0.2, %v8350_v21  ;;  %6533 = vst.msk [vmem:[%s11325_s2 + $0xf8] sm:$0xf] %vm6470_vm3, %v7740_v29  ;;  %vm3933_vm15 = vcmp.gt.f32.partialorder %v8550_v22, 0.0  ;;  %vm3731_vm1 = vcmp.gt.f32.partialorder %v2314_v27, 0.0 }
 0x169   :  { %v7738_v35 = vpack.c.bf16 %v4530_v33, %v4530_v33  ;;  %v4730_v36 = vsel %vm3930_vm13, %v3111_v16, %v4330_v31  ;;  %v4333_v37 = vmul.f32 0.2, %v8550_v22  ;;  %6733 = vst.msk [vmem:[%s11325_s2 + $0x418] sm:$0xf] %vm6470_vm3, %v7940_v32  ;;  %v4131_v40 = vmul.f32 0.2, %v2314_v27 }
 0x16a   :  { %v7938_v38 = vpack.c.bf16 %v4730_v36, %v4730_v36  ;;  %v4533_v39 = vsel %vm3733_vm14, %v8350_v21, %v4133_v34  ;;  %v8870_v41 = vld [vmem:[%s11324_s0 + $0x2b8] sm:$0xff]   ;;  %vm3931_vm2 = vcmp.gt.f32.partialorder %v3114_v28, 0.0  ;;  %v4331_v44 = vmul.f32 0.2, %v3114_v28  ;;  %v8353_v45 = vpop.f32.mrb[64].mxu0  ;;  %v8553_v46 = vpop.f32.mrb[64].mxu1 }
 0x16b   :  { %6531 = vst.msk [vmem:[%s11325_s2 + $0xf0] sm:$0xf] %vm6470_vm3, %v7738_v35  ;;  %v7741_v42 = vpack.c.bf16 %v4533_v39, %v4533_v39  ;;  %v4733_v43 = vsel %vm3933_vm15, %v8550_v22, %v4333_v37  ;;  %v8871_v47 = vld [vmem:[%s11324_s0 + $0x5d8] sm:$0xff]   ;;  %v4531_v49 = vsel %vm3731_vm1, %v2314_v27, %v4131_v40  ;;  %vm3736_vm4 = vcmp.gt.f32.partialorder %v8353_v45, 0.0  ;;  %v2327_v51 = vpop.f32.mrb[65].mxu0  ;;  %v3127_v52 = vpop.f32.mrb[65].mxu1  ;;  %8460 = vmatmul.mubr.msk.bf16.gmra.mrb[172].mxu0 %vm1436_vm0, %v8870_v41 }
 0x16c   :  { %6731 = vst.msk [vmem:[%s11325_s2 + $0x410] sm:$0xf] %vm6470_vm3, %v7938_v38  ;;  %v7941_v48 = vpack.c.bf16 %v4733_v43, %v4733_v43  ;;  %v4136_v50 = vmul.f32 0.2, %v8353_v45  ;;  %v8872_v53 = vld [vmem:[%s11324_s0 + $0x2c0] sm:$0xff]   ;;  %v7739_v54 = vpack.c.bf16 %v4531_v49, %v4531_v49  ;;  %v4731_v55 = vsel %vm3931_vm2, %v3114_v28, %v4331_v44  ;;  %v8354_v57 = vpop.f32.mrb[66].mxu0  ;;  %8660 = vmatmul.mubr.msk.bf16.gmra.mrb[172].mxu1 %vm1436_vm0, %v8871_v47 }
 0x16d   :  { %6534 = vst.msk [vmem:[%s11325_s2 + $0xfc] sm:$0xf] %vm6470_vm3, %v7741_v42  ;;  %vm3936_vm5 = vcmp.gt.f32.partialorder %v8553_v46, 0.0  ;;  %v4336_v56 = vmul.f32 0.2, %v8553_v46  ;;  %v8554_v58 = vpop.f32.mrb[66].mxu1  ;;  %v7939_v60 = vpack.c.bf16 %v4731_v55, %v4731_v55  ;;  %8463 = vmatprep.mubr.msk.bf16.mxu0 %vm1436_vm0, %v8872_v53 }
 0x16e   :  { %v8873_v59 = vld [vmem:[%s11324_s0 + $0x5e0] sm:$0xff]   ;;  %6734 = vst.msk [vmem:[%s11325_s2 + $0x41c] sm:$0xf] %vm6470_vm3, %v7941_v48  ;;  %v4536_v61 = vsel %vm3736_vm4, %v8353_v45, %v4136_v50  ;;  %vm3734_vm6 = vcmp.gt.f32.partialorder %v2327_v51, 0.0  ;;  %v4134_v62 = vmul.f32 0.2, %v2327_v51 }
 0x16f   :  { %v2330_v63 = vpop.f32.mrb[67].mxu0  ;;  %v3130_v0 = vpop.f32.mrb[67].mxu1  ;;  %6532 = vst.msk [vmem:[%s11325_s2 + $0xf4] sm:$0xf] %vm6470_vm3, %v7739_v54  ;;  %v7744_v1 = vpack.c.bf16 %v4536_v61, %v4536_v61  ;;  %v4736_v2 = vsel %vm3936_vm5, %v8553_v46, %v4336_v56  ;;  %vm3934_vm7 = vcmp.gt.f32.partialorder %v3127_v52, 0.0  ;;  %vm3737_vm8 = vcmp.gt.f32.partialorder %v8354_v57, 0.0  ;;  %8663 = vmatprep.mubr.msk.bf16.mxu1 %vm1436_vm0, %v8873_v59 }
 0x170   :  { %v4334_v3 = vmul.f32 0.2, %v3127_v52  ;;  %6732 = vst.msk [vmem:[%s11325_s2 + $0x414] sm:$0xf] %vm6470_vm3, %v7939_v60  ;;  %v7944_v4 = vpack.c.bf16 %v4736_v2, %v4736_v2  ;;  %v4534_v5 = vsel %vm3734_vm6, %v2327_v51, %v4134_v62  ;;  %v4137_v6 = vmul.f32 0.2, %v8354_v57 }
 0x171   :  { %6537 = vst.msk [vmem:[%s11325_s2 + $0x108] sm:$0xf] %vm6470_vm3, %v7744_v1  ;;  %v7742_v7 = vpack.c.bf16 %v4534_v5, %v4534_v5  ;;  %vm3937_vm9 = vcmp.gt.f32.partialorder %v8554_v58, 0.0  ;;  %v4337_v9 = vmul.f32 0.2, %v8554_v58  ;;  %vm3735_vm10 = vcmp.gt.f32.partialorder %v2330_v63, 0.0 }
 0x172   :  { %v4734_v8 = vsel %vm3934_vm7, %v3127_v52, %v4334_v3  ;;  %6737 = vst.msk [vmem:[%s11325_s2 + $0x428] sm:$0xf] %vm6470_vm3, %v7944_v4  ;;  %v4537_v11 = vsel %vm3737_vm8, %v8354_v57, %v4137_v6  ;;  %v4135_v12 = vmul.f32 0.2, %v2330_v63  ;;  %v8874_v13 = vld [vmem:[%s11324_s0 + $0x2c8] sm:$0xff]   ;;  %vm3935_vm11 = vcmp.gt.f32.partialorder %v3130_v0, 0.0 }
 0x173   :  { %v7942_v10 = vpack.c.bf16 %v4734_v8, %v4734_v8  ;;  %6535 = vst.msk [vmem:[%s11325_s2 + $0x100] sm:$0xf] %vm6470_vm3, %v7742_v7  ;;  %v7745_v14 = vpack.c.bf16 %v4537_v11, %v4537_v11  ;;  %v4737_v15 = vsel %vm3937_vm9, %v8554_v58, %v4337_v9  ;;  %v4335_v16 = vmul.f32 0.2, %v3130_v0  ;;  %v8357_v17 = vpop.f32.mrb[68].mxu0  ;;  %v8557_v18 = vpop.f32.mrb[68].mxu1  ;;  %8464 = vmatmul.mubr.msk.bf16.gmra.mrb[176].mxu0 %vm1436_vm0, %v8874_v13 }
 0x174   :  { %v8875_v19 = vld [vmem:[%s11324_s0 + $0x5e8] sm:$0xff]   ;;  %v7945_v20 = vpack.c.bf16 %v4737_v15, %v4737_v15  ;;  %v4535_v21 = vsel %vm3735_vm10, %v2330_v63, %v4135_v12  ;;  %vm3740_vm12 = vcmp.gt.f32.partialorder %v8357_v17, 0.0  ;;  %v4140_v22 = vmul.f32 0.2, %v8357_v17  ;;  %v2343_v23 = vpop.f32.mrb[69].mxu0  ;;  %v3143_v24 = vpop.f32.mrb[69].mxu1 }
 0x175   :  { %6735 = vst.msk [vmem:[%s11325_s2 + $0x420] sm:$0xf] %vm6470_vm3, %v7942_v10  ;;  %v8876_v25 = vld [vmem:[%s11324_s0 + $0x2d0] sm:$0xff]   ;;  %6538 = vst.msk [vmem:[%s11325_s2 + $0x10c] sm:$0xf] %vm6470_vm3, %v7745_v14  ;;  %v7743_v26 = vpack.c.bf16 %v4535_v21, %v4535_v21  ;;  %v4735_v27 = vsel %vm3935_vm11, %v3130_v0, %v4335_v16  ;;  %vm3940_vm13 = vcmp.gt.f32.partialorder %v8557_v18, 0.0  ;;  %8664 = vmatmul.mubr.msk.bf16.gmra.mrb[176].mxu1 %vm1436_vm0, %v8875_v19 }
 0x176   :  { %v4340_v28 = vmul.f32 0.2, %v8557_v18  ;;  %v8358_v29 = vpop.f32.mrb[70].mxu0  ;;  %v8558_v30 = vpop.f32.mrb[70].mxu1  ;;  %v8877_v31 = vld [vmem:[%s11324_s0 + $0x5f0] sm:$0xff]   ;;  %v7943_v32 = vpack.c.bf16 %v4735_v27, %v4735_v27  ;;  %v4540_v33 = vsel %vm3740_vm12, %v8357_v17, %v4140_v22  ;;  %vm3738_vm14 = vcmp.gt.f32.partialorder %v2343_v23, 0.0  ;;  %8467 = vmatprep.mubr.msk.bf16.mxu0 %vm1436_vm0, %v8876_v25 }
 0x177   :  { %6738 = vst.msk [vmem:[%s11325_s2 + $0x42c] sm:$0xf] %vm6470_vm3, %v7945_v20  ;;  %v4138_v34 = vmul.f32 0.2, %v2343_v23  ;;  %v2346_v35 = vpop.f32.mrb[71].mxu0  ;;  %v3146_v36 = vpop.f32.mrb[71].mxu1  ;;  %v7748_v37 = vpack.c.bf16 %v4540_v33, %v4540_v33  ;;  %8667 = vmatprep.mubr.msk.bf16.mxu1 %vm1436_vm0, %v8877_v31 }
 0x178   :  { %6536 = vst.msk [vmem:[%s11325_s2 + $0x104] sm:$0xf] %vm6470_vm3, %v7743_v26  ;;  %v4740_v38 = vsel %vm3940_vm13, %v8557_v18, %v4340_v28  ;;  %vm3938_vm15 = vcmp.gt.f32.partialorder %v3143_v24, 0.0  ;;  %v4338_v39 = vmul.f32 0.2, %v3143_v24  ;;  %vm3741_vm1 = vcmp.gt.f32.partialorder %v8358_v29, 0.0 }
 0x179   :  { %6736 = vst.msk [vmem:[%s11325_s2 + $0x424] sm:$0xf] %vm6470_vm3, %v7943_v32  ;;  %v7948_v40 = vpack.c.bf16 %v4740_v38, %v4740_v38  ;;  %v4538_v41 = vsel %vm3738_vm14, %v2343_v23, %v4138_v34  ;;  %v4141_v42 = vmul.f32 0.2, %v8358_v29  ;;  %6541 = vst.msk [vmem:[%s11325_s2 + $0x118] sm:$0xf] %vm6470_vm3, %v7748_v37 }
 0x17a   :  { %v7746_v43 = vpack.c.bf16 %v4538_v41, %v4538_v41  ;;  %v4738_v44 = vsel %vm3938_vm15, %v3143_v24, %v4338_v39  ;;  %vm3941_vm2 = vcmp.gt.f32.partialorder %v8558_v30, 0.0  ;;  %v4341_v45 = vmul.f32 0.2, %v8558_v30  ;;  %v8878_v49 = vld [vmem:[%s11324_s0 + $0x2d8] sm:$0xff]   ;;  %v8361_v53 = vpop.f32.mrb[72].mxu0  ;;  %v8561_v54 = vpop.f32.mrb[72].mxu1 }
 0x17b   :  { %6741 = vst.msk [vmem:[%s11325_s2 + $0x438] sm:$0xf] %vm6470_vm3, %v7948_v40  ;;  %v7946_v46 = vpack.c.bf16 %v4738_v44, %v4738_v44  ;;  %v4541_v47 = vsel %vm3741_vm1, %v8358_v29, %v4141_v42  ;;  %vm3739_vm4 = vcmp.gt.f32.partialorder %v2346_v35, 0.0  ;;  %v4139_v48 = vmul.f32 0.2, %v2346_v35  ;;  %v8879_v55 = vld [vmem:[%s11324_s0 + $0x5f8] sm:$0xff]   ;;  %8468 = vmatmul.mubr.msk.bf16.gmra.mrb[180].mxu0 %vm1436_vm0, %v8878_v49 }
 0x17c   :  { %6539 = vst.msk [vmem:[%s11325_s2 + $0x110] sm:$0xf] %vm6470_vm3, %v7746_v43  ;;  %v7749_v50 = vpack.c.bf16 %v4541_v47, %v4541_v47  ;;  %v4741_v51 = vsel %vm3941_vm2, %v8558_v30, %v4341_v45  ;;  %vm3939_vm5 = vcmp.gt.f32.partialorder %v3146_v36, 0.0  ;;  %v4339_v52 = vmul.f32 0.2, %v3146_v36  ;;  %v2359_v59 = vpop.f32.mrb[73].mxu0 }
 0x17d   :  { %6739 = vst.msk [vmem:[%s11325_s2 + $0x430] sm:$0xf] %vm6470_vm3, %v7946_v46  ;;  %v7949_v56 = vpack.c.bf16 %v4741_v51, %v4741_v51  ;;  %v4539_v57 = vsel %vm3739_vm4, %v2346_v35, %v4139_v48  ;;  %vm3744_vm6 = vcmp.gt.f32.partialorder %v8361_v53, 0.0  ;;  %v4144_v58 = vmul.f32 0.2, %v8361_v53  ;;  %v3159_v60 = vpop.f32.mrb[73].mxu1  ;;  %8668 = vmatmul.mubr.msk.bf16.gmra.mrb[180].mxu1 %vm1436_vm0, %v8879_v55 }
 0x17e   :  { %v8880_v61 = vld [vmem:[%s11324_s0 + $0x2e0] sm:$0xff]   ;;  %6542 = vst.msk [vmem:[%s11325_s2 + $0x11c] sm:$0xf] %vm6470_vm3, %v7749_v50  ;;  %v7747_v62 = vpack.c.bf16 %v4539_v57, %v4539_v57  ;;  %v4739_v63 = vsel %vm3939_vm5, %v3146_v36, %v4339_v52  ;;  %vm3944_vm7 = vcmp.gt.f32.partialorder %v8561_v54, 0.0  ;;  %v4344_v0 = vmul.f32 0.2, %v8561_v54 }
 0x17f   :  { %v8362_v1 = vpop.f32.mrb[74].mxu0  ;;  %v8562_v2 = vpop.f32.mrb[74].mxu1  ;;  %v8881_v3 = vld [vmem:[%s11324_s0 + $0x600] sm:$0xff]   ;;  %6742 = vst.msk [vmem:[%s11325_s2 + $0x43c] sm:$0xf] %vm6470_vm3, %v7949_v56  ;;  %v7947_v4 = vpack.c.bf16 %v4739_v63, %v4739_v63  ;;  %v4544_v5 = vsel %vm3744_vm6, %v8361_v53, %v4144_v58  ;;  %vm3742_vm8 = vcmp.gt.f32.partialorder %v2359_v59, 0.0  ;;  %8471 = vmatprep.mubr.msk.bf16.mxu0 %vm1436_vm0, %v8880_v61 }
 0x180   :  { %v4142_v6 = vmul.f32 0.2, %v2359_v59  ;;  %v2362_v7 = vpop.f32.mrb[75].mxu0  ;;  %v3162_v8 = vpop.f32.mrb[75].mxu1  ;;  %6540 = vst.msk [vmem:[%s11325_s2 + $0x114] sm:$0xf] %vm6470_vm3, %v7747_v62  ;;  %v7752_v9 = vpack.c.bf16 %v4544_v5, %v4544_v5  ;;  %v4744_v10 = vsel %vm3944_vm7, %v8561_v54, %v4344_v0  ;;  %8671 = vmatprep.mubr.msk.bf16.mxu1 %vm1436_vm0, %v8881_v3 }
 0x181   :  { %vm3942_vm9 = vcmp.gt.f32.partialorder %v3159_v60, 0.0  ;;  %v4342_v11 = vmul.f32 0.2, %v3159_v60  ;;  %6740 = vst.msk [vmem:[%s11325_s2 + $0x434] sm:$0xf] %vm6470_vm3, %v7947_v4  ;;  %v7952_v12 = vpack.c.bf16 %v4744_v10, %v4744_v10  ;;  %vm3745_vm10 = vcmp.gt.f32.partialorder %v8362_v1, 0.0 }
 0x182   :  { %v4542_v13 = vsel %vm3742_vm8, %v2359_v59, %v4142_v6  ;;  %v4145_v14 = vmul.f32 0.2, %v8362_v1  ;;  %6545 = vst.msk [vmem:[%s11325_s2 + $0x128] sm:$0xf] %vm6470_vm3, %v7752_v9  ;;  %vm3945_vm11 = vcmp.gt.f32.partialorder %v8562_v2, 0.0  ;;  %vm3743_vm12 = vcmp.gt.f32.partialorder %v2362_v7, 0.0 }
 0x183   :  { %v7750_v15 = vpack.c.bf16 %v4542_v13, %v4542_v13  ;;  %v4742_v16 = vsel %vm3942_vm9, %v3159_v60, %v4342_v11  ;;  %v4345_v17 = vmul.f32 0.2, %v8562_v2  ;;  %6745 = vst.msk [vmem:[%s11325_s2 + $0x448] sm:$0xf] %vm6470_vm3, %v7952_v12  ;;  %v4143_v20 = vmul.f32 0.2, %v2362_v7 }
 0x184   :  { %v7950_v18 = vpack.c.bf16 %v4742_v16, %v4742_v16  ;;  %v4545_v19 = vsel %vm3745_vm10, %v8362_v1, %v4145_v14  ;;  %v8882_v21 = vld [vmem:[%s11324_s0 + $0x2e8] sm:$0xff]   ;;  %vm3943_vm13 = vcmp.gt.f32.partialorder %v3162_v8, 0.0  ;;  %v4343_v24 = vmul.f32 0.2, %v3162_v8  ;;  %v8365_v25 = vpop.f32.mrb[76].mxu0  ;;  %v8565_v26 = vpop.f32.mrb[76].mxu1 }
 0x185   :  { %6543 = vst.msk [vmem:[%s11325_s2 + $0x120] sm:$0xf] %vm6470_vm3, %v7750_v15  ;;  %v7753_v22 = vpack.c.bf16 %v4545_v19, %v4545_v19  ;;  %v4745_v23 = vsel %vm3945_vm11, %v8562_v2, %v4345_v17  ;;  %v8883_v27 = vld [vmem:[%s11324_s0 + $0x608] sm:$0xff]   ;;  %v4543_v29 = vsel %vm3743_vm12, %v2362_v7, %v4143_v20  ;;  %vm3748_vm14 = vcmp.gt.f32.partialorder %v8365_v25, 0.0  ;;  %v2375_v31 = vpop.f32.mrb[77].mxu0  ;;  %v3175_v32 = vpop.f32.mrb[77].mxu1  ;;  %8472 = vmatmul.mubr.msk.bf16.gmra.mrb[184].mxu0 %vm1436_vm0, %v8882_v21 }
 0x186   :  { %6743 = vst.msk [vmem:[%s11325_s2 + $0x440] sm:$0xf] %vm6470_vm3, %v7950_v18  ;;  %v7953_v28 = vpack.c.bf16 %v4745_v23, %v4745_v23  ;;  %v4148_v30 = vmul.f32 0.2, %v8365_v25  ;;  %v8884_v33 = vld [vmem:[%s11324_s0 + $0x2f0] sm:$0xff]   ;;  %v7751_v34 = vpack.c.bf16 %v4543_v29, %v4543_v29  ;;  %v4743_v35 = vsel %vm3943_vm13, %v3162_v8, %v4343_v24  ;;  %v8366_v37 = vpop.f32.mrb[78].mxu0  ;;  %8672 = vmatmul.mubr.msk.bf16.gmra.mrb[184].mxu1 %vm1436_vm0, %v8883_v27 }
 0x187   :  { %6546 = vst.msk [vmem:[%s11325_s2 + $0x12c] sm:$0xf] %vm6470_vm3, %v7753_v22  ;;  %vm3948_vm15 = vcmp.gt.f32.partialorder %v8565_v26, 0.0  ;;  %v4348_v36 = vmul.f32 0.2, %v8565_v26  ;;  %v8566_v38 = vpop.f32.mrb[78].mxu1  ;;  %v7951_v40 = vpack.c.bf16 %v4743_v35, %v4743_v35  ;;  %8475 = vmatprep.mubr.msk.bf16.mxu0 %vm1436_vm0, %v8884_v33 }
 0x188   :  { %v8885_v39 = vld [vmem:[%s11324_s0 + $0x610] sm:$0xff]   ;;  %6746 = vst.msk [vmem:[%s11325_s2 + $0x44c] sm:$0xf] %vm6470_vm3, %v7953_v28  ;;  %v4548_v41 = vsel %vm3748_vm14, %v8365_v25, %v4148_v30  ;;  %vm3746_vm1 = vcmp.gt.f32.partialorder %v2375_v31, 0.0  ;;  %v4146_v42 = vmul.f32 0.2, %v2375_v31 }
 0x189   :  { %v2378_v43 = vpop.f32.mrb[79].mxu0  ;;  %v3178_v44 = vpop.f32.mrb[79].mxu1  ;;  %6544 = vst.msk [vmem:[%s11325_s2 + $0x124] sm:$0xf] %vm6470_vm3, %v7751_v34  ;;  %v7756_v45 = vpack.c.bf16 %v4548_v41, %v4548_v41  ;;  %v4748_v46 = vsel %vm3948_vm15, %v8565_v26, %v4348_v36  ;;  %vm3946_vm2 = vcmp.gt.f32.partialorder %v3175_v32, 0.0  ;;  %vm3749_vm4 = vcmp.gt.f32.partialorder %v8366_v37, 0.0  ;;  %8675 = vmatprep.mubr.msk.bf16.mxu1 %vm1436_vm0, %v8885_v39 }
 0x18a   :  { %v4346_v47 = vmul.f32 0.2, %v3175_v32  ;;  %6744 = vst.msk [vmem:[%s11325_s2 + $0x444] sm:$0xf] %vm6470_vm3, %v7951_v40  ;;  %v7956_v48 = vpack.c.bf16 %v4748_v46, %v4748_v46  ;;  %v4546_v49 = vsel %vm3746_vm1, %v2375_v31, %v4146_v42  ;;  %v4149_v50 = vmul.f32 0.2, %v8366_v37 }
 0x18b   :  { %6549 = vst.msk [vmem:[%s11325_s2 + $0x138] sm:$0xf] %vm6470_vm3, %v7756_v45  ;;  %v7754_v51 = vpack.c.bf16 %v4546_v49, %v4546_v49  ;;  %vm3949_vm5 = vcmp.gt.f32.partialorder %v8566_v38, 0.0  ;;  %v4349_v53 = vmul.f32 0.2, %v8566_v38  ;;  %vm3747_vm6 = vcmp.gt.f32.partialorder %v2378_v43, 0.0 }
 0x18c   :  { %v4746_v52 = vsel %vm3946_vm2, %v3175_v32, %v4346_v47  ;;  %6749 = vst.msk [vmem:[%s11325_s2 + $0x458] sm:$0xf] %vm6470_vm3, %v7956_v48  ;;  %v4549_v55 = vsel %vm3749_vm4, %v8366_v37, %v4149_v50  ;;  %v4147_v56 = vmul.f32 0.2, %v2378_v43  ;;  %v8886_v57 = vld [vmem:[%s11324_s0 + $0x2f8] sm:$0xff]   ;;  %vm3947_vm7 = vcmp.gt.f32.partialorder %v3178_v44, 0.0 }
 0x18d   :  { %v7954_v54 = vpack.c.bf16 %v4746_v52, %v4746_v52  ;;  %6547 = vst.msk [vmem:[%s11325_s2 + $0x130] sm:$0xf] %vm6470_vm3, %v7754_v51  ;;  %v7757_v58 = vpack.c.bf16 %v4549_v55, %v4549_v55  ;;  %v4749_v59 = vsel %vm3949_vm5, %v8566_v38, %v4349_v53  ;;  %v4347_v60 = vmul.f32 0.2, %v3178_v44  ;;  %v8369_v61 = vpop.f32.mrb[80].mxu0  ;;  %v8569_v62 = vpop.f32.mrb[80].mxu1  ;;  %8476 = vmatmul.mubr.msk.bf16.gmra.mrb[188].mxu0 %vm1436_vm0, %v8886_v57 }
 0x18e   :  { %v8887_v63 = vld [vmem:[%s11324_s0 + $0x618] sm:$0xff]   ;;  %v7957_v0 = vpack.c.bf16 %v4749_v59, %v4749_v59  ;;  %v4547_v1 = vsel %vm3747_vm6, %v2378_v43, %v4147_v56  ;;  %vm3752_vm8 = vcmp.gt.f32.partialorder %v8369_v61, 0.0  ;;  %v4152_v2 = vmul.f32 0.2, %v8369_v61  ;;  %v2391_v3 = vpop.f32.mrb[81].mxu0  ;;  %v3191_v4 = vpop.f32.mrb[81].mxu1 }
 0x18f   :  { %6747 = vst.msk [vmem:[%s11325_s2 + $0x450] sm:$0xf] %vm6470_vm3, %v7954_v54  ;;  %v8888_v5 = vld [vmem:[%s11324_s0 + $0x300] sm:$0xff]   ;;  %6550 = vst.msk [vmem:[%s11325_s2 + $0x13c] sm:$0xf] %vm6470_vm3, %v7757_v58  ;;  %v7755_v6 = vpack.c.bf16 %v4547_v1, %v4547_v1  ;;  %v4747_v7 = vsel %vm3947_vm7, %v3178_v44, %v4347_v60  ;;  %vm3952_vm9 = vcmp.gt.f32.partialorder %v8569_v62, 0.0  ;;  %8676 = vmatmul.mubr.msk.bf16.gmra.mrb[188].mxu1 %vm1436_vm0, %v8887_v63 }
 0x190   :  { %v4352_v8 = vmul.f32 0.2, %v8569_v62  ;;  %v8370_v9 = vpop.f32.mrb[82].mxu0  ;;  %v8570_v10 = vpop.f32.mrb[82].mxu1  ;;  %v8889_v11 = vld [vmem:[%s11324_s0 + $0x620] sm:$0xff]   ;;  %v7955_v12 = vpack.c.bf16 %v4747_v7, %v4747_v7  ;;  %v4552_v13 = vsel %vm3752_vm8, %v8369_v61, %v4152_v2  ;;  %vm3750_vm10 = vcmp.gt.f32.partialorder %v2391_v3, 0.0  ;;  %8479 = vmatprep.mubr.msk.bf16.mxu0 %vm1436_vm0, %v8888_v5 }
 0x191   :  { %6750 = vst.msk [vmem:[%s11325_s2 + $0x45c] sm:$0xf] %vm6470_vm3, %v7957_v0  ;;  %v4150_v14 = vmul.f32 0.2, %v2391_v3  ;;  %v2394_v15 = vpop.f32.mrb[83].mxu0  ;;  %v3194_v16 = vpop.f32.mrb[83].mxu1  ;;  %v7760_v17 = vpack.c.bf16 %v4552_v13, %v4552_v13  ;;  %8679 = vmatprep.mubr.msk.bf16.mxu1 %vm1436_vm0, %v8889_v11 }
 0x192   :  { %6548 = vst.msk [vmem:[%s11325_s2 + $0x134] sm:$0xf] %vm6470_vm3, %v7755_v6  ;;  %v4752_v18 = vsel %vm3952_vm9, %v8569_v62, %v4352_v8  ;;  %vm3950_vm11 = vcmp.gt.f32.partialorder %v3191_v4, 0.0  ;;  %v4350_v19 = vmul.f32 0.2, %v3191_v4  ;;  %vm3753_vm12 = vcmp.gt.f32.partialorder %v8370_v9, 0.0 }
 0x193   :  { %6748 = vst.msk [vmem:[%s11325_s2 + $0x454] sm:$0xf] %vm6470_vm3, %v7955_v12  ;;  %v7960_v20 = vpack.c.bf16 %v4752_v18, %v4752_v18  ;;  %v4550_v21 = vsel %vm3750_vm10, %v2391_v3, %v4150_v14  ;;  %v4153_v22 = vmul.f32 0.2, %v8370_v9  ;;  %6553 = vst.msk [vmem:[%s11325_s2 + $0x148] sm:$0xf] %vm6470_vm3, %v7760_v17 }
 0x194   :  { %v7758_v23 = vpack.c.bf16 %v4550_v21, %v4550_v21  ;;  %v4750_v24 = vsel %vm3950_vm11, %v3191_v4, %v4350_v19  ;;  %vm3953_vm13 = vcmp.gt.f32.partialorder %v8570_v10, 0.0  ;;  %v4353_v25 = vmul.f32 0.2, %v8570_v10  ;;  %v8890_v29 = vld [vmem:[%s11324_s0 + $0x308] sm:$0xff]   ;;  %v8373_v33 = vpop.f32.mrb[84].mxu0  ;;  %v8573_v34 = vpop.f32.mrb[84].mxu1 }
 0x195   :  { %6753 = vst.msk [vmem:[%s11325_s2 + $0x468] sm:$0xf] %vm6470_vm3, %v7960_v20  ;;  %v7958_v26 = vpack.c.bf16 %v4750_v24, %v4750_v24  ;;  %v4553_v27 = vsel %vm3753_vm12, %v8370_v9, %v4153_v22  ;;  %vm3751_vm14 = vcmp.gt.f32.partialorder %v2394_v15, 0.0  ;;  %v4151_v28 = vmul.f32 0.2, %v2394_v15  ;;  %v8891_v35 = vld [vmem:[%s11324_s0 + $0x628] sm:$0xff]   ;;  %8480 = vmatmul.mubr.msk.bf16.gmra.mrb[192].mxu0 %vm1436_vm0, %v8890_v29 }
 0x196   :  { %6551 = vst.msk [vmem:[%s11325_s2 + $0x140] sm:$0xf] %vm6470_vm3, %v7758_v23  ;;  %v7761_v30 = vpack.c.bf16 %v4553_v27, %v4553_v27  ;;  %v4753_v31 = vsel %vm3953_vm13, %v8570_v10, %v4353_v25  ;;  %vm3951_vm15 = vcmp.gt.f32.partialorder %v3194_v16, 0.0  ;;  %v4351_v32 = vmul.f32 0.2, %v3194_v16  ;;  %v2407_v39 = vpop.f32.mrb[85].mxu0 }
 0x197   :  { %6751 = vst.msk [vmem:[%s11325_s2 + $0x460] sm:$0xf] %vm6470_vm3, %v7958_v26  ;;  %v7961_v36 = vpack.c.bf16 %v4753_v31, %v4753_v31  ;;  %v4551_v37 = vsel %vm3751_vm14, %v2394_v15, %v4151_v28  ;;  %vm3756_vm1 = vcmp.gt.f32.partialorder %v8373_v33, 0.0  ;;  %v4156_v38 = vmul.f32 0.2, %v8373_v33  ;;  %v3207_v40 = vpop.f32.mrb[85].mxu1  ;;  %8680 = vmatmul.mubr.msk.bf16.gmra.mrb[192].mxu1 %vm1436_vm0, %v8891_v35 }
 0x198   :  { %v8892_v41 = vld [vmem:[%s11324_s0 + $0x310] sm:$0xff]   ;;  %6554 = vst.msk [vmem:[%s11325_s2 + $0x14c] sm:$0xf] %vm6470_vm3, %v7761_v30  ;;  %v7759_v42 = vpack.c.bf16 %v4551_v37, %v4551_v37  ;;  %v4751_v43 = vsel %vm3951_vm15, %v3194_v16, %v4351_v32  ;;  %vm3956_vm2 = vcmp.gt.f32.partialorder %v8573_v34, 0.0  ;;  %v4356_v44 = vmul.f32 0.2, %v8573_v34 }
 0x199   :  { %v8374_v45 = vpop.f32.mrb[86].mxu0  ;;  %v8574_v46 = vpop.f32.mrb[86].mxu1  ;;  %v8893_v47 = vld [vmem:[%s11324_s0 + $0x630] sm:$0xff]   ;;  %6754 = vst.msk [vmem:[%s11325_s2 + $0x46c] sm:$0xf] %vm6470_vm3, %v7961_v36  ;;  %v7959_v48 = vpack.c.bf16 %v4751_v43, %v4751_v43  ;;  %v4556_v49 = vsel %vm3756_vm1, %v8373_v33, %v4156_v38  ;;  %vm3754_vm4 = vcmp.gt.f32.partialorder %v2407_v39, 0.0  ;;  %8483 = vmatprep.mubr.msk.bf16.mxu0 %vm1436_vm0, %v8892_v41 }
 0x19a   :  { %v4154_v50 = vmul.f32 0.2, %v2407_v39  ;;  %v2410_v51 = vpop.f32.mrb[87].mxu0  ;;  %v3210_v52 = vpop.f32.mrb[87].mxu1  ;;  %6552 = vst.msk [vmem:[%s11325_s2 + $0x144] sm:$0xf] %vm6470_vm3, %v7759_v42  ;;  %v7764_v53 = vpack.c.bf16 %v4556_v49, %v4556_v49  ;;  %v4756_v54 = vsel %vm3956_vm2, %v8573_v34, %v4356_v44  ;;  %8683 = vmatprep.mubr.msk.bf16.mxu1 %vm1436_vm0, %v8893_v47 }
 0x19b   :  { %vm3954_vm5 = vcmp.gt.f32.partialorder %v3207_v40, 0.0  ;;  %v4354_v55 = vmul.f32 0.2, %v3207_v40  ;;  %6752 = vst.msk [vmem:[%s11325_s2 + $0x464] sm:$0xf] %vm6470_vm3, %v7959_v48  ;;  %v7964_v56 = vpack.c.bf16 %v4756_v54, %v4756_v54  ;;  %vm3757_vm6 = vcmp.gt.f32.partialorder %v8374_v45, 0.0 }
 0x19c   :  { %v4554_v57 = vsel %vm3754_vm4, %v2407_v39, %v4154_v50  ;;  %v4157_v58 = vmul.f32 0.2, %v8374_v45  ;;  %6557 = vst.msk [vmem:[%s11325_s2 + $0x158] sm:$0xf] %vm6470_vm3, %v7764_v53  ;;  %vm3957_vm7 = vcmp.gt.f32.partialorder %v8574_v46, 0.0  ;;  %vm3755_vm8 = vcmp.gt.f32.partialorder %v2410_v51, 0.0 }
 0x19d   :  { %v7762_v59 = vpack.c.bf16 %v4554_v57, %v4554_v57  ;;  %v4754_v60 = vsel %vm3954_vm5, %v3207_v40, %v4354_v55  ;;  %v4357_v61 = vmul.f32 0.2, %v8574_v46  ;;  %6757 = vst.msk [vmem:[%s11325_s2 + $0x478] sm:$0xf] %vm6470_vm3, %v7964_v56  ;;  %v4155_v0 = vmul.f32 0.2, %v2410_v51 }
 0x19e   :  { %v7962_v62 = vpack.c.bf16 %v4754_v60, %v4754_v60  ;;  %v4557_v63 = vsel %vm3757_vm6, %v8374_v45, %v4157_v58  ;;  %vm3955_vm9 = vcmp.gt.f32.partialorder %v3210_v52, 0.0  ;;  %v4355_v3 = vmul.f32 0.2, %v3210_v52  ;;  %v8377_v4 = vpop.f32.mrb[88].mxu0  ;;  %v8577_v5 = vpop.f32.mrb[88].mxu1  ;;  %v8894_v6 = vld [vmem:[%s11324_s0 + $0x318] sm:$0xff]  }
 0x19f   :  { %6555 = vst.msk [vmem:[%s11325_s2 + $0x150] sm:$0xf] %vm6470_vm3, %v7762_v59  ;;  %v7765_v1 = vpack.c.bf16 %v4557_v63, %v4557_v63  ;;  %v4757_v2 = vsel %vm3957_vm7, %v8574_v46, %v4357_v61  ;;  %v4555_v8 = vsel %vm3755_vm8, %v2410_v51, %v4155_v0  ;;  %vm3760_vm10 = vcmp.gt.f32.partialorder %v8377_v4, 0.0  ;;  %v2423_v10 = vpop.f32.mrb[89].mxu0  ;;  %v3223_v11 = vpop.f32.mrb[89].mxu1  ;;  %v8895_v12 = vld [vmem:[%s11324_s0 + $0x638] sm:$0xff]   ;;  %8484 = vmatmul.mubr.msk.bf16.gmra.mrb[196].mxu0 %vm1436_vm0, %v8894_v6 }
 0x1a0   :  { %6755 = vst.msk [vmem:[%s11325_s2 + $0x470] sm:$0xf] %vm6470_vm3, %v7962_v62  ;;  %v7965_v7 = vpack.c.bf16 %v4757_v2, %v4757_v2  ;;  %v4160_v9 = vmul.f32 0.2, %v8377_v4  ;;  %v7763_v13 = vpack.c.bf16 %v4555_v8, %v4555_v8  ;;  %v4755_v14 = vsel %vm3955_vm9, %v3210_v52, %v4355_v3  ;;  %v8378_v16 = vpop.f32.mrb[90].mxu0  ;;  %v8578_v17 = vpop.f32.mrb[90].mxu1  ;;  %8684 = vmatmul.mubr.msk.bf16.gmra.mrb[196].mxu1 %vm1436_vm0, %v8895_v12 }
 0x1a1   :  { %6558 = vst.msk [vmem:[%s11325_s2 + $0x15c] sm:$0xf] %vm6470_vm3, %v7765_v1  ;;  %vm3960_vm11 = vcmp.gt.f32.partialorder %v8577_v5, 0.0  ;;  %v4360_v15 = vmul.f32 0.2, %v8577_v5  ;;  %v7963_v18 = vpack.c.bf16 %v4755_v14, %v4755_v14  ;;  %vm3758_vm12 = vcmp.gt.f32.partialorder %v2423_v10, 0.0 }
 0x1a2   :  { %6758 = vst.msk [vmem:[%s11325_s2 + $0x47c] sm:$0xf] %vm6470_vm3, %v7965_v7  ;;  %v4560_v19 = vsel %vm3760_vm10, %v8377_v4, %v4160_v9  ;;  %v4158_v20 = vmul.f32 0.2, %v2423_v10  ;;  %v2426_v21 = vpop.f32.mrb[91].mxu0  ;;  %v3226_v22 = vpop.f32.mrb[91].mxu1 }
 0x1a3   :  { %6556 = vst.msk [vmem:[%s11325_s2 + $0x154] sm:$0xf] %vm6470_vm3, %v7763_v13  ;;  %v7768_v23 = vpack.c.bf16 %v4560_v19, %v4560_v19  ;;  %v4760_v24 = vsel %vm3960_vm11, %v8577_v5, %v4360_v15  ;;  %vm3958_vm13 = vcmp.gt.f32.partialorder %v3223_v11, 0.0  ;;  %v4358_v25 = vmul.f32 0.2, %v3223_v11  ;;  %v8381_v38 = vpop.f32.mrb[92].mxu0 }
 0x1a4   :  { %6756 = vst.msk [vmem:[%s11325_s2 + $0x474] sm:$0xf] %vm6470_vm3, %v7963_v18  ;;  %v7968_v26 = vpack.c.bf16 %v4760_v24, %v4760_v24  ;;  %v4558_v27 = vsel %vm3758_vm12, %v2423_v10, %v4158_v20  ;;  %vm3761_vm14 = vcmp.gt.f32.partialorder %v8378_v16, 0.0  ;;  %v4161_v28 = vmul.f32 0.2, %v8378_v16  ;;  %v8581_v39 = vpop.f32.mrb[92].mxu1 }
 0x1a5   :  { %6561 = vst.msk [vmem:[%s11325_s2 + $0x168] sm:$0xf] %vm6470_vm3, %v7768_v23  ;;  %v7766_v29 = vpack.c.bf16 %v4558_v27, %v4558_v27  ;;  %v4758_v30 = vsel %vm3958_vm13, %v3223_v11, %v4358_v25  ;;  %vm3961_vm15 = vcmp.gt.f32.partialorder %v8578_v17, 0.0  ;;  %v4361_v31 = vmul.f32 0.2, %v8578_v17  ;;  %v2439_v43 = vpop.f32.mrb[93].mxu0 }
 0x1a6   :  { %6761 = vst.msk [vmem:[%s11325_s2 + $0x488] sm:$0xf] %vm6470_vm3, %v7968_v26  ;;  %v7966_v32 = vpack.c.bf16 %v4758_v30, %v4758_v30  ;;  %v4561_v33 = vsel %vm3761_vm14, %v8378_v16, %v4161_v28  ;;  %vm3759_vm1 = vcmp.gt.f32.partialorder %v2426_v21, 0.0  ;;  %v4159_v34 = vmul.f32 0.2, %v2426_v21  ;;  %v3239_v44 = vpop.f32.mrb[93].mxu1 }
 0x1a7   :  { %6559 = vst.msk [vmem:[%s11325_s2 + $0x160] sm:$0xf] %vm6470_vm3, %v7766_v29  ;;  %v7769_v35 = vpack.c.bf16 %v4561_v33, %v4561_v33  ;;  %v4761_v36 = vsel %vm3961_vm15, %v8578_v17, %v4361_v31  ;;  %vm3959_vm0 = vcmp.gt.f32.partialorder %v3226_v22, 0.0  ;;  %v4359_v37 = vmul.f32 0.2, %v3226_v22  ;;  %v8382_v48 = vpop.f32.mrb[94].mxu0 }
 0x1a8   :  { %6759 = vst.msk [vmem:[%s11325_s2 + $0x480] sm:$0xf] %vm6470_vm3, %v7966_v32  ;;  %v7969_v40 = vpack.c.bf16 %v4761_v36, %v4761_v36  ;;  %v4559_v41 = vsel %vm3759_vm1, %v2426_v21, %v4159_v34  ;;  %vm3764_vm2 = vcmp.gt.f32.partialorder %v8381_v38, 0.0  ;;  %v4164_v42 = vmul.f32 0.2, %v8381_v38  ;;  %v8582_v49 = vpop.f32.mrb[94].mxu1 }
 0x1a9   :  { %6562 = vst.msk [vmem:[%s11325_s2 + $0x16c] sm:$0xf] %vm6470_vm3, %v7769_v35  ;;  %v7767_v45 = vpack.c.bf16 %v4559_v41, %v4559_v41  ;;  %v4759_v46 = vsel %vm3959_vm0, %v3226_v22, %v4359_v37  ;;  %vm3964_vm4 = vcmp.gt.f32.partialorder %v8581_v39, 0.0  ;;  %v4364_v47 = vmul.f32 0.2, %v8581_v39  ;;  %v2442_v53 = vpop.f32.mrb[95].mxu0 }
 0x1aa   :  { %6762 = vst.msk [vmem:[%s11325_s2 + $0x48c] sm:$0xf] %vm6470_vm3, %v7969_v40  ;;  %v7967_v50 = vpack.c.bf16 %v4759_v46, %v4759_v46  ;;  %v4564_v51 = vsel %vm3764_vm2, %v8381_v38, %v4164_v42  ;;  %vm3762_vm5 = vcmp.gt.f32.partialorder %v2439_v43, 0.0  ;;  %v4162_v52 = vmul.f32 0.2, %v2439_v43  ;;  %v3242_v54 = vpop.f32.mrb[95].mxu1 }
 0x1ab   :  { %6560 = vst.msk [vmem:[%s11325_s2 + $0x164] sm:$0xf] %vm6470_vm3, %v7767_v45  ;;  %v7772_v55 = vpack.c.bf16 %v4564_v51, %v4564_v51  ;;  %v4764_v56 = vsel %vm3964_vm4, %v8581_v39, %v4364_v47  ;;  %vm3962_vm6 = vcmp.gt.f32.partialorder %v3239_v44, 0.0  ;;  %v4362_v57 = vmul.f32 0.2, %v3239_v44  ;;  %v8385_v6 = vpop.f32.mrb[96].mxu0 }
 0x1ac   :  { %6760 = vst.msk [vmem:[%s11325_s2 + $0x484] sm:$0xf] %vm6470_vm3, %v7967_v50  ;;  %v7972_v58 = vpack.c.bf16 %v4764_v56, %v4764_v56  ;;  %v4562_v59 = vsel %vm3762_vm5, %v2439_v43, %v4162_v52  ;;  %vm3765_vm7 = vcmp.gt.f32.partialorder %v8382_v48, 0.0  ;;  %v4165_v60 = vmul.f32 0.2, %v8382_v48  ;;  %v8585_v7 = vpop.f32.mrb[96].mxu1 }
 0x1ad   :  { %6565 = vst.msk [vmem:[%s11325_s2 + $0x178] sm:$0xf] %vm6470_vm3, %v7772_v55  ;;  %v7770_v61 = vpack.c.bf16 %v4562_v59, %v4562_v59  ;;  %v4762_v62 = vsel %vm3962_vm6, %v3239_v44, %v4362_v57  ;;  %vm3965_vm8 = vcmp.gt.f32.partialorder %v8582_v49, 0.0  ;;  %v4365_v63 = vmul.f32 0.2, %v8582_v49  ;;  %v2455_v11 = vpop.f32.mrb[97].mxu0 }
 0x1ae   :  { %6765 = vst.msk [vmem:[%s11325_s2 + $0x498] sm:$0xf] %vm6470_vm3, %v7972_v58  ;;  %v7970_v0 = vpack.c.bf16 %v4762_v62, %v4762_v62  ;;  %v4565_v1 = vsel %vm3765_vm7, %v8382_v48, %v4165_v60  ;;  %vm3763_vm9 = vcmp.gt.f32.partialorder %v2442_v53, 0.0  ;;  %v4163_v2 = vmul.f32 0.2, %v2442_v53  ;;  %v3255_v12 = vpop.f32.mrb[97].mxu1 }
 0x1af   :  { %6563 = vst.msk [vmem:[%s11325_s2 + $0x170] sm:$0xf] %vm6470_vm3, %v7770_v61  ;;  %v7773_v3 = vpack.c.bf16 %v4565_v1, %v4565_v1  ;;  %v4765_v4 = vsel %vm3965_vm8, %v8582_v49, %v4365_v63  ;;  %vm3963_vm10 = vcmp.gt.f32.partialorder %v3242_v54, 0.0  ;;  %v4363_v5 = vmul.f32 0.2, %v3242_v54  ;;  %v8386_v16 = vpop.f32.mrb[98].mxu0 }
 0x1b0   :  { %6763 = vst.msk [vmem:[%s11325_s2 + $0x490] sm:$0xf] %vm6470_vm3, %v7970_v0  ;;  %v7973_v8 = vpack.c.bf16 %v4765_v4, %v4765_v4  ;;  %v4563_v9 = vsel %vm3763_vm9, %v2442_v53, %v4163_v2  ;;  %vm3768_vm11 = vcmp.gt.f32.partialorder %v8385_v6, 0.0  ;;  %v4168_v10 = vmul.f32 0.2, %v8385_v6  ;;  %v8586_v17 = vpop.f32.mrb[98].mxu1 }
 0x1b1   :  { %6566 = vst.msk [vmem:[%s11325_s2 + $0x17c] sm:$0xf] %vm6470_vm3, %v7773_v3  ;;  %v7771_v13 = vpack.c.bf16 %v4563_v9, %v4563_v9  ;;  %v4763_v14 = vsel %vm3963_vm10, %v3242_v54, %v4363_v5  ;;  %vm3968_vm12 = vcmp.gt.f32.partialorder %v8585_v7, 0.0  ;;  %v4368_v15 = vmul.f32 0.2, %v8585_v7  ;;  %v2458_v21 = vpop.f32.mrb[99].mxu0 }
 0x1b2   :  { %6766 = vst.msk [vmem:[%s11325_s2 + $0x49c] sm:$0xf] %vm6470_vm3, %v7973_v8  ;;  %v7971_v18 = vpack.c.bf16 %v4763_v14, %v4763_v14  ;;  %v4568_v19 = vsel %vm3768_vm11, %v8385_v6, %v4168_v10  ;;  %vm3766_vm13 = vcmp.gt.f32.partialorder %v2455_v11, 0.0  ;;  %v4166_v20 = vmul.f32 0.2, %v2455_v11  ;;  %v3258_v22 = vpop.f32.mrb[99].mxu1 }
 0x1b3   :  { %6564 = vst.msk [vmem:[%s11325_s2 + $0x174] sm:$0xf] %vm6470_vm3, %v7771_v13  ;;  %v7776_v23 = vpack.c.bf16 %v4568_v19, %v4568_v19  ;;  %v4768_v24 = vsel %vm3968_vm12, %v8585_v7, %v4368_v15  ;;  %vm3966_vm14 = vcmp.gt.f32.partialorder %v3255_v12, 0.0  ;;  %v4366_v25 = vmul.f32 0.2, %v3255_v12  ;;  %v8389_v38 = vpop.f32.mrb[100].mxu0 }
 0x1b4   :  { %6764 = vst.msk [vmem:[%s11325_s2 + $0x494] sm:$0xf] %vm6470_vm3, %v7971_v18  ;;  %v7976_v26 = vpack.c.bf16 %v4768_v24, %v4768_v24  ;;  %v4566_v27 = vsel %vm3766_vm13, %v2455_v11, %v4166_v20  ;;  %vm3769_vm15 = vcmp.gt.f32.partialorder %v8386_v16, 0.0  ;;  %v4169_v28 = vmul.f32 0.2, %v8386_v16  ;;  %v8589_v39 = vpop.f32.mrb[100].mxu1 }
 0x1b5   :  { %6569 = vst.msk [vmem:[%s11325_s2 + $0x188] sm:$0xf] %vm6470_vm3, %v7776_v23  ;;  %v7774_v29 = vpack.c.bf16 %v4566_v27, %v4566_v27  ;;  %v4766_v30 = vsel %vm3966_vm14, %v3255_v12, %v4366_v25  ;;  %vm3969_vm1 = vcmp.gt.f32.partialorder %v8586_v17, 0.0  ;;  %v4369_v31 = vmul.f32 0.2, %v8586_v17  ;;  %v2471_v43 = vpop.f32.mrb[101].mxu0 }
 0x1b6   :  { %6769 = vst.msk [vmem:[%s11325_s2 + $0x4a8] sm:$0xf] %vm6470_vm3, %v7976_v26  ;;  %v7974_v32 = vpack.c.bf16 %v4766_v30, %v4766_v30  ;;  %v4569_v33 = vsel %vm3769_vm15, %v8386_v16, %v4169_v28  ;;  %vm3767_vm0 = vcmp.gt.f32.partialorder %v2458_v21, 0.0  ;;  %v4167_v34 = vmul.f32 0.2, %v2458_v21  ;;  %v3271_v44 = vpop.f32.mrb[101].mxu1 }
 0x1b7   :  { %6567 = vst.msk [vmem:[%s11325_s2 + $0x180] sm:$0xf] %vm6470_vm3, %v7774_v29  ;;  %v7777_v35 = vpack.c.bf16 %v4569_v33, %v4569_v33  ;;  %v4769_v36 = vsel %vm3969_vm1, %v8586_v17, %v4369_v31  ;;  %vm3967_vm2 = vcmp.gt.f32.partialorder %v3258_v22, 0.0  ;;  %v4367_v37 = vmul.f32 0.2, %v3258_v22  ;;  %v8390_v48 = vpop.f32.mrb[102].mxu0 }
 0x1b8   :  { %6767 = vst.msk [vmem:[%s11325_s2 + $0x4a0] sm:$0xf] %vm6470_vm3, %v7974_v32  ;;  %v7977_v40 = vpack.c.bf16 %v4769_v36, %v4769_v36  ;;  %v4567_v41 = vsel %vm3767_vm0, %v2458_v21, %v4167_v34  ;;  %vm3772_vm4 = vcmp.gt.f32.partialorder %v8389_v38, 0.0  ;;  %v4172_v42 = vmul.f32 0.2, %v8389_v38  ;;  %v8590_v49 = vpop.f32.mrb[102].mxu1 }
 0x1b9   :  { %6570 = vst.msk [vmem:[%s11325_s2 + $0x18c] sm:$0xf] %vm6470_vm3, %v7777_v35  ;;  %v7775_v45 = vpack.c.bf16 %v4567_v41, %v4567_v41  ;;  %v4767_v46 = vsel %vm3967_vm2, %v3258_v22, %v4367_v37  ;;  %vm3972_vm5 = vcmp.gt.f32.partialorder %v8589_v39, 0.0  ;;  %v4372_v47 = vmul.f32 0.2, %v8589_v39  ;;  %v2474_v53 = vpop.f32.mrb[103].mxu0 }
 0x1ba   :  { %6770 = vst.msk [vmem:[%s11325_s2 + $0x4ac] sm:$0xf] %vm6470_vm3, %v7977_v40  ;;  %v7975_v50 = vpack.c.bf16 %v4767_v46, %v4767_v46  ;;  %v4572_v51 = vsel %vm3772_vm4, %v8389_v38, %v4172_v42  ;;  %vm3770_vm6 = vcmp.gt.f32.partialorder %v2471_v43, 0.0  ;;  %v4170_v52 = vmul.f32 0.2, %v2471_v43  ;;  %v3274_v54 = vpop.f32.mrb[103].mxu1 }
 0x1bb   :  { %6568 = vst.msk [vmem:[%s11325_s2 + $0x184] sm:$0xf] %vm6470_vm3, %v7775_v45  ;;  %v7780_v55 = vpack.c.bf16 %v4572_v51, %v4572_v51  ;;  %v4772_v56 = vsel %vm3972_vm5, %v8589_v39, %v4372_v47  ;;  %vm3970_vm7 = vcmp.gt.f32.partialorder %v3271_v44, 0.0  ;;  %v4370_v57 = vmul.f32 0.2, %v3271_v44  ;;  %v8393_v6 = vpop.f32.mrb[104].mxu0 }
 0x1bc   :  { %6768 = vst.msk [vmem:[%s11325_s2 + $0x4a4] sm:$0xf] %vm6470_vm3, %v7975_v50  ;;  %v7980_v58 = vpack.c.bf16 %v4772_v56, %v4772_v56  ;;  %v4570_v59 = vsel %vm3770_vm6, %v2471_v43, %v4170_v52  ;;  %vm3773_vm8 = vcmp.gt.f32.partialorder %v8390_v48, 0.0  ;;  %v4173_v60 = vmul.f32 0.2, %v8390_v48  ;;  %v8593_v7 = vpop.f32.mrb[104].mxu1 }
 0x1bd   :  { %6573 = vst.msk [vmem:[%s11325_s2 + $0x198] sm:$0xf] %vm6470_vm3, %v7780_v55  ;;  %v7778_v61 = vpack.c.bf16 %v4570_v59, %v4570_v59  ;;  %v4770_v62 = vsel %vm3970_vm7, %v3271_v44, %v4370_v57  ;;  %vm3973_vm9 = vcmp.gt.f32.partialorder %v8590_v49, 0.0  ;;  %v4373_v63 = vmul.f32 0.2, %v8590_v49  ;;  %v2487_v11 = vpop.f32.mrb[105].mxu0 }
 0x1be   :  { %6773 = vst.msk [vmem:[%s11325_s2 + $0x4b8] sm:$0xf] %vm6470_vm3, %v7980_v58  ;;  %v7978_v0 = vpack.c.bf16 %v4770_v62, %v4770_v62  ;;  %v4573_v1 = vsel %vm3773_vm8, %v8390_v48, %v4173_v60  ;;  %vm3771_vm10 = vcmp.gt.f32.partialorder %v2474_v53, 0.0  ;;  %v4171_v2 = vmul.f32 0.2, %v2474_v53  ;;  %v3287_v12 = vpop.f32.mrb[105].mxu1 }
 0x1bf   :  { %6571 = vst.msk [vmem:[%s11325_s2 + $0x190] sm:$0xf] %vm6470_vm3, %v7778_v61  ;;  %v7781_v3 = vpack.c.bf16 %v4573_v1, %v4573_v1  ;;  %v4773_v4 = vsel %vm3973_vm9, %v8590_v49, %v4373_v63  ;;  %vm3971_vm11 = vcmp.gt.f32.partialorder %v3274_v54, 0.0  ;;  %v4371_v5 = vmul.f32 0.2, %v3274_v54  ;;  %v8394_v16 = vpop.f32.mrb[106].mxu0 }
 0x1c0   :  { %6771 = vst.msk [vmem:[%s11325_s2 + $0x4b0] sm:$0xf] %vm6470_vm3, %v7978_v0  ;;  %v7981_v8 = vpack.c.bf16 %v4773_v4, %v4773_v4  ;;  %v4571_v9 = vsel %vm3771_vm10, %v2474_v53, %v4171_v2  ;;  %vm3776_vm12 = vcmp.gt.f32.partialorder %v8393_v6, 0.0  ;;  %v4176_v10 = vmul.f32 0.2, %v8393_v6  ;;  %v8594_v17 = vpop.f32.mrb[106].mxu1 }
 0x1c1   :  { %6574 = vst.msk [vmem:[%s11325_s2 + $0x19c] sm:$0xf] %vm6470_vm3, %v7781_v3  ;;  %v7779_v13 = vpack.c.bf16 %v4571_v9, %v4571_v9  ;;  %v4771_v14 = vsel %vm3971_vm11, %v3274_v54, %v4371_v5  ;;  %vm3976_vm13 = vcmp.gt.f32.partialorder %v8593_v7, 0.0  ;;  %v4376_v15 = vmul.f32 0.2, %v8593_v7  ;;  %v2490_v21 = vpop.f32.mrb[107].mxu0 }
 0x1c2   :  { %6774 = vst.msk [vmem:[%s11325_s2 + $0x4bc] sm:$0xf] %vm6470_vm3, %v7981_v8  ;;  %v7979_v18 = vpack.c.bf16 %v4771_v14, %v4771_v14  ;;  %v4576_v19 = vsel %vm3776_vm12, %v8393_v6, %v4176_v10  ;;  %vm3774_vm14 = vcmp.gt.f32.partialorder %v2487_v11, 0.0  ;;  %v4174_v20 = vmul.f32 0.2, %v2487_v11  ;;  %v3290_v22 = vpop.f32.mrb[107].mxu1 }
 0x1c3   :  { %6572 = vst.msk [vmem:[%s11325_s2 + $0x194] sm:$0xf] %vm6470_vm3, %v7779_v13  ;;  %v7784_v23 = vpack.c.bf16 %v4576_v19, %v4576_v19  ;;  %v4776_v24 = vsel %vm3976_vm13, %v8593_v7, %v4376_v15  ;;  %vm3974_vm15 = vcmp.gt.f32.partialorder %v3287_v12, 0.0  ;;  %v4374_v25 = vmul.f32 0.2, %v3287_v12  ;;  %v8397_v38 = vpop.f32.mrb[108].mxu0 }
 0x1c4   :  { %6772 = vst.msk [vmem:[%s11325_s2 + $0x4b4] sm:$0xf] %vm6470_vm3, %v7979_v18  ;;  %v7984_v26 = vpack.c.bf16 %v4776_v24, %v4776_v24  ;;  %v4574_v27 = vsel %vm3774_vm14, %v2487_v11, %v4174_v20  ;;  %vm3777_vm1 = vcmp.gt.f32.partialorder %v8394_v16, 0.0  ;;  %v4177_v28 = vmul.f32 0.2, %v8394_v16  ;;  %v8597_v39 = vpop.f32.mrb[108].mxu1 }
 0x1c5   :  { %6577 = vst.msk [vmem:[%s11325_s2 + $0x1a8] sm:$0xf] %vm6470_vm3, %v7784_v23  ;;  %v7782_v29 = vpack.c.bf16 %v4574_v27, %v4574_v27  ;;  %v4774_v30 = vsel %vm3974_vm15, %v3287_v12, %v4374_v25  ;;  %vm3977_vm0 = vcmp.gt.f32.partialorder %v8594_v17, 0.0  ;;  %v4377_v31 = vmul.f32 0.2, %v8594_v17  ;;  %v2503_v43 = vpop.f32.mrb[109].mxu0 }
 0x1c6   :  { %6777 = vst.msk [vmem:[%s11325_s2 + $0x4c8] sm:$0xf] %vm6470_vm3, %v7984_v26  ;;  %v7982_v32 = vpack.c.bf16 %v4774_v30, %v4774_v30  ;;  %v4577_v33 = vsel %vm3777_vm1, %v8394_v16, %v4177_v28  ;;  %vm3775_vm2 = vcmp.gt.f32.partialorder %v2490_v21, 0.0  ;;  %v4175_v34 = vmul.f32 0.2, %v2490_v21  ;;  %v3303_v44 = vpop.f32.mrb[109].mxu1 }
 0x1c7   :  { %6575 = vst.msk [vmem:[%s11325_s2 + $0x1a0] sm:$0xf] %vm6470_vm3, %v7782_v29  ;;  %v7785_v35 = vpack.c.bf16 %v4577_v33, %v4577_v33  ;;  %v4777_v36 = vsel %vm3977_vm0, %v8594_v17, %v4377_v31  ;;  %vm3975_vm4 = vcmp.gt.f32.partialorder %v3290_v22, 0.0  ;;  %v4375_v37 = vmul.f32 0.2, %v3290_v22  ;;  %v8398_v48 = vpop.f32.mrb[110].mxu0 }
 0x1c8   :  { %6775 = vst.msk [vmem:[%s11325_s2 + $0x4c0] sm:$0xf] %vm6470_vm3, %v7982_v32  ;;  %v7985_v40 = vpack.c.bf16 %v4777_v36, %v4777_v36  ;;  %v4575_v41 = vsel %vm3775_vm2, %v2490_v21, %v4175_v34  ;;  %vm3780_vm5 = vcmp.gt.f32.partialorder %v8397_v38, 0.0  ;;  %v4180_v42 = vmul.f32 0.2, %v8397_v38  ;;  %v8598_v49 = vpop.f32.mrb[110].mxu1 }
 0x1c9   :  { %6578 = vst.msk [vmem:[%s11325_s2 + $0x1ac] sm:$0xf] %vm6470_vm3, %v7785_v35  ;;  %v7783_v45 = vpack.c.bf16 %v4575_v41, %v4575_v41  ;;  %v4775_v46 = vsel %vm3975_vm4, %v3290_v22, %v4375_v37  ;;  %vm3980_vm6 = vcmp.gt.f32.partialorder %v8597_v39, 0.0  ;;  %v4380_v47 = vmul.f32 0.2, %v8597_v39  ;;  %v2506_v53 = vpop.f32.mrb[111].mxu0 }
 0x1ca   :  { %6778 = vst.msk [vmem:[%s11325_s2 + $0x4cc] sm:$0xf] %vm6470_vm3, %v7985_v40  ;;  %v7983_v50 = vpack.c.bf16 %v4775_v46, %v4775_v46  ;;  %v4580_v51 = vsel %vm3780_vm5, %v8397_v38, %v4180_v42  ;;  %vm3778_vm7 = vcmp.gt.f32.partialorder %v2503_v43, 0.0  ;;  %v4178_v52 = vmul.f32 0.2, %v2503_v43  ;;  %v3306_v54 = vpop.f32.mrb[111].mxu1 }
 0x1cb   :  { %6576 = vst.msk [vmem:[%s11325_s2 + $0x1a4] sm:$0xf] %vm6470_vm3, %v7783_v45  ;;  %v7788_v55 = vpack.c.bf16 %v4580_v51, %v4580_v51  ;;  %v4780_v56 = vsel %vm3980_vm6, %v8597_v39, %v4380_v47  ;;  %vm3978_vm8 = vcmp.gt.f32.partialorder %v3303_v44, 0.0  ;;  %v4378_v57 = vmul.f32 0.2, %v3303_v44  ;;  %v8401_v6 = vpop.f32.mrb[112].mxu0 }
 0x1cc   :  { %6776 = vst.msk [vmem:[%s11325_s2 + $0x4c4] sm:$0xf] %vm6470_vm3, %v7983_v50  ;;  %v7988_v58 = vpack.c.bf16 %v4780_v56, %v4780_v56  ;;  %v4578_v59 = vsel %vm3778_vm7, %v2503_v43, %v4178_v52  ;;  %vm3781_vm9 = vcmp.gt.f32.partialorder %v8398_v48, 0.0  ;;  %v4181_v60 = vmul.f32 0.2, %v8398_v48  ;;  %v8601_v7 = vpop.f32.mrb[112].mxu1 }
 0x1cd   :  { %6581 = vst.msk [vmem:[%s11325_s2 + $0x1b8] sm:$0xf] %vm6470_vm3, %v7788_v55  ;;  %v7786_v61 = vpack.c.bf16 %v4578_v59, %v4578_v59  ;;  %v4778_v62 = vsel %vm3978_vm8, %v3303_v44, %v4378_v57  ;;  %vm3981_vm10 = vcmp.gt.f32.partialorder %v8598_v49, 0.0  ;;  %v4381_v63 = vmul.f32 0.2, %v8598_v49  ;;  %v2519_v11 = vpop.f32.mrb[113].mxu0 }
 0x1ce   :  { %6781 = vst.msk [vmem:[%s11325_s2 + $0x4d8] sm:$0xf] %vm6470_vm3, %v7988_v58  ;;  %v7986_v0 = vpack.c.bf16 %v4778_v62, %v4778_v62  ;;  %v4581_v1 = vsel %vm3781_vm9, %v8398_v48, %v4181_v60  ;;  %vm3779_vm11 = vcmp.gt.f32.partialorder %v2506_v53, 0.0  ;;  %v4179_v2 = vmul.f32 0.2, %v2506_v53  ;;  %v3319_v12 = vpop.f32.mrb[113].mxu1 }
 0x1cf   :  { %6579 = vst.msk [vmem:[%s11325_s2 + $0x1b0] sm:$0xf] %vm6470_vm3, %v7786_v61  ;;  %v7789_v3 = vpack.c.bf16 %v4581_v1, %v4581_v1  ;;  %v4781_v4 = vsel %vm3981_vm10, %v8598_v49, %v4381_v63  ;;  %vm3979_vm12 = vcmp.gt.f32.partialorder %v3306_v54, 0.0  ;;  %v4379_v5 = vmul.f32 0.2, %v3306_v54  ;;  %v8402_v16 = vpop.f32.mrb[114].mxu0 }
 0x1d0   :  { %6779 = vst.msk [vmem:[%s11325_s2 + $0x4d0] sm:$0xf] %vm6470_vm3, %v7986_v0  ;;  %v7989_v8 = vpack.c.bf16 %v4781_v4, %v4781_v4  ;;  %v4579_v9 = vsel %vm3779_vm11, %v2506_v53, %v4179_v2  ;;  %vm3784_vm13 = vcmp.gt.f32.partialorder %v8401_v6, 0.0  ;;  %v4184_v10 = vmul.f32 0.2, %v8401_v6  ;;  %v8602_v17 = vpop.f32.mrb[114].mxu1 }
 0x1d1   :  { %6582 = vst.msk [vmem:[%s11325_s2 + $0x1bc] sm:$0xf] %vm6470_vm3, %v7789_v3  ;;  %v7787_v13 = vpack.c.bf16 %v4579_v9, %v4579_v9  ;;  %v4779_v14 = vsel %vm3979_vm12, %v3306_v54, %v4379_v5  ;;  %vm3984_vm14 = vcmp.gt.f32.partialorder %v8601_v7, 0.0  ;;  %v4384_v15 = vmul.f32 0.2, %v8601_v7  ;;  %v2522_v21 = vpop.f32.mrb[115].mxu0 }
 0x1d2   :  { %6782 = vst.msk [vmem:[%s11325_s2 + $0x4dc] sm:$0xf] %vm6470_vm3, %v7989_v8  ;;  %v7987_v18 = vpack.c.bf16 %v4779_v14, %v4779_v14  ;;  %v4584_v19 = vsel %vm3784_vm13, %v8401_v6, %v4184_v10  ;;  %vm3782_vm15 = vcmp.gt.f32.partialorder %v2519_v11, 0.0  ;;  %v4182_v20 = vmul.f32 0.2, %v2519_v11  ;;  %v3322_v22 = vpop.f32.mrb[115].mxu1 }
 0x1d3   :  { %6580 = vst.msk [vmem:[%s11325_s2 + $0x1b4] sm:$0xf] %vm6470_vm3, %v7787_v13  ;;  %v7792_v23 = vpack.c.bf16 %v4584_v19, %v4584_v19  ;;  %v4784_v24 = vsel %vm3984_vm14, %v8601_v7, %v4384_v15  ;;  %vm3982_vm1 = vcmp.gt.f32.partialorder %v3319_v12, 0.0  ;;  %v4382_v25 = vmul.f32 0.2, %v3319_v12  ;;  %v8405_v38 = vpop.f32.mrb[116].mxu0 }
 0x1d4   :  { %6780 = vst.msk [vmem:[%s11325_s2 + $0x4d4] sm:$0xf] %vm6470_vm3, %v7987_v18  ;;  %v7992_v26 = vpack.c.bf16 %v4784_v24, %v4784_v24  ;;  %v4582_v27 = vsel %vm3782_vm15, %v2519_v11, %v4182_v20  ;;  %vm3785_vm0 = vcmp.gt.f32.partialorder %v8402_v16, 0.0  ;;  %v4185_v28 = vmul.f32 0.2, %v8402_v16  ;;  %v8605_v39 = vpop.f32.mrb[116].mxu1 }
 0x1d5   :  { %6585 = vst.msk [vmem:[%s11325_s2 + $0x1c8] sm:$0xf] %vm6470_vm3, %v7792_v23  ;;  %v7790_v29 = vpack.c.bf16 %v4582_v27, %v4582_v27  ;;  %v4782_v30 = vsel %vm3982_vm1, %v3319_v12, %v4382_v25  ;;  %vm3985_vm2 = vcmp.gt.f32.partialorder %v8602_v17, 0.0  ;;  %v4385_v31 = vmul.f32 0.2, %v8602_v17  ;;  %v2535_v43 = vpop.f32.mrb[117].mxu0 }
 0x1d6   :  { %6785 = vst.msk [vmem:[%s11325_s2 + $0x4e8] sm:$0xf] %vm6470_vm3, %v7992_v26  ;;  %v7990_v32 = vpack.c.bf16 %v4782_v30, %v4782_v30  ;;  %v4585_v33 = vsel %vm3785_vm0, %v8402_v16, %v4185_v28  ;;  %vm3783_vm4 = vcmp.gt.f32.partialorder %v2522_v21, 0.0  ;;  %v4183_v34 = vmul.f32 0.2, %v2522_v21  ;;  %v3335_v44 = vpop.f32.mrb[117].mxu1 }
 0x1d7   :  { %6583 = vst.msk [vmem:[%s11325_s2 + $0x1c0] sm:$0xf] %vm6470_vm3, %v7790_v29  ;;  %v7793_v35 = vpack.c.bf16 %v4585_v33, %v4585_v33  ;;  %v4785_v36 = vsel %vm3985_vm2, %v8602_v17, %v4385_v31  ;;  %vm3983_vm5 = vcmp.gt.f32.partialorder %v3322_v22, 0.0  ;;  %v4383_v37 = vmul.f32 0.2, %v3322_v22  ;;  %v8406_v48 = vpop.f32.mrb[118].mxu0 }
 0x1d8   :  { %6783 = vst.msk [vmem:[%s11325_s2 + $0x4e0] sm:$0xf] %vm6470_vm3, %v7990_v32  ;;  %v7993_v40 = vpack.c.bf16 %v4785_v36, %v4785_v36  ;;  %v4583_v41 = vsel %vm3783_vm4, %v2522_v21, %v4183_v34  ;;  %vm3788_vm6 = vcmp.gt.f32.partialorder %v8405_v38, 0.0  ;;  %v4188_v42 = vmul.f32 0.2, %v8405_v38  ;;  %v8606_v49 = vpop.f32.mrb[118].mxu1 }
 0x1d9   :  { %6586 = vst.msk [vmem:[%s11325_s2 + $0x1cc] sm:$0xf] %vm6470_vm3, %v7793_v35  ;;  %v7791_v45 = vpack.c.bf16 %v4583_v41, %v4583_v41  ;;  %v4783_v46 = vsel %vm3983_vm5, %v3322_v22, %v4383_v37  ;;  %vm3988_vm7 = vcmp.gt.f32.partialorder %v8605_v39, 0.0  ;;  %v4388_v47 = vmul.f32 0.2, %v8605_v39  ;;  %v2538_v53 = vpop.f32.mrb[119].mxu0 }
 0x1da   :  { %6786 = vst.msk [vmem:[%s11325_s2 + $0x4ec] sm:$0xf] %vm6470_vm3, %v7993_v40  ;;  %v7991_v50 = vpack.c.bf16 %v4783_v46, %v4783_v46  ;;  %v4588_v51 = vsel %vm3788_vm6, %v8405_v38, %v4188_v42  ;;  %vm3786_vm8 = vcmp.gt.f32.partialorder %v2535_v43, 0.0  ;;  %v4186_v52 = vmul.f32 0.2, %v2535_v43  ;;  %v3338_v54 = vpop.f32.mrb[119].mxu1 }
 0x1db   :  { %6584 = vst.msk [vmem:[%s11325_s2 + $0x1c4] sm:$0xf] %vm6470_vm3, %v7791_v45  ;;  %v7796_v55 = vpack.c.bf16 %v4588_v51, %v4588_v51  ;;  %v4788_v56 = vsel %vm3988_vm7, %v8605_v39, %v4388_v47  ;;  %vm3986_vm9 = vcmp.gt.f32.partialorder %v3335_v44, 0.0  ;;  %v4386_v57 = vmul.f32 0.2, %v3335_v44  ;;  %v8409_v6 = vpop.f32.mrb[120].mxu0 }
 0x1dc   :  { %6784 = vst.msk [vmem:[%s11325_s2 + $0x4e4] sm:$0xf] %vm6470_vm3, %v7991_v50  ;;  %v7996_v58 = vpack.c.bf16 %v4788_v56, %v4788_v56  ;;  %v4586_v59 = vsel %vm3786_vm8, %v2535_v43, %v4186_v52  ;;  %vm3789_vm10 = vcmp.gt.f32.partialorder %v8406_v48, 0.0  ;;  %v4189_v60 = vmul.f32 0.2, %v8406_v48  ;;  %v8609_v7 = vpop.f32.mrb[120].mxu1 }
 0x1dd   :  { %6589 = vst.msk [vmem:[%s11325_s2 + $0x1d8] sm:$0xf] %vm6470_vm3, %v7796_v55  ;;  %v7794_v61 = vpack.c.bf16 %v4586_v59, %v4586_v59  ;;  %v4786_v62 = vsel %vm3986_vm9, %v3335_v44, %v4386_v57  ;;  %vm3989_vm11 = vcmp.gt.f32.partialorder %v8606_v49, 0.0  ;;  %v4389_v63 = vmul.f32 0.2, %v8606_v49  ;;  %v2551_v11 = vpop.f32.mrb[121].mxu0 }
 0x1de   :  { %6789 = vst.msk [vmem:[%s11325_s2 + $0x4f8] sm:$0xf] %vm6470_vm3, %v7996_v58  ;;  %v7994_v0 = vpack.c.bf16 %v4786_v62, %v4786_v62  ;;  %v4589_v1 = vsel %vm3789_vm10, %v8406_v48, %v4189_v60  ;;  %vm3787_vm12 = vcmp.gt.f32.partialorder %v2538_v53, 0.0  ;;  %v4187_v2 = vmul.f32 0.2, %v2538_v53  ;;  %v3351_v12 = vpop.f32.mrb[121].mxu1 }
 0x1df   :  { %6587 = vst.msk [vmem:[%s11325_s2 + $0x1d0] sm:$0xf] %vm6470_vm3, %v7794_v61  ;;  %v7797_v3 = vpack.c.bf16 %v4589_v1, %v4589_v1  ;;  %v4789_v4 = vsel %vm3989_vm11, %v8606_v49, %v4389_v63  ;;  %vm3987_vm13 = vcmp.gt.f32.partialorder %v3338_v54, 0.0  ;;  %v4387_v5 = vmul.f32 0.2, %v3338_v54  ;;  %v8410_v16 = vpop.f32.mrb[122].mxu0 }
 0x1e0   :  { %6787 = vst.msk [vmem:[%s11325_s2 + $0x4f0] sm:$0xf] %vm6470_vm3, %v7994_v0  ;;  %v7997_v8 = vpack.c.bf16 %v4789_v4, %v4789_v4  ;;  %v4587_v9 = vsel %vm3787_vm12, %v2538_v53, %v4187_v2  ;;  %vm3792_vm14 = vcmp.gt.f32.partialorder %v8409_v6, 0.0  ;;  %v4192_v10 = vmul.f32 0.2, %v8409_v6  ;;  %v8610_v17 = vpop.f32.mrb[122].mxu1 }
 0x1e1   :  { %6590 = vst.msk [vmem:[%s11325_s2 + $0x1dc] sm:$0xf] %vm6470_vm3, %v7797_v3  ;;  %v7795_v13 = vpack.c.bf16 %v4587_v9, %v4587_v9  ;;  %v4787_v14 = vsel %vm3987_vm13, %v3338_v54, %v4387_v5  ;;  %vm3992_vm15 = vcmp.gt.f32.partialorder %v8609_v7, 0.0  ;;  %v4392_v15 = vmul.f32 0.2, %v8609_v7  ;;  %v2554_v21 = vpop.f32.mrb[123].mxu0 }
 0x1e2   :  { %6790 = vst.msk [vmem:[%s11325_s2 + $0x4fc] sm:$0xf] %vm6470_vm3, %v7997_v8  ;;  %v7995_v18 = vpack.c.bf16 %v4787_v14, %v4787_v14  ;;  %v4592_v19 = vsel %vm3792_vm14, %v8409_v6, %v4192_v10  ;;  %vm3790_vm1 = vcmp.gt.f32.partialorder %v2551_v11, 0.0  ;;  %v4190_v20 = vmul.f32 0.2, %v2551_v11  ;;  %v3354_v22 = vpop.f32.mrb[123].mxu1 }
 0x1e3   :  { %6588 = vst.msk [vmem:[%s11325_s2 + $0x1d4] sm:$0xf] %vm6470_vm3, %v7795_v13  ;;  %v7800_v23 = vpack.c.bf16 %v4592_v19, %v4592_v19  ;;  %v4792_v24 = vsel %vm3992_vm15, %v8609_v7, %v4392_v15  ;;  %vm3990_vm0 = vcmp.gt.f32.partialorder %v3351_v12, 0.0  ;;  %v4390_v25 = vmul.f32 0.2, %v3351_v12  ;;  %v8413_v38 = vpop.f32.mrb[124].mxu0 }
 0x1e4   :  { %6788 = vst.msk [vmem:[%s11325_s2 + $0x4f4] sm:$0xf] %vm6470_vm3, %v7995_v18  ;;  %v8000_v26 = vpack.c.bf16 %v4792_v24, %v4792_v24  ;;  %v4590_v27 = vsel %vm3790_vm1, %v2551_v11, %v4190_v20  ;;  %vm3793_vm2 = vcmp.gt.f32.partialorder %v8410_v16, 0.0  ;;  %v4193_v28 = vmul.f32 0.2, %v8410_v16  ;;  %v8613_v39 = vpop.f32.mrb[124].mxu1 }
 0x1e5   :  { %6593 = vst.msk [vmem:[%s11325_s2 + $0x1e8] sm:$0xf] %vm6470_vm3, %v7800_v23  ;;  %v7798_v29 = vpack.c.bf16 %v4590_v27, %v4590_v27  ;;  %v4790_v30 = vsel %vm3990_vm0, %v3351_v12, %v4390_v25  ;;  %vm3993_vm4 = vcmp.gt.f32.partialorder %v8610_v17, 0.0  ;;  %v4393_v31 = vmul.f32 0.2, %v8610_v17  ;;  %v2567_v43 = vpop.f32.mrb[125].mxu0 }
 0x1e6   :  { %6793 = vst.msk [vmem:[%s11325_s2 + $0x508] sm:$0xf] %vm6470_vm3, %v8000_v26  ;;  %v7998_v32 = vpack.c.bf16 %v4790_v30, %v4790_v30  ;;  %v4593_v33 = vsel %vm3793_vm2, %v8410_v16, %v4193_v28  ;;  %vm3791_vm5 = vcmp.gt.f32.partialorder %v2554_v21, 0.0  ;;  %v4191_v34 = vmul.f32 0.2, %v2554_v21  ;;  %v3367_v44 = vpop.f32.mrb[125].mxu1 }
 0x1e7   :  { %6591 = vst.msk [vmem:[%s11325_s2 + $0x1e0] sm:$0xf] %vm6470_vm3, %v7798_v29  ;;  %v7801_v35 = vpack.c.bf16 %v4593_v33, %v4593_v33  ;;  %v4793_v36 = vsel %vm3993_vm4, %v8610_v17, %v4393_v31  ;;  %vm3991_vm6 = vcmp.gt.f32.partialorder %v3354_v22, 0.0  ;;  %v4391_v37 = vmul.f32 0.2, %v3354_v22  ;;  %v8414_v48 = vpop.f32.mrb[126].mxu0 }
 0x1e8   :  { %6791 = vst.msk [vmem:[%s11325_s2 + $0x500] sm:$0xf] %vm6470_vm3, %v7998_v32  ;;  %v8001_v40 = vpack.c.bf16 %v4793_v36, %v4793_v36  ;;  %v4591_v41 = vsel %vm3791_vm5, %v2554_v21, %v4191_v34  ;;  %vm3796_vm7 = vcmp.gt.f32.partialorder %v8413_v38, 0.0  ;;  %v4196_v42 = vmul.f32 0.2, %v8413_v38  ;;  %v8614_v49 = vpop.f32.mrb[126].mxu1 }
 0x1e9   :  { %6594 = vst.msk [vmem:[%s11325_s2 + $0x1ec] sm:$0xf] %vm6470_vm3, %v7801_v35  ;;  %v7799_v45 = vpack.c.bf16 %v4591_v41, %v4591_v41  ;;  %v4791_v46 = vsel %vm3991_vm6, %v3354_v22, %v4391_v37  ;;  %vm3996_vm8 = vcmp.gt.f32.partialorder %v8613_v39, 0.0  ;;  %v4396_v47 = vmul.f32 0.2, %v8613_v39  ;;  %v2570_v53 = vpop.f32.mrb[127].mxu0 }
 0x1ea   :  { %6794 = vst.msk [vmem:[%s11325_s2 + $0x50c] sm:$0xf] %vm6470_vm3, %v8001_v40  ;;  %v7999_v50 = vpack.c.bf16 %v4791_v46, %v4791_v46  ;;  %v4596_v51 = vsel %vm3796_vm7, %v8413_v38, %v4196_v42  ;;  %vm3794_vm9 = vcmp.gt.f32.partialorder %v2567_v43, 0.0  ;;  %v4194_v52 = vmul.f32 0.2, %v2567_v43  ;;  %v3370_v54 = vpop.f32.mrb[127].mxu1 }
 0x1eb   :  { %6592 = vst.msk [vmem:[%s11325_s2 + $0x1e4] sm:$0xf] %vm6470_vm3, %v7799_v45  ;;  %v7804_v55 = vpack.c.bf16 %v4596_v51, %v4596_v51  ;;  %v4796_v56 = vsel %vm3996_vm8, %v8613_v39, %v4396_v47  ;;  %vm3994_vm10 = vcmp.gt.f32.partialorder %v3367_v44, 0.0  ;;  %v4394_v57 = vmul.f32 0.2, %v3367_v44  ;;  %v8417_v6 = vpop.f32.mrb[128].mxu0 }
 0x1ec   :  { %6792 = vst.msk [vmem:[%s11325_s2 + $0x504] sm:$0xf] %vm6470_vm3, %v7999_v50  ;;  %v8004_v58 = vpack.c.bf16 %v4796_v56, %v4796_v56  ;;  %v4594_v59 = vsel %vm3794_vm9, %v2567_v43, %v4194_v52  ;;  %vm3797_vm11 = vcmp.gt.f32.partialorder %v8414_v48, 0.0  ;;  %v4197_v60 = vmul.f32 0.2, %v8414_v48  ;;  %v8617_v7 = vpop.f32.mrb[128].mxu1 }
 0x1ed   :  { %6597 = vst.msk [vmem:[%s11325_s2 + $0x1f8] sm:$0xf] %vm6470_vm3, %v7804_v55  ;;  %v7802_v61 = vpack.c.bf16 %v4594_v59, %v4594_v59  ;;  %v4794_v62 = vsel %vm3994_vm10, %v3367_v44, %v4394_v57  ;;  %vm3997_vm12 = vcmp.gt.f32.partialorder %v8614_v49, 0.0  ;;  %v4397_v63 = vmul.f32 0.2, %v8614_v49  ;;  %v2583_v11 = vpop.f32.mrb[129].mxu0 }
 0x1ee   :  { %6797 = vst.msk [vmem:[%s11325_s2 + $0x518] sm:$0xf] %vm6470_vm3, %v8004_v58  ;;  %v8002_v0 = vpack.c.bf16 %v4794_v62, %v4794_v62  ;;  %v4597_v1 = vsel %vm3797_vm11, %v8414_v48, %v4197_v60  ;;  %vm3795_vm13 = vcmp.gt.f32.partialorder %v2570_v53, 0.0  ;;  %v4195_v2 = vmul.f32 0.2, %v2570_v53  ;;  %v3383_v12 = vpop.f32.mrb[129].mxu1 }
 0x1ef   :  { %6595 = vst.msk [vmem:[%s11325_s2 + $0x1f0] sm:$0xf] %vm6470_vm3, %v7802_v61  ;;  %v7805_v3 = vpack.c.bf16 %v4597_v1, %v4597_v1  ;;  %v4797_v4 = vsel %vm3997_vm12, %v8614_v49, %v4397_v63  ;;  %vm3995_vm14 = vcmp.gt.f32.partialorder %v3370_v54, 0.0  ;;  %v4395_v5 = vmul.f32 0.2, %v3370_v54  ;;  %v8418_v16 = vpop.f32.mrb[130].mxu0 }
 0x1f0   :  { %6795 = vst.msk [vmem:[%s11325_s2 + $0x510] sm:$0xf] %vm6470_vm3, %v8002_v0  ;;  %v8005_v8 = vpack.c.bf16 %v4797_v4, %v4797_v4  ;;  %v4595_v9 = vsel %vm3795_vm13, %v2570_v53, %v4195_v2  ;;  %vm3800_vm15 = vcmp.gt.f32.partialorder %v8417_v6, 0.0  ;;  %v4200_v10 = vmul.f32 0.2, %v8417_v6  ;;  %v8618_v17 = vpop.f32.mrb[130].mxu1 }
 0x1f1   :  { %6598 = vst.msk [vmem:[%s11325_s2 + $0x1fc] sm:$0xf] %vm6470_vm3, %v7805_v3  ;;  %v7803_v13 = vpack.c.bf16 %v4595_v9, %v4595_v9  ;;  %v4795_v14 = vsel %vm3995_vm14, %v3370_v54, %v4395_v5  ;;  %vm4000_vm1 = vcmp.gt.f32.partialorder %v8617_v7, 0.0  ;;  %v4400_v15 = vmul.f32 0.2, %v8617_v7  ;;  %v2586_v21 = vpop.f32.mrb[131].mxu0 }
 0x1f2   :  { %6798 = vst.msk [vmem:[%s11325_s2 + $0x51c] sm:$0xf] %vm6470_vm3, %v8005_v8  ;;  %v8003_v18 = vpack.c.bf16 %v4795_v14, %v4795_v14  ;;  %v4600_v19 = vsel %vm3800_vm15, %v8417_v6, %v4200_v10  ;;  %vm3798_vm0 = vcmp.gt.f32.partialorder %v2583_v11, 0.0  ;;  %v4198_v20 = vmul.f32 0.2, %v2583_v11  ;;  %v3386_v22 = vpop.f32.mrb[131].mxu1 }
 0x1f3   :  { %6596 = vst.msk [vmem:[%s11325_s2 + $0x1f4] sm:$0xf] %vm6470_vm3, %v7803_v13  ;;  %v7808_v23 = vpack.c.bf16 %v4600_v19, %v4600_v19  ;;  %v4800_v24 = vsel %vm4000_vm1, %v8617_v7, %v4400_v15  ;;  %vm3998_vm2 = vcmp.gt.f32.partialorder %v3383_v12, 0.0  ;;  %v4398_v25 = vmul.f32 0.2, %v3383_v12  ;;  %v8421_v38 = vpop.f32.mrb[132].mxu0 }
 0x1f4   :  { %6796 = vst.msk [vmem:[%s11325_s2 + $0x514] sm:$0xf] %vm6470_vm3, %v8003_v18  ;;  %v8008_v26 = vpack.c.bf16 %v4800_v24, %v4800_v24  ;;  %v4598_v27 = vsel %vm3798_vm0, %v2583_v11, %v4198_v20  ;;  %vm3801_vm4 = vcmp.gt.f32.partialorder %v8418_v16, 0.0  ;;  %v4201_v28 = vmul.f32 0.2, %v8418_v16  ;;  %v8621_v39 = vpop.f32.mrb[132].mxu1 }
 0x1f5   :  { %6601 = vst.msk [vmem:[%s11325_s2 + $0x208] sm:$0xf] %vm6470_vm3, %v7808_v23  ;;  %v7806_v29 = vpack.c.bf16 %v4598_v27, %v4598_v27  ;;  %v4798_v30 = vsel %vm3998_vm2, %v3383_v12, %v4398_v25  ;;  %vm4001_vm5 = vcmp.gt.f32.partialorder %v8618_v17, 0.0  ;;  %v4401_v31 = vmul.f32 0.2, %v8618_v17  ;;  %v2599_v43 = vpop.f32.mrb[133].mxu0 }
 0x1f6   :  { %6801 = vst.msk [vmem:[%s11325_s2 + $0x528] sm:$0xf] %vm6470_vm3, %v8008_v26  ;;  %v8006_v32 = vpack.c.bf16 %v4798_v30, %v4798_v30  ;;  %v4601_v33 = vsel %vm3801_vm4, %v8418_v16, %v4201_v28  ;;  %vm3799_vm6 = vcmp.gt.f32.partialorder %v2586_v21, 0.0  ;;  %v4199_v34 = vmul.f32 0.2, %v2586_v21  ;;  %v3399_v44 = vpop.f32.mrb[133].mxu1 }
 0x1f7   :  { %6599 = vst.msk [vmem:[%s11325_s2 + $0x200] sm:$0xf] %vm6470_vm3, %v7806_v29  ;;  %v7809_v35 = vpack.c.bf16 %v4601_v33, %v4601_v33  ;;  %v4801_v36 = vsel %vm4001_vm5, %v8618_v17, %v4401_v31  ;;  %vm3999_vm7 = vcmp.gt.f32.partialorder %v3386_v22, 0.0  ;;  %v4399_v37 = vmul.f32 0.2, %v3386_v22  ;;  %v8422_v48 = vpop.f32.mrb[134].mxu0 }
 0x1f8   :  { %6799 = vst.msk [vmem:[%s11325_s2 + $0x520] sm:$0xf] %vm6470_vm3, %v8006_v32  ;;  %v8009_v40 = vpack.c.bf16 %v4801_v36, %v4801_v36  ;;  %v4599_v41 = vsel %vm3799_vm6, %v2586_v21, %v4199_v34  ;;  %vm3804_vm8 = vcmp.gt.f32.partialorder %v8421_v38, 0.0  ;;  %v4204_v42 = vmul.f32 0.2, %v8421_v38  ;;  %v8622_v49 = vpop.f32.mrb[134].mxu1 }
 0x1f9   :  { %6602 = vst.msk [vmem:[%s11325_s2 + $0x20c] sm:$0xf] %vm6470_vm3, %v7809_v35  ;;  %v7807_v45 = vpack.c.bf16 %v4599_v41, %v4599_v41  ;;  %v4799_v46 = vsel %vm3999_vm7, %v3386_v22, %v4399_v37  ;;  %vm4004_vm9 = vcmp.gt.f32.partialorder %v8621_v39, 0.0  ;;  %v4404_v47 = vmul.f32 0.2, %v8621_v39  ;;  %v2602_v53 = vpop.f32.mrb[135].mxu0 }
 0x1fa   :  { %6802 = vst.msk [vmem:[%s11325_s2 + $0x52c] sm:$0xf] %vm6470_vm3, %v8009_v40  ;;  %v8007_v50 = vpack.c.bf16 %v4799_v46, %v4799_v46  ;;  %v4604_v51 = vsel %vm3804_vm8, %v8421_v38, %v4204_v42  ;;  %vm3802_vm10 = vcmp.gt.f32.partialorder %v2599_v43, 0.0  ;;  %v4202_v52 = vmul.f32 0.2, %v2599_v43  ;;  %v3402_v54 = vpop.f32.mrb[135].mxu1 }
 0x1fb   :  { %6600 = vst.msk [vmem:[%s11325_s2 + $0x204] sm:$0xf] %vm6470_vm3, %v7807_v45  ;;  %v7812_v55 = vpack.c.bf16 %v4604_v51, %v4604_v51  ;;  %v4804_v56 = vsel %vm4004_vm9, %v8621_v39, %v4404_v47  ;;  %vm4002_vm11 = vcmp.gt.f32.partialorder %v3399_v44, 0.0  ;;  %v4402_v57 = vmul.f32 0.2, %v3399_v44  ;;  %v8425_v6 = vpop.f32.mrb[136].mxu0 }
 0x1fc   :  { %6800 = vst.msk [vmem:[%s11325_s2 + $0x524] sm:$0xf] %vm6470_vm3, %v8007_v50  ;;  %v8012_v58 = vpack.c.bf16 %v4804_v56, %v4804_v56  ;;  %v4602_v59 = vsel %vm3802_vm10, %v2599_v43, %v4202_v52  ;;  %vm3805_vm12 = vcmp.gt.f32.partialorder %v8422_v48, 0.0  ;;  %v4205_v60 = vmul.f32 0.2, %v8422_v48  ;;  %v8625_v7 = vpop.f32.mrb[136].mxu1 }
 0x1fd   :  { %6605 = vst.msk [vmem:[%s11325_s2 + $0x218] sm:$0xf] %vm6470_vm3, %v7812_v55  ;;  %v7810_v61 = vpack.c.bf16 %v4602_v59, %v4602_v59  ;;  %v4802_v62 = vsel %vm4002_vm11, %v3399_v44, %v4402_v57  ;;  %vm4005_vm13 = vcmp.gt.f32.partialorder %v8622_v49, 0.0  ;;  %v4405_v63 = vmul.f32 0.2, %v8622_v49  ;;  %v2615_v11 = vpop.f32.mrb[137].mxu0 }
 0x1fe   :  { %6805 = vst.msk [vmem:[%s11325_s2 + $0x538] sm:$0xf] %vm6470_vm3, %v8012_v58  ;;  %v8010_v0 = vpack.c.bf16 %v4802_v62, %v4802_v62  ;;  %v4605_v1 = vsel %vm3805_vm12, %v8422_v48, %v4205_v60  ;;  %vm3803_vm14 = vcmp.gt.f32.partialorder %v2602_v53, 0.0  ;;  %v4203_v2 = vmul.f32 0.2, %v2602_v53  ;;  %v3415_v12 = vpop.f32.mrb[137].mxu1 }
 0x1ff   :  { %6603 = vst.msk [vmem:[%s11325_s2 + $0x210] sm:$0xf] %vm6470_vm3, %v7810_v61  ;;  %v7813_v3 = vpack.c.bf16 %v4605_v1, %v4605_v1  ;;  %v4805_v4 = vsel %vm4005_vm13, %v8622_v49, %v4405_v63  ;;  %vm4003_vm15 = vcmp.gt.f32.partialorder %v3402_v54, 0.0  ;;  %v4403_v5 = vmul.f32 0.2, %v3402_v54  ;;  %v8426_v16 = vpop.f32.mrb[138].mxu0 }
 0x200   :  { %6803 = vst.msk [vmem:[%s11325_s2 + $0x530] sm:$0xf] %vm6470_vm3, %v8010_v0  ;;  %v8013_v8 = vpack.c.bf16 %v4805_v4, %v4805_v4  ;;  %v4603_v9 = vsel %vm3803_vm14, %v2602_v53, %v4203_v2  ;;  %vm3808_vm1 = vcmp.gt.f32.partialorder %v8425_v6, 0.0  ;;  %v4208_v10 = vmul.f32 0.2, %v8425_v6  ;;  %v8626_v17 = vpop.f32.mrb[138].mxu1 }
 0x201   :  { %6606 = vst.msk [vmem:[%s11325_s2 + $0x21c] sm:$0xf] %vm6470_vm3, %v7813_v3  ;;  %v7811_v13 = vpack.c.bf16 %v4603_v9, %v4603_v9  ;;  %v4803_v14 = vsel %vm4003_vm15, %v3402_v54, %v4403_v5  ;;  %vm4008_vm0 = vcmp.gt.f32.partialorder %v8625_v7, 0.0  ;;  %v4408_v15 = vmul.f32 0.2, %v8625_v7  ;;  %v2618_v21 = vpop.f32.mrb[139].mxu0 }
 0x202   :  { %6806 = vst.msk [vmem:[%s11325_s2 + $0x53c] sm:$0xf] %vm6470_vm3, %v8013_v8  ;;  %v8011_v18 = vpack.c.bf16 %v4803_v14, %v4803_v14  ;;  %v4608_v19 = vsel %vm3808_vm1, %v8425_v6, %v4208_v10  ;;  %vm3806_vm2 = vcmp.gt.f32.partialorder %v2615_v11, 0.0  ;;  %v4206_v20 = vmul.f32 0.2, %v2615_v11  ;;  %v3418_v22 = vpop.f32.mrb[139].mxu1 }
 0x203   :  { %6604 = vst.msk [vmem:[%s11325_s2 + $0x214] sm:$0xf] %vm6470_vm3, %v7811_v13  ;;  %v7816_v23 = vpack.c.bf16 %v4608_v19, %v4608_v19  ;;  %v4808_v24 = vsel %vm4008_vm0, %v8625_v7, %v4408_v15  ;;  %vm4006_vm4 = vcmp.gt.f32.partialorder %v3415_v12, 0.0  ;;  %v4406_v25 = vmul.f32 0.2, %v3415_v12  ;;  %v8429_v38 = vpop.f32.mrb[140].mxu0 }
 0x204   :  { %6804 = vst.msk [vmem:[%s11325_s2 + $0x534] sm:$0xf] %vm6470_vm3, %v8011_v18  ;;  %v8016_v26 = vpack.c.bf16 %v4808_v24, %v4808_v24  ;;  %v4606_v27 = vsel %vm3806_vm2, %v2615_v11, %v4206_v20  ;;  %vm3809_vm5 = vcmp.gt.f32.partialorder %v8426_v16, 0.0  ;;  %v4209_v28 = vmul.f32 0.2, %v8426_v16  ;;  %v8629_v39 = vpop.f32.mrb[140].mxu1 }
 0x205   :  { %6609 = vst.msk [vmem:[%s11325_s2 + $0x228] sm:$0xf] %vm6470_vm3, %v7816_v23  ;;  %v7814_v29 = vpack.c.bf16 %v4606_v27, %v4606_v27  ;;  %v4806_v30 = vsel %vm4006_vm4, %v3415_v12, %v4406_v25  ;;  %vm4009_vm6 = vcmp.gt.f32.partialorder %v8626_v17, 0.0  ;;  %v4409_v31 = vmul.f32 0.2, %v8626_v17  ;;  %v2631_v43 = vpop.f32.mrb[141].mxu0 }
 0x206   :  { %6809 = vst.msk [vmem:[%s11325_s2 + $0x548] sm:$0xf] %vm6470_vm3, %v8016_v26  ;;  %v8014_v32 = vpack.c.bf16 %v4806_v30, %v4806_v30  ;;  %v4609_v33 = vsel %vm3809_vm5, %v8426_v16, %v4209_v28  ;;  %vm3807_vm7 = vcmp.gt.f32.partialorder %v2618_v21, 0.0  ;;  %v4207_v34 = vmul.f32 0.2, %v2618_v21  ;;  %v3431_v44 = vpop.f32.mrb[141].mxu1 }
 0x207   :  { %6607 = vst.msk [vmem:[%s11325_s2 + $0x220] sm:$0xf] %vm6470_vm3, %v7814_v29  ;;  %v7817_v35 = vpack.c.bf16 %v4609_v33, %v4609_v33  ;;  %v4809_v36 = vsel %vm4009_vm6, %v8626_v17, %v4409_v31  ;;  %vm4007_vm8 = vcmp.gt.f32.partialorder %v3418_v22, 0.0  ;;  %v4407_v37 = vmul.f32 0.2, %v3418_v22  ;;  %v8430_v48 = vpop.f32.mrb[142].mxu0 }
 0x208   :  { %6807 = vst.msk [vmem:[%s11325_s2 + $0x540] sm:$0xf] %vm6470_vm3, %v8014_v32  ;;  %v8017_v40 = vpack.c.bf16 %v4809_v36, %v4809_v36  ;;  %v4607_v41 = vsel %vm3807_vm7, %v2618_v21, %v4207_v34  ;;  %vm3812_vm9 = vcmp.gt.f32.partialorder %v8429_v38, 0.0  ;;  %v4212_v42 = vmul.f32 0.2, %v8429_v38  ;;  %v8630_v49 = vpop.f32.mrb[142].mxu1 }
 0x209   :  { %6610 = vst.msk [vmem:[%s11325_s2 + $0x22c] sm:$0xf] %vm6470_vm3, %v7817_v35  ;;  %v7815_v45 = vpack.c.bf16 %v4607_v41, %v4607_v41  ;;  %v4807_v46 = vsel %vm4007_vm8, %v3418_v22, %v4407_v37  ;;  %vm4012_vm10 = vcmp.gt.f32.partialorder %v8629_v39, 0.0  ;;  %v4412_v47 = vmul.f32 0.2, %v8629_v39  ;;  %v2634_v53 = vpop.f32.mrb[143].mxu0 }
 0x20a   :  { %6810 = vst.msk [vmem:[%s11325_s2 + $0x54c] sm:$0xf] %vm6470_vm3, %v8017_v40  ;;  %v8015_v50 = vpack.c.bf16 %v4807_v46, %v4807_v46  ;;  %v4612_v51 = vsel %vm3812_vm9, %v8429_v38, %v4212_v42  ;;  %vm3810_vm11 = vcmp.gt.f32.partialorder %v2631_v43, 0.0  ;;  %v4210_v52 = vmul.f32 0.2, %v2631_v43  ;;  %v3434_v54 = vpop.f32.mrb[143].mxu1 }
 0x20b   :  { %6608 = vst.msk [vmem:[%s11325_s2 + $0x224] sm:$0xf] %vm6470_vm3, %v7815_v45  ;;  %v7820_v55 = vpack.c.bf16 %v4612_v51, %v4612_v51  ;;  %v4812_v56 = vsel %vm4012_vm10, %v8629_v39, %v4412_v47  ;;  %vm4010_vm12 = vcmp.gt.f32.partialorder %v3431_v44, 0.0  ;;  %v4410_v57 = vmul.f32 0.2, %v3431_v44  ;;  %v8433_v6 = vpop.f32.mrb[144].mxu0 }
 0x20c   :  { %6808 = vst.msk [vmem:[%s11325_s2 + $0x544] sm:$0xf] %vm6470_vm3, %v8015_v50  ;;  %v8020_v58 = vpack.c.bf16 %v4812_v56, %v4812_v56  ;;  %v4610_v59 = vsel %vm3810_vm11, %v2631_v43, %v4210_v52  ;;  %vm3813_vm13 = vcmp.gt.f32.partialorder %v8430_v48, 0.0  ;;  %v4213_v60 = vmul.f32 0.2, %v8430_v48  ;;  %v8633_v7 = vpop.f32.mrb[144].mxu1 }
 0x20d   :  { %6613 = vst.msk [vmem:[%s11325_s2 + $0x238] sm:$0xf] %vm6470_vm3, %v7820_v55  ;;  %v7818_v61 = vpack.c.bf16 %v4610_v59, %v4610_v59  ;;  %v4810_v62 = vsel %vm4010_vm12, %v3431_v44, %v4410_v57  ;;  %vm4013_vm14 = vcmp.gt.f32.partialorder %v8630_v49, 0.0  ;;  %v4413_v63 = vmul.f32 0.2, %v8630_v49  ;;  %v2647_v11 = vpop.f32.mrb[145].mxu0 }
 0x20e   :  { %6813 = vst.msk [vmem:[%s11325_s2 + $0x558] sm:$0xf] %vm6470_vm3, %v8020_v58  ;;  %v8018_v0 = vpack.c.bf16 %v4810_v62, %v4810_v62  ;;  %v4613_v1 = vsel %vm3813_vm13, %v8430_v48, %v4213_v60  ;;  %vm3811_vm15 = vcmp.gt.f32.partialorder %v2634_v53, 0.0  ;;  %v4211_v2 = vmul.f32 0.2, %v2634_v53  ;;  %v3447_v12 = vpop.f32.mrb[145].mxu1 }
 0x20f   :  { %6611 = vst.msk [vmem:[%s11325_s2 + $0x230] sm:$0xf] %vm6470_vm3, %v7818_v61  ;;  %v7821_v3 = vpack.c.bf16 %v4613_v1, %v4613_v1  ;;  %v4813_v4 = vsel %vm4013_vm14, %v8630_v49, %v4413_v63  ;;  %vm4011_vm1 = vcmp.gt.f32.partialorder %v3434_v54, 0.0  ;;  %v4411_v5 = vmul.f32 0.2, %v3434_v54  ;;  %v8434_v16 = vpop.f32.mrb[146].mxu0 }
 0x210   :  { %6811 = vst.msk [vmem:[%s11325_s2 + $0x550] sm:$0xf] %vm6470_vm3, %v8018_v0  ;;  %v8021_v8 = vpack.c.bf16 %v4813_v4, %v4813_v4  ;;  %v4611_v9 = vsel %vm3811_vm15, %v2634_v53, %v4211_v2  ;;  %vm3816_vm0 = vcmp.gt.f32.partialorder %v8433_v6, 0.0  ;;  %v4216_v10 = vmul.f32 0.2, %v8433_v6  ;;  %v8634_v17 = vpop.f32.mrb[146].mxu1 }
 0x211   :  { %6614 = vst.msk [vmem:[%s11325_s2 + $0x23c] sm:$0xf] %vm6470_vm3, %v7821_v3  ;;  %v7819_v13 = vpack.c.bf16 %v4611_v9, %v4611_v9  ;;  %v4811_v14 = vsel %vm4011_vm1, %v3434_v54, %v4411_v5  ;;  %vm4016_vm2 = vcmp.gt.f32.partialorder %v8633_v7, 0.0  ;;  %v4416_v15 = vmul.f32 0.2, %v8633_v7  ;;  %v2650_v21 = vpop.f32.mrb[147].mxu0 }
 0x212   :  { %6814 = vst.msk [vmem:[%s11325_s2 + $0x55c] sm:$0xf] %vm6470_vm3, %v8021_v8  ;;  %v8019_v18 = vpack.c.bf16 %v4811_v14, %v4811_v14  ;;  %v4616_v19 = vsel %vm3816_vm0, %v8433_v6, %v4216_v10  ;;  %vm3814_vm4 = vcmp.gt.f32.partialorder %v2647_v11, 0.0  ;;  %v4214_v20 = vmul.f32 0.2, %v2647_v11  ;;  %v3450_v22 = vpop.f32.mrb[147].mxu1 }
 0x213   :  { %6612 = vst.msk [vmem:[%s11325_s2 + $0x234] sm:$0xf] %vm6470_vm3, %v7819_v13  ;;  %v7824_v23 = vpack.c.bf16 %v4616_v19, %v4616_v19  ;;  %v4816_v24 = vsel %vm4016_vm2, %v8633_v7, %v4416_v15  ;;  %vm4014_vm5 = vcmp.gt.f32.partialorder %v3447_v12, 0.0  ;;  %v4414_v25 = vmul.f32 0.2, %v3447_v12  ;;  %v8437_v38 = vpop.f32.mrb[148].mxu0 }
 0x214   :  { %6812 = vst.msk [vmem:[%s11325_s2 + $0x554] sm:$0xf] %vm6470_vm3, %v8019_v18  ;;  %v8024_v26 = vpack.c.bf16 %v4816_v24, %v4816_v24  ;;  %v4614_v27 = vsel %vm3814_vm4, %v2647_v11, %v4214_v20  ;;  %vm3817_vm6 = vcmp.gt.f32.partialorder %v8434_v16, 0.0  ;;  %v4217_v28 = vmul.f32 0.2, %v8434_v16  ;;  %v8637_v39 = vpop.f32.mrb[148].mxu1 }
 0x215   :  { %6617 = vst.msk [vmem:[%s11325_s2 + $0x248] sm:$0xf] %vm6470_vm3, %v7824_v23  ;;  %v7822_v29 = vpack.c.bf16 %v4614_v27, %v4614_v27  ;;  %v4814_v30 = vsel %vm4014_vm5, %v3447_v12, %v4414_v25  ;;  %vm4017_vm7 = vcmp.gt.f32.partialorder %v8634_v17, 0.0  ;;  %v4417_v31 = vmul.f32 0.2, %v8634_v17  ;;  %v2663_v43 = vpop.f32.mrb[149].mxu0 }
 0x216   :  { %6817 = vst.msk [vmem:[%s11325_s2 + $0x568] sm:$0xf] %vm6470_vm3, %v8024_v26  ;;  %v8022_v32 = vpack.c.bf16 %v4814_v30, %v4814_v30  ;;  %v4617_v33 = vsel %vm3817_vm6, %v8434_v16, %v4217_v28  ;;  %vm3815_vm8 = vcmp.gt.f32.partialorder %v2650_v21, 0.0  ;;  %v4215_v34 = vmul.f32 0.2, %v2650_v21  ;;  %v3463_v44 = vpop.f32.mrb[149].mxu1 }
 0x217   :  { %6615 = vst.msk [vmem:[%s11325_s2 + $0x240] sm:$0xf] %vm6470_vm3, %v7822_v29  ;;  %v7825_v35 = vpack.c.bf16 %v4617_v33, %v4617_v33  ;;  %v4817_v36 = vsel %vm4017_vm7, %v8634_v17, %v4417_v31  ;;  %vm4015_vm9 = vcmp.gt.f32.partialorder %v3450_v22, 0.0  ;;  %v4415_v37 = vmul.f32 0.2, %v3450_v22  ;;  %v8438_v48 = vpop.f32.mrb[150].mxu0 }
 0x218   :  { %6815 = vst.msk [vmem:[%s11325_s2 + $0x560] sm:$0xf] %vm6470_vm3, %v8022_v32  ;;  %v8025_v40 = vpack.c.bf16 %v4817_v36, %v4817_v36  ;;  %v4615_v41 = vsel %vm3815_vm8, %v2650_v21, %v4215_v34  ;;  %vm3820_vm10 = vcmp.gt.f32.partialorder %v8437_v38, 0.0  ;;  %v4220_v42 = vmul.f32 0.2, %v8437_v38  ;;  %v8638_v49 = vpop.f32.mrb[150].mxu1 }
 0x219   :  { %6618 = vst.msk [vmem:[%s11325_s2 + $0x24c] sm:$0xf] %vm6470_vm3, %v7825_v35  ;;  %v7823_v45 = vpack.c.bf16 %v4615_v41, %v4615_v41  ;;  %v4815_v46 = vsel %vm4015_vm9, %v3450_v22, %v4415_v37  ;;  %vm4020_vm11 = vcmp.gt.f32.partialorder %v8637_v39, 0.0  ;;  %v4420_v47 = vmul.f32 0.2, %v8637_v39  ;;  %v2666_v53 = vpop.f32.mrb[151].mxu0 }
 0x21a   :  { %6818 = vst.msk [vmem:[%s11325_s2 + $0x56c] sm:$0xf] %vm6470_vm3, %v8025_v40  ;;  %v8023_v50 = vpack.c.bf16 %v4815_v46, %v4815_v46  ;;  %v4620_v51 = vsel %vm3820_vm10, %v8437_v38, %v4220_v42  ;;  %vm3818_vm12 = vcmp.gt.f32.partialorder %v2663_v43, 0.0  ;;  %v4218_v52 = vmul.f32 0.2, %v2663_v43  ;;  %v3466_v54 = vpop.f32.mrb[151].mxu1 }
 0x21b   :  { %6616 = vst.msk [vmem:[%s11325_s2 + $0x244] sm:$0xf] %vm6470_vm3, %v7823_v45  ;;  %v7828_v55 = vpack.c.bf16 %v4620_v51, %v4620_v51  ;;  %v4820_v56 = vsel %vm4020_vm11, %v8637_v39, %v4420_v47  ;;  %vm4018_vm13 = vcmp.gt.f32.partialorder %v3463_v44, 0.0  ;;  %v4418_v57 = vmul.f32 0.2, %v3463_v44  ;;  %v8441_v6 = vpop.f32.mrb[152].mxu0 }
 0x21c   :  { %6816 = vst.msk [vmem:[%s11325_s2 + $0x564] sm:$0xf] %vm6470_vm3, %v8023_v50  ;;  %v8028_v58 = vpack.c.bf16 %v4820_v56, %v4820_v56  ;;  %v4618_v59 = vsel %vm3818_vm12, %v2663_v43, %v4218_v52  ;;  %vm3821_vm14 = vcmp.gt.f32.partialorder %v8438_v48, 0.0  ;;  %v4221_v60 = vmul.f32 0.2, %v8438_v48  ;;  %v8641_v7 = vpop.f32.mrb[152].mxu1 }
 0x21d   :  { %6621 = vst.msk [vmem:[%s11325_s2 + $0x258] sm:$0xf] %vm6470_vm3, %v7828_v55  ;;  %v7826_v61 = vpack.c.bf16 %v4618_v59, %v4618_v59  ;;  %v4818_v62 = vsel %vm4018_vm13, %v3463_v44, %v4418_v57  ;;  %vm4021_vm15 = vcmp.gt.f32.partialorder %v8638_v49, 0.0  ;;  %v4421_v63 = vmul.f32 0.2, %v8638_v49  ;;  %v2679_v11 = vpop.f32.mrb[153].mxu0 }
 0x21e   :  { %6821 = vst.msk [vmem:[%s11325_s2 + $0x578] sm:$0xf] %vm6470_vm3, %v8028_v58  ;;  %v8026_v0 = vpack.c.bf16 %v4818_v62, %v4818_v62  ;;  %v4621_v1 = vsel %vm3821_vm14, %v8438_v48, %v4221_v60  ;;  %vm3819_vm1 = vcmp.gt.f32.partialorder %v2666_v53, 0.0  ;;  %v4219_v2 = vmul.f32 0.2, %v2666_v53  ;;  %v3479_v12 = vpop.f32.mrb[153].mxu1 }
 0x21f   :  { %6619 = vst.msk [vmem:[%s11325_s2 + $0x250] sm:$0xf] %vm6470_vm3, %v7826_v61  ;;  %v7829_v3 = vpack.c.bf16 %v4621_v1, %v4621_v1  ;;  %v4821_v4 = vsel %vm4021_vm15, %v8638_v49, %v4421_v63  ;;  %vm4019_vm0 = vcmp.gt.f32.partialorder %v3466_v54, 0.0  ;;  %v4419_v5 = vmul.f32 0.2, %v3466_v54  ;;  %v8442_v16 = vpop.f32.mrb[154].mxu0 }
 0x220   :  { %6819 = vst.msk [vmem:[%s11325_s2 + $0x570] sm:$0xf] %vm6470_vm3, %v8026_v0  ;;  %v8029_v8 = vpack.c.bf16 %v4821_v4, %v4821_v4  ;;  %v4619_v9 = vsel %vm3819_vm1, %v2666_v53, %v4219_v2  ;;  %vm3824_vm2 = vcmp.gt.f32.partialorder %v8441_v6, 0.0  ;;  %v4224_v10 = vmul.f32 0.2, %v8441_v6  ;;  %v8642_v17 = vpop.f32.mrb[154].mxu1 }
 0x221   :  { %6622 = vst.msk [vmem:[%s11325_s2 + $0x25c] sm:$0xf] %vm6470_vm3, %v7829_v3  ;;  %v7827_v13 = vpack.c.bf16 %v4619_v9, %v4619_v9  ;;  %v4819_v14 = vsel %vm4019_vm0, %v3466_v54, %v4419_v5  ;;  %vm4024_vm4 = vcmp.gt.f32.partialorder %v8641_v7, 0.0  ;;  %v4424_v15 = vmul.f32 0.2, %v8641_v7  ;;  %v2682_v21 = vpop.f32.mrb[155].mxu0 }
 0x222   :  { %6822 = vst.msk [vmem:[%s11325_s2 + $0x57c] sm:$0xf] %vm6470_vm3, %v8029_v8  ;;  %v8027_v18 = vpack.c.bf16 %v4819_v14, %v4819_v14  ;;  %v4624_v19 = vsel %vm3824_vm2, %v8441_v6, %v4224_v10  ;;  %vm3822_vm5 = vcmp.gt.f32.partialorder %v2679_v11, 0.0  ;;  %v4222_v20 = vmul.f32 0.2, %v2679_v11  ;;  %v3482_v22 = vpop.f32.mrb[155].mxu1 }
 0x223   :  { %6620 = vst.msk [vmem:[%s11325_s2 + $0x254] sm:$0xf] %vm6470_vm3, %v7827_v13  ;;  %v7832_v23 = vpack.c.bf16 %v4624_v19, %v4624_v19  ;;  %v4824_v24 = vsel %vm4024_vm4, %v8641_v7, %v4424_v15  ;;  %vm4022_vm6 = vcmp.gt.f32.partialorder %v3479_v12, 0.0  ;;  %v4422_v25 = vmul.f32 0.2, %v3479_v12  ;;  %v8445_v38 = vpop.f32.mrb[156].mxu0 }
 0x224   :  { %6820 = vst.msk [vmem:[%s11325_s2 + $0x574] sm:$0xf] %vm6470_vm3, %v8027_v18  ;;  %v8032_v26 = vpack.c.bf16 %v4824_v24, %v4824_v24  ;;  %v4622_v27 = vsel %vm3822_vm5, %v2679_v11, %v4222_v20  ;;  %vm3825_vm7 = vcmp.gt.f32.partialorder %v8442_v16, 0.0  ;;  %v4225_v28 = vmul.f32 0.2, %v8442_v16  ;;  %v8645_v39 = vpop.f32.mrb[156].mxu1 }
 0x225   :  { %6625 = vst.msk [vmem:[%s11325_s2 + $0x268] sm:$0xf] %vm6470_vm3, %v7832_v23  ;;  %v7830_v29 = vpack.c.bf16 %v4622_v27, %v4622_v27  ;;  %v4822_v30 = vsel %vm4022_vm6, %v3479_v12, %v4422_v25  ;;  %vm4025_vm8 = vcmp.gt.f32.partialorder %v8642_v17, 0.0  ;;  %v4425_v31 = vmul.f32 0.2, %v8642_v17  ;;  %v2695_v43 = vpop.f32.mrb[157].mxu0 }
 0x226   :  { %6825 = vst.msk [vmem:[%s11325_s2 + $0x588] sm:$0xf] %vm6470_vm3, %v8032_v26  ;;  %v8030_v32 = vpack.c.bf16 %v4822_v30, %v4822_v30  ;;  %v4625_v33 = vsel %vm3825_vm7, %v8442_v16, %v4225_v28  ;;  %vm3823_vm9 = vcmp.gt.f32.partialorder %v2682_v21, 0.0  ;;  %v4223_v34 = vmul.f32 0.2, %v2682_v21  ;;  %v3495_v44 = vpop.f32.mrb[157].mxu1 }
 0x227   :  { %6623 = vst.msk [vmem:[%s11325_s2 + $0x260] sm:$0xf] %vm6470_vm3, %v7830_v29  ;;  %v7833_v35 = vpack.c.bf16 %v4625_v33, %v4625_v33  ;;  %v4825_v36 = vsel %vm4025_vm8, %v8642_v17, %v4425_v31  ;;  %vm4023_vm10 = vcmp.gt.f32.partialorder %v3482_v22, 0.0  ;;  %v4423_v37 = vmul.f32 0.2, %v3482_v22  ;;  %v8446_v48 = vpop.f32.mrb[158].mxu0 }
 0x228   :  { %6823 = vst.msk [vmem:[%s11325_s2 + $0x580] sm:$0xf] %vm6470_vm3, %v8030_v32  ;;  %v8033_v40 = vpack.c.bf16 %v4825_v36, %v4825_v36  ;;  %v4623_v41 = vsel %vm3823_vm9, %v2682_v21, %v4223_v34  ;;  %vm3828_vm11 = vcmp.gt.f32.partialorder %v8445_v38, 0.0  ;;  %v4228_v42 = vmul.f32 0.2, %v8445_v38  ;;  %v8646_v49 = vpop.f32.mrb[158].mxu1 }
 0x229   :  { %6626 = vst.msk [vmem:[%s11325_s2 + $0x26c] sm:$0xf] %vm6470_vm3, %v7833_v35  ;;  %v7831_v45 = vpack.c.bf16 %v4623_v41, %v4623_v41  ;;  %v4823_v46 = vsel %vm4023_vm10, %v3482_v22, %v4423_v37  ;;  %vm4028_vm12 = vcmp.gt.f32.partialorder %v8645_v39, 0.0  ;;  %v4428_v47 = vmul.f32 0.2, %v8645_v39  ;;  %v2698_v53 = vpop.f32.mrb[159].mxu0 }
 0x22a   :  { %6826 = vst.msk [vmem:[%s11325_s2 + $0x58c] sm:$0xf] %vm6470_vm3, %v8033_v40  ;;  %v8031_v50 = vpack.c.bf16 %v4823_v46, %v4823_v46  ;;  %v4628_v51 = vsel %vm3828_vm11, %v8445_v38, %v4228_v42  ;;  %vm3826_vm13 = vcmp.gt.f32.partialorder %v2695_v43, 0.0  ;;  %v4226_v52 = vmul.f32 0.2, %v2695_v43  ;;  %v3498_v54 = vpop.f32.mrb[159].mxu1 }
 0x22b   :  { %6624 = vst.msk [vmem:[%s11325_s2 + $0x264] sm:$0xf] %vm6470_vm3, %v7831_v45  ;;  %v7836_v55 = vpack.c.bf16 %v4628_v51, %v4628_v51  ;;  %v4828_v56 = vsel %vm4028_vm12, %v8645_v39, %v4428_v47  ;;  %vm4026_vm14 = vcmp.gt.f32.partialorder %v3495_v44, 0.0  ;;  %v4426_v57 = vmul.f32 0.2, %v3495_v44  ;;  %v8449_v6 = vpop.f32.mrb[160].mxu0 }
 0x22c   :  { %6824 = vst.msk [vmem:[%s11325_s2 + $0x584] sm:$0xf] %vm6470_vm3, %v8031_v50  ;;  %v8036_v58 = vpack.c.bf16 %v4828_v56, %v4828_v56  ;;  %v4626_v59 = vsel %vm3826_vm13, %v2695_v43, %v4226_v52  ;;  %vm3829_vm15 = vcmp.gt.f32.partialorder %v8446_v48, 0.0  ;;  %v4229_v60 = vmul.f32 0.2, %v8446_v48  ;;  %v8649_v7 = vpop.f32.mrb[160].mxu1 }
 0x22d   :  { %6629 = vst.msk [vmem:[%s11325_s2 + $0x278] sm:$0xf] %vm6470_vm3, %v7836_v55  ;;  %v7834_v61 = vpack.c.bf16 %v4626_v59, %v4626_v59  ;;  %v4826_v62 = vsel %vm4026_vm14, %v3495_v44, %v4426_v57  ;;  %vm4029_vm1 = vcmp.gt.f32.partialorder %v8646_v49, 0.0  ;;  %v4429_v63 = vmul.f32 0.2, %v8646_v49  ;;  %v2711_v11 = vpop.f32.mrb[161].mxu0 }
 0x22e   :  { %6829 = vst.msk [vmem:[%s11325_s2 + $0x598] sm:$0xf] %vm6470_vm3, %v8036_v58  ;;  %v8034_v0 = vpack.c.bf16 %v4826_v62, %v4826_v62  ;;  %v4629_v1 = vsel %vm3829_vm15, %v8446_v48, %v4229_v60  ;;  %vm3827_vm0 = vcmp.gt.f32.partialorder %v2698_v53, 0.0  ;;  %v4227_v2 = vmul.f32 0.2, %v2698_v53  ;;  %v3511_v12 = vpop.f32.mrb[161].mxu1 }
 0x22f   :  { %6627 = vst.msk [vmem:[%s11325_s2 + $0x270] sm:$0xf] %vm6470_vm3, %v7834_v61  ;;  %v7837_v3 = vpack.c.bf16 %v4629_v1, %v4629_v1  ;;  %v4829_v4 = vsel %vm4029_vm1, %v8646_v49, %v4429_v63  ;;  %vm4027_vm2 = vcmp.gt.f32.partialorder %v3498_v54, 0.0  ;;  %v4427_v5 = vmul.f32 0.2, %v3498_v54  ;;  %v8450_v16 = vpop.f32.mrb[162].mxu0 }
 0x230   :  { %6827 = vst.msk [vmem:[%s11325_s2 + $0x590] sm:$0xf] %vm6470_vm3, %v8034_v0  ;;  %v8037_v8 = vpack.c.bf16 %v4829_v4, %v4829_v4  ;;  %v4627_v9 = vsel %vm3827_vm0, %v2698_v53, %v4227_v2  ;;  %vm3832_vm4 = vcmp.gt.f32.partialorder %v8449_v6, 0.0  ;;  %v4232_v10 = vmul.f32 0.2, %v8449_v6  ;;  %v8650_v17 = vpop.f32.mrb[162].mxu1 }
 0x231   :  { %6630 = vst.msk [vmem:[%s11325_s2 + $0x27c] sm:$0xf] %vm6470_vm3, %v7837_v3  ;;  %v7835_v13 = vpack.c.bf16 %v4627_v9, %v4627_v9  ;;  %v4827_v14 = vsel %vm4027_vm2, %v3498_v54, %v4427_v5  ;;  %vm4032_vm5 = vcmp.gt.f32.partialorder %v8649_v7, 0.0  ;;  %v4432_v15 = vmul.f32 0.2, %v8649_v7  ;;  %v2714_v21 = vpop.f32.mrb[163].mxu0 }
 0x232   :  { %6830 = vst.msk [vmem:[%s11325_s2 + $0x59c] sm:$0xf] %vm6470_vm3, %v8037_v8  ;;  %v8035_v18 = vpack.c.bf16 %v4827_v14, %v4827_v14  ;;  %v4632_v19 = vsel %vm3832_vm4, %v8449_v6, %v4232_v10  ;;  %vm3830_vm6 = vcmp.gt.f32.partialorder %v2711_v11, 0.0  ;;  %v4230_v20 = vmul.f32 0.2, %v2711_v11  ;;  %v3514_v22 = vpop.f32.mrb[163].mxu1 }
 0x233   :  { %6628 = vst.msk [vmem:[%s11325_s2 + $0x274] sm:$0xf] %vm6470_vm3, %v7835_v13  ;;  %v7840_v23 = vpack.c.bf16 %v4632_v19, %v4632_v19  ;;  %v4832_v24 = vsel %vm4032_vm5, %v8649_v7, %v4432_v15  ;;  %vm4030_vm7 = vcmp.gt.f32.partialorder %v3511_v12, 0.0  ;;  %v4430_v25 = vmul.f32 0.2, %v3511_v12  ;;  %v8453_v38 = vpop.f32.mrb[164].mxu0 }
 0x234   :  { %6828 = vst.msk [vmem:[%s11325_s2 + $0x594] sm:$0xf] %vm6470_vm3, %v8035_v18  ;;  %v8040_v26 = vpack.c.bf16 %v4832_v24, %v4832_v24  ;;  %v4630_v27 = vsel %vm3830_vm6, %v2711_v11, %v4230_v20  ;;  %vm3833_vm8 = vcmp.gt.f32.partialorder %v8450_v16, 0.0  ;;  %v4233_v28 = vmul.f32 0.2, %v8450_v16  ;;  %v8653_v39 = vpop.f32.mrb[164].mxu1 }
 0x235   :  { %6633 = vst.msk [vmem:[%s11325_s2 + $0x288] sm:$0xf] %vm6470_vm3, %v7840_v23  ;;  %v7838_v29 = vpack.c.bf16 %v4630_v27, %v4630_v27  ;;  %v4830_v30 = vsel %vm4030_vm7, %v3511_v12, %v4430_v25  ;;  %vm4033_vm9 = vcmp.gt.f32.partialorder %v8650_v17, 0.0  ;;  %v4433_v31 = vmul.f32 0.2, %v8650_v17  ;;  %v2727_v43 = vpop.f32.mrb[165].mxu0 }
 0x236   :  { %6833 = vst.msk [vmem:[%s11325_s2 + $0x5a8] sm:$0xf] %vm6470_vm3, %v8040_v26  ;;  %v8038_v32 = vpack.c.bf16 %v4830_v30, %v4830_v30  ;;  %v4633_v33 = vsel %vm3833_vm8, %v8450_v16, %v4233_v28  ;;  %vm3831_vm10 = vcmp.gt.f32.partialorder %v2714_v21, 0.0  ;;  %v4231_v34 = vmul.f32 0.2, %v2714_v21  ;;  %v3527_v44 = vpop.f32.mrb[165].mxu1 }
 0x237   :  { %6631 = vst.msk [vmem:[%s11325_s2 + $0x280] sm:$0xf] %vm6470_vm3, %v7838_v29  ;;  %v7841_v35 = vpack.c.bf16 %v4633_v33, %v4633_v33  ;;  %v4833_v36 = vsel %vm4033_vm9, %v8650_v17, %v4433_v31  ;;  %vm4031_vm11 = vcmp.gt.f32.partialorder %v3514_v22, 0.0  ;;  %v4431_v37 = vmul.f32 0.2, %v3514_v22  ;;  %v8454_v48 = vpop.f32.mrb[166].mxu0 }
 0x238   :  { %6831 = vst.msk [vmem:[%s11325_s2 + $0x5a0] sm:$0xf] %vm6470_vm3, %v8038_v32  ;;  %v8041_v40 = vpack.c.bf16 %v4833_v36, %v4833_v36  ;;  %v4631_v41 = vsel %vm3831_vm10, %v2714_v21, %v4231_v34  ;;  %vm3836_vm12 = vcmp.gt.f32.partialorder %v8453_v38, 0.0  ;;  %v4236_v42 = vmul.f32 0.2, %v8453_v38  ;;  %v8654_v49 = vpop.f32.mrb[166].mxu1 }
 0x239   :  { %6634 = vst.msk [vmem:[%s11325_s2 + $0x28c] sm:$0xf] %vm6470_vm3, %v7841_v35  ;;  %v7839_v45 = vpack.c.bf16 %v4631_v41, %v4631_v41  ;;  %v4831_v46 = vsel %vm4031_vm11, %v3514_v22, %v4431_v37  ;;  %vm4036_vm13 = vcmp.gt.f32.partialorder %v8653_v39, 0.0  ;;  %v4436_v47 = vmul.f32 0.2, %v8653_v39  ;;  %v2730_v53 = vpop.f32.mrb[167].mxu0 }
 0x23a   :  { %6834 = vst.msk [vmem:[%s11325_s2 + $0x5ac] sm:$0xf] %vm6470_vm3, %v8041_v40  ;;  %v8039_v50 = vpack.c.bf16 %v4831_v46, %v4831_v46  ;;  %v4636_v51 = vsel %vm3836_vm12, %v8453_v38, %v4236_v42  ;;  %vm3834_vm14 = vcmp.gt.f32.partialorder %v2727_v43, 0.0  ;;  %v4234_v52 = vmul.f32 0.2, %v2727_v43  ;;  %v3530_v54 = vpop.f32.mrb[167].mxu1 }
 0x23b   :  { %6632 = vst.msk [vmem:[%s11325_s2 + $0x284] sm:$0xf] %vm6470_vm3, %v7839_v45  ;;  %v7844_v55 = vpack.c.bf16 %v4636_v51, %v4636_v51  ;;  %v4836_v56 = vsel %vm4036_vm13, %v8653_v39, %v4436_v47  ;;  %vm4034_vm15 = vcmp.gt.f32.partialorder %v3527_v44, 0.0  ;;  %v4434_v57 = vmul.f32 0.2, %v3527_v44  ;;  %v8457_v6 = vpop.f32.mrb[168].mxu0 }
 0x23c   :  { %6832 = vst.msk [vmem:[%s11325_s2 + $0x5a4] sm:$0xf] %vm6470_vm3, %v8039_v50  ;;  %v8044_v58 = vpack.c.bf16 %v4836_v56, %v4836_v56  ;;  %v4634_v59 = vsel %vm3834_vm14, %v2727_v43, %v4234_v52  ;;  %vm3837_vm1 = vcmp.gt.f32.partialorder %v8454_v48, 0.0  ;;  %v4237_v60 = vmul.f32 0.2, %v8454_v48  ;;  %v8657_v7 = vpop.f32.mrb[168].mxu1 }
 0x23d   :  { %6637 = vst.msk [vmem:[%s11325_s2 + $0x298] sm:$0xf] %vm6470_vm3, %v7844_v55  ;;  %v7842_v61 = vpack.c.bf16 %v4634_v59, %v4634_v59  ;;  %v4834_v62 = vsel %vm4034_vm15, %v3527_v44, %v4434_v57  ;;  %vm4037_vm0 = vcmp.gt.f32.partialorder %v8654_v49, 0.0  ;;  %v4437_v63 = vmul.f32 0.2, %v8654_v49  ;;  %v2743_v11 = vpop.f32.mrb[169].mxu0 }
 0x23e   :  { %6837 = vst.msk [vmem:[%s11325_s2 + $0x5b8] sm:$0xf] %vm6470_vm3, %v8044_v58  ;;  %v8042_v0 = vpack.c.bf16 %v4834_v62, %v4834_v62  ;;  %v4637_v1 = vsel %vm3837_vm1, %v8454_v48, %v4237_v60  ;;  %vm3835_vm2 = vcmp.gt.f32.partialorder %v2730_v53, 0.0  ;;  %v4235_v2 = vmul.f32 0.2, %v2730_v53  ;;  %v3543_v12 = vpop.f32.mrb[169].mxu1 }
 0x23f   :  { %6635 = vst.msk [vmem:[%s11325_s2 + $0x290] sm:$0xf] %vm6470_vm3, %v7842_v61  ;;  %v7845_v3 = vpack.c.bf16 %v4637_v1, %v4637_v1  ;;  %v4837_v4 = vsel %vm4037_vm0, %v8654_v49, %v4437_v63  ;;  %vm4035_vm4 = vcmp.gt.f32.partialorder %v3530_v54, 0.0  ;;  %v4435_v5 = vmul.f32 0.2, %v3530_v54  ;;  %v8458_v16 = vpop.f32.mrb[170].mxu0 }
 0x240   :  { %6835 = vst.msk [vmem:[%s11325_s2 + $0x5b0] sm:$0xf] %vm6470_vm3, %v8042_v0  ;;  %v8045_v8 = vpack.c.bf16 %v4837_v4, %v4837_v4  ;;  %v4635_v9 = vsel %vm3835_vm2, %v2730_v53, %v4235_v2  ;;  %vm3840_vm5 = vcmp.gt.f32.partialorder %v8457_v6, 0.0  ;;  %v4240_v10 = vmul.f32 0.2, %v8457_v6  ;;  %v8658_v17 = vpop.f32.mrb[170].mxu1 }
 0x241   :  { %6638 = vst.msk [vmem:[%s11325_s2 + $0x29c] sm:$0xf] %vm6470_vm3, %v7845_v3  ;;  %v7843_v13 = vpack.c.bf16 %v4635_v9, %v4635_v9  ;;  %v4835_v14 = vsel %vm4035_vm4, %v3530_v54, %v4435_v5  ;;  %vm4040_vm6 = vcmp.gt.f32.partialorder %v8657_v7, 0.0  ;;  %v4440_v15 = vmul.f32 0.2, %v8657_v7  ;;  %v2746_v21 = vpop.f32.mrb[171].mxu0 }
 0x242   :  { %6838 = vst.msk [vmem:[%s11325_s2 + $0x5bc] sm:$0xf] %vm6470_vm3, %v8045_v8  ;;  %v8043_v18 = vpack.c.bf16 %v4835_v14, %v4835_v14  ;;  %v4640_v19 = vsel %vm3840_vm5, %v8457_v6, %v4240_v10  ;;  %vm3838_vm7 = vcmp.gt.f32.partialorder %v2743_v11, 0.0  ;;  %v4238_v20 = vmul.f32 0.2, %v2743_v11  ;;  %v3546_v22 = vpop.f32.mrb[171].mxu1 }
 0x243   :  { %6636 = vst.msk [vmem:[%s11325_s2 + $0x294] sm:$0xf] %vm6470_vm3, %v7843_v13  ;;  %v7848_v23 = vpack.c.bf16 %v4640_v19, %v4640_v19  ;;  %v4840_v24 = vsel %vm4040_vm6, %v8657_v7, %v4440_v15  ;;  %vm4038_vm8 = vcmp.gt.f32.partialorder %v3543_v12, 0.0  ;;  %v4438_v25 = vmul.f32 0.2, %v3543_v12  ;;  %v8461_v38 = vpop.f32.mrb[172].mxu0 }
 0x244   :  { %6836 = vst.msk [vmem:[%s11325_s2 + $0x5b4] sm:$0xf] %vm6470_vm3, %v8043_v18  ;;  %v8048_v26 = vpack.c.bf16 %v4840_v24, %v4840_v24  ;;  %v4638_v27 = vsel %vm3838_vm7, %v2743_v11, %v4238_v20  ;;  %vm3841_vm9 = vcmp.gt.f32.partialorder %v8458_v16, 0.0  ;;  %v4241_v28 = vmul.f32 0.2, %v8458_v16  ;;  %v8661_v39 = vpop.f32.mrb[172].mxu1 }
 0x245   :  { %6641 = vst.msk [vmem:[%s11325_s2 + $0x2a8] sm:$0xf] %vm6470_vm3, %v7848_v23  ;;  %v7846_v29 = vpack.c.bf16 %v4638_v27, %v4638_v27  ;;  %v4838_v30 = vsel %vm4038_vm8, %v3543_v12, %v4438_v25  ;;  %vm4041_vm10 = vcmp.gt.f32.partialorder %v8658_v17, 0.0  ;;  %v4441_v31 = vmul.f32 0.2, %v8658_v17  ;;  %v2759_v43 = vpop.f32.mrb[173].mxu0 }
 0x246   :  { %6841 = vst.msk [vmem:[%s11325_s2 + $0x5c8] sm:$0xf] %vm6470_vm3, %v8048_v26  ;;  %v8046_v32 = vpack.c.bf16 %v4838_v30, %v4838_v30  ;;  %v4641_v33 = vsel %vm3841_vm9, %v8458_v16, %v4241_v28  ;;  %vm3839_vm11 = vcmp.gt.f32.partialorder %v2746_v21, 0.0  ;;  %v4239_v34 = vmul.f32 0.2, %v2746_v21  ;;  %v3559_v44 = vpop.f32.mrb[173].mxu1 }
 0x247   :  { %6639 = vst.msk [vmem:[%s11325_s2 + $0x2a0] sm:$0xf] %vm6470_vm3, %v7846_v29  ;;  %v7849_v35 = vpack.c.bf16 %v4641_v33, %v4641_v33  ;;  %v4841_v36 = vsel %vm4041_vm10, %v8658_v17, %v4441_v31  ;;  %vm4039_vm12 = vcmp.gt.f32.partialorder %v3546_v22, 0.0  ;;  %v4439_v37 = vmul.f32 0.2, %v3546_v22  ;;  %v8462_v48 = vpop.f32.mrb[174].mxu0 }
 0x248   :  { %6839 = vst.msk [vmem:[%s11325_s2 + $0x5c0] sm:$0xf] %vm6470_vm3, %v8046_v32  ;;  %v8049_v40 = vpack.c.bf16 %v4841_v36, %v4841_v36  ;;  %v4639_v41 = vsel %vm3839_vm11, %v2746_v21, %v4239_v34  ;;  %vm3844_vm13 = vcmp.gt.f32.partialorder %v8461_v38, 0.0  ;;  %v4244_v42 = vmul.f32 0.2, %v8461_v38  ;;  %v8662_v49 = vpop.f32.mrb[174].mxu1 }
 0x249   :  { %6642 = vst.msk [vmem:[%s11325_s2 + $0x2ac] sm:$0xf] %vm6470_vm3, %v7849_v35  ;;  %v7847_v45 = vpack.c.bf16 %v4639_v41, %v4639_v41  ;;  %v4839_v46 = vsel %vm4039_vm12, %v3546_v22, %v4439_v37  ;;  %vm4044_vm14 = vcmp.gt.f32.partialorder %v8661_v39, 0.0  ;;  %v4444_v47 = vmul.f32 0.2, %v8661_v39  ;;  %v2762_v53 = vpop.f32.mrb[175].mxu0 }
 0x24a   :  { %6842 = vst.msk [vmem:[%s11325_s2 + $0x5cc] sm:$0xf] %vm6470_vm3, %v8049_v40  ;;  %v8047_v50 = vpack.c.bf16 %v4839_v46, %v4839_v46  ;;  %v4644_v51 = vsel %vm3844_vm13, %v8461_v38, %v4244_v42  ;;  %vm3842_vm15 = vcmp.gt.f32.partialorder %v2759_v43, 0.0  ;;  %v4242_v52 = vmul.f32 0.2, %v2759_v43  ;;  %v3562_v54 = vpop.f32.mrb[175].mxu1 }
 0x24b   :  { %6640 = vst.msk [vmem:[%s11325_s2 + $0x2a4] sm:$0xf] %vm6470_vm3, %v7847_v45  ;;  %v7852_v55 = vpack.c.bf16 %v4644_v51, %v4644_v51  ;;  %v4844_v56 = vsel %vm4044_vm14, %v8661_v39, %v4444_v47  ;;  %vm4042_vm1 = vcmp.gt.f32.partialorder %v3559_v44, 0.0  ;;  %v4442_v57 = vmul.f32 0.2, %v3559_v44  ;;  %v8465_v6 = vpop.f32.mrb[176].mxu0 }
 0x24c   :  { %6840 = vst.msk [vmem:[%s11325_s2 + $0x5c4] sm:$0xf] %vm6470_vm3, %v8047_v50  ;;  %v8052_v58 = vpack.c.bf16 %v4844_v56, %v4844_v56  ;;  %v4642_v59 = vsel %vm3842_vm15, %v2759_v43, %v4242_v52  ;;  %vm3845_vm0 = vcmp.gt.f32.partialorder %v8462_v48, 0.0  ;;  %v4245_v60 = vmul.f32 0.2, %v8462_v48  ;;  %v8665_v7 = vpop.f32.mrb[176].mxu1 }
 0x24d   :  { %6645 = vst.msk [vmem:[%s11325_s2 + $0x2b8] sm:$0xf] %vm6470_vm3, %v7852_v55  ;;  %v7850_v61 = vpack.c.bf16 %v4642_v59, %v4642_v59  ;;  %v4842_v62 = vsel %vm4042_vm1, %v3559_v44, %v4442_v57  ;;  %vm4045_vm2 = vcmp.gt.f32.partialorder %v8662_v49, 0.0  ;;  %v4445_v63 = vmul.f32 0.2, %v8662_v49  ;;  %v2775_v11 = vpop.f32.mrb[177].mxu0 }
 0x24e   :  { %6845 = vst.msk [vmem:[%s11325_s2 + $0x5d8] sm:$0xf] %vm6470_vm3, %v8052_v58  ;;  %v8050_v0 = vpack.c.bf16 %v4842_v62, %v4842_v62  ;;  %v4645_v1 = vsel %vm3845_vm0, %v8462_v48, %v4245_v60  ;;  %vm3843_vm4 = vcmp.gt.f32.partialorder %v2762_v53, 0.0  ;;  %v4243_v2 = vmul.f32 0.2, %v2762_v53  ;;  %v3575_v12 = vpop.f32.mrb[177].mxu1 }
 0x24f   :  { %6643 = vst.msk [vmem:[%s11325_s2 + $0x2b0] sm:$0xf] %vm6470_vm3, %v7850_v61  ;;  %v7853_v3 = vpack.c.bf16 %v4645_v1, %v4645_v1  ;;  %v4845_v4 = vsel %vm4045_vm2, %v8662_v49, %v4445_v63  ;;  %vm4043_vm5 = vcmp.gt.f32.partialorder %v3562_v54, 0.0  ;;  %v4443_v5 = vmul.f32 0.2, %v3562_v54  ;;  %v8466_v16 = vpop.f32.mrb[178].mxu0 }
 0x250   :  { %6843 = vst.msk [vmem:[%s11325_s2 + $0x5d0] sm:$0xf] %vm6470_vm3, %v8050_v0  ;;  %v8053_v8 = vpack.c.bf16 %v4845_v4, %v4845_v4  ;;  %v4643_v9 = vsel %vm3843_vm4, %v2762_v53, %v4243_v2  ;;  %vm3848_vm6 = vcmp.gt.f32.partialorder %v8465_v6, 0.0  ;;  %v4248_v10 = vmul.f32 0.2, %v8465_v6  ;;  %v8666_v17 = vpop.f32.mrb[178].mxu1 }
 0x251   :  { %6646 = vst.msk [vmem:[%s11325_s2 + $0x2bc] sm:$0xf] %vm6470_vm3, %v7853_v3  ;;  %v7851_v13 = vpack.c.bf16 %v4643_v9, %v4643_v9  ;;  %v4843_v14 = vsel %vm4043_vm5, %v3562_v54, %v4443_v5  ;;  %vm4048_vm7 = vcmp.gt.f32.partialorder %v8665_v7, 0.0  ;;  %v4448_v15 = vmul.f32 0.2, %v8665_v7  ;;  %v2778_v21 = vpop.f32.mrb[179].mxu0 }
 0x252   :  { %6846 = vst.msk [vmem:[%s11325_s2 + $0x5dc] sm:$0xf] %vm6470_vm3, %v8053_v8  ;;  %v8051_v18 = vpack.c.bf16 %v4843_v14, %v4843_v14  ;;  %v4648_v19 = vsel %vm3848_vm6, %v8465_v6, %v4248_v10  ;;  %vm3846_vm8 = vcmp.gt.f32.partialorder %v2775_v11, 0.0  ;;  %v4246_v20 = vmul.f32 0.2, %v2775_v11  ;;  %v3578_v22 = vpop.f32.mrb[179].mxu1 }
 0x253   :  { %6644 = vst.msk [vmem:[%s11325_s2 + $0x2b4] sm:$0xf] %vm6470_vm3, %v7851_v13  ;;  %v7856_v23 = vpack.c.bf16 %v4648_v19, %v4648_v19  ;;  %v4848_v24 = vsel %vm4048_vm7, %v8665_v7, %v4448_v15  ;;  %vm4046_vm9 = vcmp.gt.f32.partialorder %v3575_v12, 0.0  ;;  %v4446_v25 = vmul.f32 0.2, %v3575_v12  ;;  %v8469_v38 = vpop.f32.mrb[180].mxu0 }
 0x254   :  { %6844 = vst.msk [vmem:[%s11325_s2 + $0x5d4] sm:$0xf] %vm6470_vm3, %v8051_v18  ;;  %v8056_v26 = vpack.c.bf16 %v4848_v24, %v4848_v24  ;;  %v4646_v27 = vsel %vm3846_vm8, %v2775_v11, %v4246_v20  ;;  %vm3849_vm10 = vcmp.gt.f32.partialorder %v8466_v16, 0.0  ;;  %v4249_v28 = vmul.f32 0.2, %v8466_v16  ;;  %v8669_v39 = vpop.f32.mrb[180].mxu1 }
 0x255   :  { %6649 = vst.msk [vmem:[%s11325_s2 + $0x2c8] sm:$0xf] %vm6470_vm3, %v7856_v23  ;;  %v7854_v29 = vpack.c.bf16 %v4646_v27, %v4646_v27  ;;  %v4846_v30 = vsel %vm4046_vm9, %v3575_v12, %v4446_v25  ;;  %vm4049_vm11 = vcmp.gt.f32.partialorder %v8666_v17, 0.0  ;;  %v4449_v31 = vmul.f32 0.2, %v8666_v17  ;;  %v2791_v43 = vpop.f32.mrb[181].mxu0 }
 0x256   :  { %6849 = vst.msk [vmem:[%s11325_s2 + $0x5e8] sm:$0xf] %vm6470_vm3, %v8056_v26  ;;  %v8054_v32 = vpack.c.bf16 %v4846_v30, %v4846_v30  ;;  %v4649_v33 = vsel %vm3849_vm10, %v8466_v16, %v4249_v28  ;;  %vm3847_vm12 = vcmp.gt.f32.partialorder %v2778_v21, 0.0  ;;  %v4247_v34 = vmul.f32 0.2, %v2778_v21  ;;  %v3591_v44 = vpop.f32.mrb[181].mxu1 }
 0x257   :  { %6647 = vst.msk [vmem:[%s11325_s2 + $0x2c0] sm:$0xf] %vm6470_vm3, %v7854_v29  ;;  %v7857_v35 = vpack.c.bf16 %v4649_v33, %v4649_v33  ;;  %v4849_v36 = vsel %vm4049_vm11, %v8666_v17, %v4449_v31  ;;  %vm4047_vm13 = vcmp.gt.f32.partialorder %v3578_v22, 0.0  ;;  %v4447_v37 = vmul.f32 0.2, %v3578_v22  ;;  %v8470_v48 = vpop.f32.mrb[182].mxu0 }
 0x258   :  { %6847 = vst.msk [vmem:[%s11325_s2 + $0x5e0] sm:$0xf] %vm6470_vm3, %v8054_v32  ;;  %v8057_v40 = vpack.c.bf16 %v4849_v36, %v4849_v36  ;;  %v4647_v41 = vsel %vm3847_vm12, %v2778_v21, %v4247_v34  ;;  %vm3852_vm14 = vcmp.gt.f32.partialorder %v8469_v38, 0.0  ;;  %v4252_v42 = vmul.f32 0.2, %v8469_v38  ;;  %v8670_v49 = vpop.f32.mrb[182].mxu1 }
 0x259   :  { %6650 = vst.msk [vmem:[%s11325_s2 + $0x2cc] sm:$0xf] %vm6470_vm3, %v7857_v35  ;;  %v7855_v45 = vpack.c.bf16 %v4647_v41, %v4647_v41  ;;  %v4847_v46 = vsel %vm4047_vm13, %v3578_v22, %v4447_v37  ;;  %vm4052_vm15 = vcmp.gt.f32.partialorder %v8669_v39, 0.0  ;;  %v4452_v47 = vmul.f32 0.2, %v8669_v39  ;;  %v2794_v53 = vpop.f32.mrb[183].mxu0 }
 0x25a   :  { %6850 = vst.msk [vmem:[%s11325_s2 + $0x5ec] sm:$0xf] %vm6470_vm3, %v8057_v40  ;;  %v8055_v50 = vpack.c.bf16 %v4847_v46, %v4847_v46  ;;  %v4652_v51 = vsel %vm3852_vm14, %v8469_v38, %v4252_v42  ;;  %vm3850_vm1 = vcmp.gt.f32.partialorder %v2791_v43, 0.0  ;;  %v4250_v52 = vmul.f32 0.2, %v2791_v43  ;;  %v3594_v54 = vpop.f32.mrb[183].mxu1 }
 0x25b   :  { %6648 = vst.msk [vmem:[%s11325_s2 + $0x2c4] sm:$0xf] %vm6470_vm3, %v7855_v45  ;;  %v7860_v55 = vpack.c.bf16 %v4652_v51, %v4652_v51  ;;  %v4852_v56 = vsel %vm4052_vm15, %v8669_v39, %v4452_v47  ;;  %vm4050_vm0 = vcmp.gt.f32.partialorder %v3591_v44, 0.0  ;;  %v4450_v57 = vmul.f32 0.2, %v3591_v44  ;;  %v8473_v6 = vpop.f32.mrb[184].mxu0 }
 0x25c   :  { %6848 = vst.msk [vmem:[%s11325_s2 + $0x5e4] sm:$0xf] %vm6470_vm3, %v8055_v50  ;;  %v8060_v58 = vpack.c.bf16 %v4852_v56, %v4852_v56  ;;  %v4650_v59 = vsel %vm3850_vm1, %v2791_v43, %v4250_v52  ;;  %vm3853_vm2 = vcmp.gt.f32.partialorder %v8470_v48, 0.0  ;;  %v4253_v60 = vmul.f32 0.2, %v8470_v48  ;;  %v8673_v7 = vpop.f32.mrb[184].mxu1 }
 0x25d   :  { %6653 = vst.msk [vmem:[%s11325_s2 + $0x2d8] sm:$0xf] %vm6470_vm3, %v7860_v55  ;;  %v7858_v61 = vpack.c.bf16 %v4650_v59, %v4650_v59  ;;  %v4850_v62 = vsel %vm4050_vm0, %v3591_v44, %v4450_v57  ;;  %vm4053_vm4 = vcmp.gt.f32.partialorder %v8670_v49, 0.0  ;;  %v4453_v63 = vmul.f32 0.2, %v8670_v49  ;;  %v2807_v11 = vpop.f32.mrb[185].mxu0 }
 0x25e   :  { %6853 = vst.msk [vmem:[%s11325_s2 + $0x5f8] sm:$0xf] %vm6470_vm3, %v8060_v58  ;;  %v8058_v0 = vpack.c.bf16 %v4850_v62, %v4850_v62  ;;  %v4653_v1 = vsel %vm3853_vm2, %v8470_v48, %v4253_v60  ;;  %vm3851_vm5 = vcmp.gt.f32.partialorder %v2794_v53, 0.0  ;;  %v4251_v2 = vmul.f32 0.2, %v2794_v53  ;;  %v3607_v12 = vpop.f32.mrb[185].mxu1 }
 0x25f   :  { %6651 = vst.msk [vmem:[%s11325_s2 + $0x2d0] sm:$0xf] %vm6470_vm3, %v7858_v61  ;;  %v7861_v3 = vpack.c.bf16 %v4653_v1, %v4653_v1  ;;  %v4853_v4 = vsel %vm4053_vm4, %v8670_v49, %v4453_v63  ;;  %vm4051_vm6 = vcmp.gt.f32.partialorder %v3594_v54, 0.0  ;;  %v4451_v5 = vmul.f32 0.2, %v3594_v54  ;;  %v8474_v16 = vpop.f32.mrb[186].mxu0 }
 0x260   :  { %6851 = vst.msk [vmem:[%s11325_s2 + $0x5f0] sm:$0xf] %vm6470_vm3, %v8058_v0  ;;  %v8061_v8 = vpack.c.bf16 %v4853_v4, %v4853_v4  ;;  %v4651_v9 = vsel %vm3851_vm5, %v2794_v53, %v4251_v2  ;;  %vm3856_vm7 = vcmp.gt.f32.partialorder %v8473_v6, 0.0  ;;  %v4256_v10 = vmul.f32 0.2, %v8473_v6  ;;  %v8674_v17 = vpop.f32.mrb[186].mxu1 }
 0x261   :  { %6654 = vst.msk [vmem:[%s11325_s2 + $0x2dc] sm:$0xf] %vm6470_vm3, %v7861_v3  ;;  %v7859_v13 = vpack.c.bf16 %v4651_v9, %v4651_v9  ;;  %v4851_v14 = vsel %vm4051_vm6, %v3594_v54, %v4451_v5  ;;  %vm4056_vm8 = vcmp.gt.f32.partialorder %v8673_v7, 0.0  ;;  %v4456_v15 = vmul.f32 0.2, %v8673_v7  ;;  %v2810_v21 = vpop.f32.mrb[187].mxu0 }
 0x262   :  { %6854 = vst.msk [vmem:[%s11325_s2 + $0x5fc] sm:$0xf] %vm6470_vm3, %v8061_v8  ;;  %v8059_v18 = vpack.c.bf16 %v4851_v14, %v4851_v14  ;;  %v4656_v19 = vsel %vm3856_vm7, %v8473_v6, %v4256_v10  ;;  %vm3854_vm9 = vcmp.gt.f32.partialorder %v2807_v11, 0.0  ;;  %v4254_v20 = vmul.f32 0.2, %v2807_v11  ;;  %v3610_v22 = vpop.f32.mrb[187].mxu1 }
 0x263   :  { %6652 = vst.msk [vmem:[%s11325_s2 + $0x2d4] sm:$0xf] %vm6470_vm3, %v7859_v13  ;;  %v7864_v23 = vpack.c.bf16 %v4656_v19, %v4656_v19  ;;  %v4856_v24 = vsel %vm4056_vm8, %v8673_v7, %v4456_v15  ;;  %vm4054_vm10 = vcmp.gt.f32.partialorder %v3607_v12, 0.0  ;;  %v4454_v25 = vmul.f32 0.2, %v3607_v12  ;;  %v8477_v38 = vpop.f32.mrb[188].mxu0 }
 0x264   :  { %6852 = vst.msk [vmem:[%s11325_s2 + $0x5f4] sm:$0xf] %vm6470_vm3, %v8059_v18  ;;  %v8064_v26 = vpack.c.bf16 %v4856_v24, %v4856_v24  ;;  %v4654_v27 = vsel %vm3854_vm9, %v2807_v11, %v4254_v20  ;;  %vm3857_vm11 = vcmp.gt.f32.partialorder %v8474_v16, 0.0  ;;  %v4257_v28 = vmul.f32 0.2, %v8474_v16  ;;  %v8677_v39 = vpop.f32.mrb[188].mxu1 }
 0x265   :  { %6657 = vst.msk [vmem:[%s11325_s2 + $0x2e8] sm:$0xf] %vm6470_vm3, %v7864_v23  ;;  %v7862_v29 = vpack.c.bf16 %v4654_v27, %v4654_v27  ;;  %v4854_v30 = vsel %vm4054_vm10, %v3607_v12, %v4454_v25  ;;  %vm4057_vm12 = vcmp.gt.f32.partialorder %v8674_v17, 0.0  ;;  %v4457_v31 = vmul.f32 0.2, %v8674_v17  ;;  %v2823_v43 = vpop.f32.mrb[189].mxu0 }
 0x266   :  { %6857 = vst.msk [vmem:[%s11325_s2 + $0x608] sm:$0xf] %vm6470_vm3, %v8064_v26  ;;  %v8062_v32 = vpack.c.bf16 %v4854_v30, %v4854_v30  ;;  %v4657_v33 = vsel %vm3857_vm11, %v8474_v16, %v4257_v28  ;;  %vm3855_vm13 = vcmp.gt.f32.partialorder %v2810_v21, 0.0  ;;  %v4255_v34 = vmul.f32 0.2, %v2810_v21  ;;  %v3623_v44 = vpop.f32.mrb[189].mxu1 }
 0x267   :  { %6655 = vst.msk [vmem:[%s11325_s2 + $0x2e0] sm:$0xf] %vm6470_vm3, %v7862_v29  ;;  %v7865_v35 = vpack.c.bf16 %v4657_v33, %v4657_v33  ;;  %v4857_v36 = vsel %vm4057_vm12, %v8674_v17, %v4457_v31  ;;  %vm4055_vm14 = vcmp.gt.f32.partialorder %v3610_v22, 0.0  ;;  %v4455_v37 = vmul.f32 0.2, %v3610_v22  ;;  %v8478_v48 = vpop.f32.mrb[190].mxu0 }
 0x268   :  { %6855 = vst.msk [vmem:[%s11325_s2 + $0x600] sm:$0xf] %vm6470_vm3, %v8062_v32  ;;  %v8065_v40 = vpack.c.bf16 %v4857_v36, %v4857_v36  ;;  %v4655_v41 = vsel %vm3855_vm13, %v2810_v21, %v4255_v34  ;;  %vm3860_vm15 = vcmp.gt.f32.partialorder %v8477_v38, 0.0  ;;  %v4260_v42 = vmul.f32 0.2, %v8477_v38  ;;  %v8678_v49 = vpop.f32.mrb[190].mxu1 }
 0x269   :  { %6658 = vst.msk [vmem:[%s11325_s2 + $0x2ec] sm:$0xf] %vm6470_vm3, %v7865_v35  ;;  %v7863_v45 = vpack.c.bf16 %v4655_v41, %v4655_v41  ;;  %v4855_v46 = vsel %vm4055_vm14, %v3610_v22, %v4455_v37  ;;  %vm4060_vm1 = vcmp.gt.f32.partialorder %v8677_v39, 0.0  ;;  %v4460_v47 = vmul.f32 0.2, %v8677_v39  ;;  %v2826_v53 = vpop.f32.mrb[191].mxu0 }
 0x26a   :  { %6858 = vst.msk [vmem:[%s11325_s2 + $0x60c] sm:$0xf] %vm6470_vm3, %v8065_v40  ;;  %v8063_v50 = vpack.c.bf16 %v4855_v46, %v4855_v46  ;;  %v4660_v51 = vsel %vm3860_vm15, %v8477_v38, %v4260_v42  ;;  %vm3858_vm0 = vcmp.gt.f32.partialorder %v2823_v43, 0.0  ;;  %v4258_v52 = vmul.f32 0.2, %v2823_v43  ;;  %v3626_v54 = vpop.f32.mrb[191].mxu1 }
 0x26b   :  { %6656 = vst.msk [vmem:[%s11325_s2 + $0x2e4] sm:$0xf] %vm6470_vm3, %v7863_v45  ;;  %v7868_v55 = vpack.c.bf16 %v4660_v51, %v4660_v51  ;;  %v4860_v56 = vsel %vm4060_vm1, %v8677_v39, %v4460_v47  ;;  %vm4058_vm2 = vcmp.gt.f32.partialorder %v3623_v44, 0.0  ;;  %v4458_v57 = vmul.f32 0.2, %v3623_v44  ;;  %v8481_v6 = vpop.f32.mrb[192].mxu0 }
 0x26c   :  { %6856 = vst.msk [vmem:[%s11325_s2 + $0x604] sm:$0xf] %vm6470_vm3, %v8063_v50  ;;  %v8068_v58 = vpack.c.bf16 %v4860_v56, %v4860_v56  ;;  %v4658_v59 = vsel %vm3858_vm0, %v2823_v43, %v4258_v52  ;;  %vm3861_vm4 = vcmp.gt.f32.partialorder %v8478_v48, 0.0  ;;  %v4261_v60 = vmul.f32 0.2, %v8478_v48  ;;  %v8681_v7 = vpop.f32.mrb[192].mxu1 }
 0x26d   :  { %6661 = vst.msk [vmem:[%s11325_s2 + $0x2f8] sm:$0xf] %vm6470_vm3, %v7868_v55  ;;  %v7866_v61 = vpack.c.bf16 %v4658_v59, %v4658_v59  ;;  %v4858_v62 = vsel %vm4058_vm2, %v3623_v44, %v4458_v57  ;;  %vm4061_vm5 = vcmp.gt.f32.partialorder %v8678_v49, 0.0  ;;  %v4461_v63 = vmul.f32 0.2, %v8678_v49  ;;  %v2839_v11 = vpop.f32.mrb[193].mxu0 }
 0x26e   :  { %6861 = vst.msk [vmem:[%s11325_s2 + $0x618] sm:$0xf] %vm6470_vm3, %v8068_v58  ;;  %v8066_v0 = vpack.c.bf16 %v4858_v62, %v4858_v62  ;;  %v4661_v1 = vsel %vm3861_vm4, %v8478_v48, %v4261_v60  ;;  %vm3859_vm6 = vcmp.gt.f32.partialorder %v2826_v53, 0.0  ;;  %v4259_v2 = vmul.f32 0.2, %v2826_v53  ;;  %v3639_v12 = vpop.f32.mrb[193].mxu1 }
 0x26f   :  { %6659 = vst.msk [vmem:[%s11325_s2 + $0x2f0] sm:$0xf] %vm6470_vm3, %v7866_v61  ;;  %v7869_v3 = vpack.c.bf16 %v4661_v1, %v4661_v1  ;;  %v4861_v4 = vsel %vm4061_vm5, %v8678_v49, %v4461_v63  ;;  %vm4059_vm7 = vcmp.gt.f32.partialorder %v3626_v54, 0.0  ;;  %v4459_v5 = vmul.f32 0.2, %v3626_v54  ;;  %v8482_v16 = vpop.f32.mrb[194].mxu0 }
 0x270   :  { %6859 = vst.msk [vmem:[%s11325_s2 + $0x610] sm:$0xf] %vm6470_vm3, %v8066_v0  ;;  %v8069_v8 = vpack.c.bf16 %v4861_v4, %v4861_v4  ;;  %v4659_v9 = vsel %vm3859_vm6, %v2826_v53, %v4259_v2  ;;  %vm3864_vm8 = vcmp.gt.f32.partialorder %v8481_v6, 0.0  ;;  %v4264_v10 = vmul.f32 0.2, %v8481_v6  ;;  %v8682_v17 = vpop.f32.mrb[194].mxu1 }
 0x271   :  { %6662 = vst.msk [vmem:[%s11325_s2 + $0x2fc] sm:$0xf] %vm6470_vm3, %v7869_v3  ;;  %v7867_v13 = vpack.c.bf16 %v4659_v9, %v4659_v9  ;;  %v4859_v14 = vsel %vm4059_vm7, %v3626_v54, %v4459_v5  ;;  %vm4064_vm9 = vcmp.gt.f32.partialorder %v8681_v7, 0.0  ;;  %v4464_v15 = vmul.f32 0.2, %v8681_v7  ;;  %v2842_v21 = vpop.f32.mrb[195].mxu0 }
 0x272   :  { %6862 = vst.msk [vmem:[%s11325_s2 + $0x61c] sm:$0xf] %vm6470_vm3, %v8069_v8  ;;  %v8067_v18 = vpack.c.bf16 %v4859_v14, %v4859_v14  ;;  %v4664_v19 = vsel %vm3864_vm8, %v8481_v6, %v4264_v10  ;;  %vm3862_vm10 = vcmp.gt.f32.partialorder %v2839_v11, 0.0  ;;  %v4262_v20 = vmul.f32 0.2, %v2839_v11  ;;  %v3642_v22 = vpop.f32.mrb[195].mxu1 }
 0x273   :  { %6660 = vst.msk [vmem:[%s11325_s2 + $0x2f4] sm:$0xf] %vm6470_vm3, %v7867_v13  ;;  %v7872_v23 = vpack.c.bf16 %v4664_v19, %v4664_v19  ;;  %v4864_v24 = vsel %vm4064_vm9, %v8681_v7, %v4464_v15  ;;  %vm4062_vm11 = vcmp.gt.f32.partialorder %v3639_v12, 0.0  ;;  %v4462_v25 = vmul.f32 0.2, %v3639_v12  ;;  %v8485_v38 = vpop.f32.mrb[196].mxu0 }
 0x274   :  { %6860 = vst.msk [vmem:[%s11325_s2 + $0x614] sm:$0xf] %vm6470_vm3, %v8067_v18  ;;  %v8072_v26 = vpack.c.bf16 %v4864_v24, %v4864_v24  ;;  %v4662_v27 = vsel %vm3862_vm10, %v2839_v11, %v4262_v20  ;;  %vm3865_vm12 = vcmp.gt.f32.partialorder %v8482_v16, 0.0  ;;  %v4265_v28 = vmul.f32 0.2, %v8482_v16  ;;  %v8685_v39 = vpop.f32.mrb[196].mxu1 }
 0x275   :  { %6665 = vst.msk [vmem:[%s11325_s2 + $0x308] sm:$0xf] %vm6470_vm3, %v7872_v23  ;;  %v7870_v29 = vpack.c.bf16 %v4662_v27, %v4662_v27  ;;  %v4862_v30 = vsel %vm4062_vm11, %v3639_v12, %v4462_v25  ;;  %vm4065_vm13 = vcmp.gt.f32.partialorder %v8682_v17, 0.0  ;;  %v4465_v31 = vmul.f32 0.2, %v8682_v17  ;;  %v2855_v43 = vpop.f32.mrb[197].mxu0 }
 0x276   :  { %6865 = vst.msk [vmem:[%s11325_s2 + $0x628] sm:$0xf] %vm6470_vm3, %v8072_v26  ;;  %v8070_v32 = vpack.c.bf16 %v4862_v30, %v4862_v30  ;;  %v4665_v33 = vsel %vm3865_vm12, %v8482_v16, %v4265_v28  ;;  %vm3863_vm14 = vcmp.gt.f32.partialorder %v2842_v21, 0.0  ;;  %v4263_v34 = vmul.f32 0.2, %v2842_v21  ;;  %v3655_v44 = vpop.f32.mrb[197].mxu1 }
 0x277   :  { %6663 = vst.msk [vmem:[%s11325_s2 + $0x300] sm:$0xf] %vm6470_vm3, %v7870_v29  ;;  %v7873_v35 = vpack.c.bf16 %v4665_v33, %v4665_v33  ;;  %v4865_v36 = vsel %vm4065_vm13, %v8682_v17, %v4465_v31  ;;  %vm4063_vm15 = vcmp.gt.f32.partialorder %v3642_v22, 0.0  ;;  %v4463_v37 = vmul.f32 0.2, %v3642_v22  ;;  %v8486_v48 = vpop.f32.mrb[198].mxu0 }
 0x278   :  { %6863 = vst.msk [vmem:[%s11325_s2 + $0x620] sm:$0xf] %vm6470_vm3, %v8070_v32  ;;  %v8073_v40 = vpack.c.bf16 %v4865_v36, %v4865_v36  ;;  %v4663_v41 = vsel %vm3863_vm14, %v2842_v21, %v4263_v34  ;;  %vm3868_vm1 = vcmp.gt.f32.partialorder %v8485_v38, 0.0  ;;  %v4268_v42 = vmul.f32 0.2, %v8485_v38  ;;  %v8686_v49 = vpop.f32.mrb[198].mxu1 }
 0x279   :  { %6666 = vst.msk [vmem:[%s11325_s2 + $0x30c] sm:$0xf] %vm6470_vm3, %v7873_v35  ;;  %v7871_v45 = vpack.c.bf16 %v4663_v41, %v4663_v41  ;;  %v4863_v46 = vsel %vm4063_vm15, %v3642_v22, %v4463_v37  ;;  %vm4068_vm0 = vcmp.gt.f32.partialorder %v8685_v39, 0.0  ;;  %v4468_v47 = vmul.f32 0.2, %v8685_v39  ;;  %v2858_v53 = vpop.f32.mrb[199].mxu0 }
 0x27a   :  { %6866 = vst.msk [vmem:[%s11325_s2 + $0x62c] sm:$0xf] %vm6470_vm3, %v8073_v40  ;;  %v8071_v50 = vpack.c.bf16 %v4863_v46, %v4863_v46  ;;  %v4668_v51 = vsel %vm3868_vm1, %v8485_v38, %v4268_v42  ;;  %vm3866_vm2 = vcmp.gt.f32.partialorder %v2855_v43, 0.0  ;;  %v4266_v52 = vmul.f32 0.2, %v2855_v43  ;;  %v3658_v54 = vpop.f32.mrb[199].mxu1 }
 0x27b   :  { %6664 = vst.msk [vmem:[%s11325_s2 + $0x304] sm:$0xf] %vm6470_vm3, %v7871_v45  ;;  %v7876_v55 = vpack.c.bf16 %v4668_v51, %v4668_v51  ;;  %v4868_v56 = vsel %vm4068_vm0, %v8685_v39, %v4468_v47  ;;  %vm4066_vm4 = vcmp.gt.f32.partialorder %v3655_v44, 0.0  ;;  %v4466_v57 = vmul.f32 0.2, %v3655_v44 }
 0x27c   :  { %6864 = vst.msk [vmem:[%s11325_s2 + $0x624] sm:$0xf] %vm6470_vm3, %v8071_v50  ;;  %v8076_v58 = vpack.c.bf16 %v4868_v56, %v4868_v56  ;;  %v4666_v59 = vsel %vm3866_vm2, %v2855_v43, %v4266_v52  ;;  %vm3869_vm5 = vcmp.gt.f32.partialorder %v8486_v48, 0.0  ;;  %v4269_v60 = vmul.f32 0.2, %v8486_v48 }
 0x27d   :  { %6669 = vst.msk [vmem:[%s11325_s2 + $0x318] sm:$0xf] %vm6470_vm3, %v7876_v55  ;;  %v7874_v61 = vpack.c.bf16 %v4666_v59, %v4666_v59  ;;  %v4866_v62 = vsel %vm4066_vm4, %v3655_v44, %v4466_v57  ;;  %vm4069_vm6 = vcmp.gt.f32.partialorder %v8686_v49, 0.0  ;;  %v4469_v63 = vmul.f32 0.2, %v8686_v49 }
 0x27e   :  { %6869 = vst.msk [vmem:[%s11325_s2 + $0x638] sm:$0xf] %vm6470_vm3, %v8076_v58  ;;  %v8074_v0 = vpack.c.bf16 %v4866_v62, %v4866_v62  ;;  %v4669_v1 = vsel %vm3869_vm5, %v8486_v48, %v4269_v60  ;;  %vm3867_vm7 = vcmp.gt.f32.partialorder %v2858_v53, 0.0  ;;  %v4267_v2 = vmul.f32 0.2, %v2858_v53 }
 0x27f   :  { %6667 = vst.msk [vmem:[%s11325_s2 + $0x310] sm:$0xf] %vm6470_vm3, %v7874_v61  ;;  %v7877_v3 = vpack.c.bf16 %v4669_v1, %v4669_v1  ;;  %v4869_v4 = vsel %vm4069_vm6, %v8686_v49, %v4469_v63  ;;  %vm4067_vm8 = vcmp.gt.f32.partialorder %v3658_v54, 0.0  ;;  %v4467_v5 = vmul.f32 0.2, %v3658_v54 }
 0x280   :  { %6867 = vst.msk [vmem:[%s11325_s2 + $0x630] sm:$0xf] %vm6470_vm3, %v8074_v0  ;;  %v8077_v6 = vpack.c.bf16 %v4869_v4, %v4869_v4  ;;  %v4667_v7 = vsel %vm3867_vm7, %v2858_v53, %v4267_v2 }
 0x281   :  { %6670 = vst.msk [vmem:[%s11325_s2 + $0x31c] sm:$0xf] %vm6470_vm3, %v7877_v3  ;;  %v7875_v8 = vpack.c.bf16 %v4667_v7, %v4667_v7  ;;  %v4867_v9 = vsel %vm4067_vm8, %v3658_v54, %v4467_v5 }
 0x282   :  { %6870 = vst.msk [vmem:[%s11325_s2 + $0x63c] sm:$0xf] %vm6470_vm3, %v8077_v6  ;;  %v8075_v10 = vpack.c.bf16 %v4867_v9, %v4867_v9 }
 0x283   :  { %6668 = vst.msk [vmem:[%s11325_s2 + $0x314] sm:$0xf] %vm6470_vm3, %v7875_v8 }
 0x284   :  { %6868 = vst.msk [vmem:[%s11325_s2 + $0x634] sm:$0xf] %vm6470_vm3, %v8075_v10 }

</bundles_post_ra>
